<compile_context>
chip_gen: v7x
topology: tpu7x:2x2x1
jax: 0.10.0
libtpu: 0.0.40
codegen_flags: <defaults>
</compile_context>

<pallas_src>
import functools
import math

import jax
import jax.numpy as jnp
from jax import lax
from jax.experimental import pallas as pl
from jax.experimental.pallas import tpu as pltpu


def _smearing_kernel(d_ref, offt_ref, expand_ref, out_ref, *, coeff, exp_in_bf16):
    # d_ref:      (TP, R)    packed distances (R logical rows per packed row)
    # offt_ref:   (1, R*G)   gaussian centers tiled R times (resident block)
    # expand_ref: (R, R*G)   one-hot lane-expansion matrix (resident block)
    # out_ref:    (TP, R*G)  lane-dense output block, lane = j*G + g
    d = d_ref[...].astype(jnp.float32)                      # (TP, R)
    # Replicate each distance across its G gaussian lanes on the (otherwise
    # idle) MXU: d_exp[i, j*G + g] = d[i, j].  HIGHEST precision makes the
    # one-hot product bit-exact (3-way bf16 split reconstructs f32 exactly).
    d_exp = jnp.dot(d, expand_ref[...],
                    preferred_element_type=jnp.float32,
                    precision=lax.Precision.HIGHEST)        # (TP, R*G)
    diff = d_exp - offt_ref[...]                            # broadcast (1, R*G)
    x = coeff * diff * diff
    if exp_in_bf16:
        # 2x EUP throughput on v6e/v7x; do NOT enable on v5e (no bf16 EUP).
        y = jnp.exp(x.astype(jnp.bfloat16))
    else:
        y = jnp.exp(x)
    # Partial tail blocks: rows beyond the array hold uninitialized VMEM; any
    # NaN/Inf stays row-local and Pallas masks the partial-block writeback.
    out_ref[...] = y.astype(out_ref.dtype)


def _pick_packed_tile(n_packed: int, row_tile: int, lane_pack: int) -> int:
    """Packed-row tile: big (amortize ~0.35us/step), sublane-aligned, >=2 steps."""
    req = max(1, row_tile // lane_pack)          # requested logical rows -> packed rows
    if n_packed <= req:
        if n_packed >= 16:
            # Split into >=2 blocks so both v7x TensorCores get work.
            return max(8, (pl.cdiv(n_packed, 2) // 8) * 8)
        # Tiny input: a single full-extent block (block dims == array dims).
        return n_packed
    # Large input: requested tile, rounded to the 8-row sublane granule.  Only
    # the >=2-step rule applies and it is automatically satisfied here.
    return max(8, (req // 8) * 8)


def gaussian_smearing(dist: jax.Array,
                      offset: jax.Array,
                      coeff: float,
                      *,
                      row_tile: int = 8192,
                      out_dtype=jnp.float32,
                      exp_in_bf16: bool = False) -> jax.Array:
    """Pallas implementation of GaussianSmearing.forward.

    Args:
      dist: any-shape float array of distances.
      offset: (num_gaussians,) float array of gaussian centers.
      coeff: scalar -0.5 / (basis_width_scalar * delta)**2.
      row_tile: logical rows of the flattened distance vector per grid step.
      out_dtype: output dtype.  jnp.bfloat16 halves HBM write bytes (~1.8-2x on
        the write-bound roofline) if the consumer tolerates it; default f32
        matches the torch module.
      exp_in_bf16: run the exp in bf16 (v6e/v7x only; keep False on v5e and
        whenever full f32 accuracy is required).

    Returns:
      (dist.size, num_gaussians) array, matching torch semantics.
    """
    num_gaussians = int(offset.shape[0])
    flat = jnp.ravel(dist).astype(jnp.float32)
    n = flat.shape[0]
    if n == 0:
        return jnp.zeros((0, num_gaussians), dtype=out_dtype)

    # Smallest lane-pack factor R such that R*G is a multiple of 128
    # (fully lane-dense stores).  G=50 -> R=64, width=3200.
    lane_pack = 128 // math.gcd(num_gaussians, 128)
    width = lane_pack * num_gaussians

    # Pad the *input* (cheap: 4 bytes/row) so the packed reshape is exact.
    n_pad = pl.cdiv(n, lane_pack) * lane_pack
    if n_pad != n:
        flat = jnp.pad(flat, (0, n_pad - n))
    n_packed = n_pad // lane_pack
    packed = flat.reshape(n_packed, lane_pack)               # free metadata reshape

    # Resident operands: tiled offsets (12.8 KB) and one-hot expansion (800 KB),
    # each DMA'd once per core (constant index_map).
    offt = jnp.tile(offset.astype(jnp.float32), lane_pack).reshape(1, width)
    lane_row = jnp.arange(width, dtype=jnp.int32) // num_gaussians
    expand = (lane_row[None, :] ==
              jnp.arange(lane_pack, dtype=jnp.int32)[:, None]).astype(jnp.float32)

    tile = _pick_packed_tile(n_packed, row_tile, lane_pack)
    grid = (pl.cdiv(n_packed, tile),)

    out_itemsize = jnp.dtype(out_dtype).itemsize
    cost = pl.CostEstimate(
        flops=int(2 * n_pad * num_gaussians * lane_pack + 3 * n_pad * num_gaussians),
        transcendentals=int(n_pad * num_gaussians),
        bytes_accessed=int(4 * n_pad                          # distance read
                           + out_itemsize * n_pad * num_gaussians  # output write
                           + 4 * expand.size + 4 * width),    # resident operands
    )

    out_packed = pl.pallas_call(
        functools.partial(_smearing_kernel,
                          coeff=float(coeff),
                          exp_in_bf16=bool(exp_in_bf16)),
        out_shape=jax.ShapeDtypeStruct((n_packed, width), out_dtype),
        grid_spec=pltpu.PrefetchScalarGridSpec(
            num_scalar_prefetch=0,
            grid=grid,
            in_specs=[
                pl.BlockSpec((tile, lane_pack), lambda i: (i, 0)),
                pl.BlockSpec((1, width), lambda i: (0, 0)),
                pl.BlockSpec((lane_pack, width), lambda i: (0, 0)),
            ],
            out_specs=pl.BlockSpec((tile, width), lambda i: (i, 0)),
        ),
        compiler_params=pltpu.CompilerParams(
            dimension_semantics=("parallel",)),
        cost_estimate=cost,
    )(packed, offt, expand)

    # Row-major (n_packed, R*G) has the identical byte order of (n_pad, G):
    # this reshape is free.  Only non-multiple-of-R inputs pay the slice copy.
    out = out_packed.reshape(n_pad, num_gaussians)
    if n_pad != n:
        out = out[:n]
    return out


class GaussianSmearing:
    """Parameter container mirroring the torch module's __init__."""

    def __init__(self,
                 start: float = -5.0,
                 stop: float = 5.0,
                 num_gaussians: int = 50,
                 basis_width_scalar: float = 1.0) -> None:
        if num_gaussians < 2:
            raise ValueError("num_gaussians must be >= 2")
        self.num_output = num_gaussians
        self.offset = jnp.linspace(start, stop, num_gaussians, dtype=jnp.float32)
        # Same value as torch's (offset[1]-offset[0]).item(), computed in pure
        # Python to avoid a device sync at construction time.
        delta = (stop - start) / (num_gaussians - 1)
        self.coeff = -0.5 / (basis_width_scalar * delta) ** 2

    def __call__(self, dist: jax.Array, *,
                 out_dtype=jnp.float32, exp_in_bf16: bool = False) -> jax.Array:
        return gaussian_smearing(dist, self.offset, self.coeff,
                                 out_dtype=out_dtype, exp_in_bf16=exp_in_bf16)


def _reference(dist, offset, coeff):
    d = dist.reshape(-1, 1).astype(jnp.float32) - offset.reshape(1, -1)
    return jnp.exp(coeff * d * d)


if __name__ == "__main__":
    key = jax.random.PRNGKey(0)
    k1, k2 = jax.random.split(key)

    module = GaussianSmearing(start=-5.0, stop=5.0, num_gaussians=50,
                              basis_width_scalar=1.0)

    # Case 1: N = 2*4*16 = 128, a multiple of the lane-pack factor (64):
    # fast path, the (N, 50) result is a free reshape of the packed output.
    dist1 = jax.random.uniform(k1, (2, 4, 16), dtype=jnp.float32,
                               minval=0.0, maxval=5.0)
    out1 = jax.block_until_ready(module(dist1))
    ref1 = _reference(dist1, module.offset, module.coeff)
    assert out1.shape == (dist1.size, module.num_output), out1.shape
    assert jnp.allclose(out1, ref1, atol=1e-5, rtol=1e-5), "mismatch (fast path)"

    # Case 2: N = 3*37 = 111, NOT a multiple of the lane-pack factor:
    # exercises the input-pad + tail-slice path flagged in the review.
    dist2 = jax.random.uniform(k2, (3, 37), dtype=jnp.float32,
                               minval=0.0, maxval=5.0)
    out2 = jax.block_until_ready(module(dist2))
    ref2 = _reference(dist2, module.offset, module.coeff)
    assert out2.shape == (dist2.size, module.num_output), out2.shape
    assert jnp.allclose(out2, ref2, atol=1e-5, rtol=1e-5), "mismatch (tail path)"

    print("KERNEL_OK")
</pallas_src>

<mosaic_0001>
module attributes {stable_mosaic.version = 11 : i64} {
  func.func @_smearing_kernel(%arg0: i32, %arg1: memref<2x64xf32, #tpu.memory_space<vmem>>, %arg2: memref<1x3200xf32, #tpu.memory_space<vmem>>, %arg3: memref<64x3200xf32, #tpu.memory_space<vmem>>, %arg4: memref<2x3200xf32, #tpu.memory_space<vmem>>) attributes {dimension_semantics = [#tpu.dimension_semantics<parallel>], iteration_bounds = array<i64: 1>, scalar_prefetch = 0 : i64, scratch_operands = 0 : i64, tpu.core_type = #tpu.core_type<tc>, window_params = [{transform_indices = @transform_0, window_bounds = array<i64: 2, 64>}, {pipeline_mode = #tpu.pipeline_mode<synchronous>, transform_indices = @transform_1, window_bounds = array<i64: 1, 3200>}, {pipeline_mode = #tpu.pipeline_mode<synchronous>, transform_indices = @transform_2, window_bounds = array<i64: 64, 3200>}, {transform_indices = @transform_3, window_bounds = array<i64: 2, 3200>}]} {
    %c0 = arith.constant 0 : index
    %c0_0 = arith.constant 0 : index
    %0 = vector.load %arg1[%c0, %c0_0] : memref<2x64xf32, #tpu.memory_space<vmem>>, vector<2x64xf32>
    %c0_1 = arith.constant 0 : index
    %c0_2 = arith.constant 0 : index
    %1 = vector.load %arg3[%c0_1, %c0_2] : memref<64x3200xf32, #tpu.memory_space<vmem>>, vector<64x3200xf32>
    %cst = arith.constant dense<0.000000e+00> : vector<2x3200xf32>
    %2 = tpu.matmul %0, %1, %cst {dimension_numbers = #tpu.dot_dimension_numbers<[1], [0], [0], [1], [0, 0, 1, 1], [], []>, precision = #tpu.contract_precision<fp32>} : vector<2x64xf32>, vector<64x3200xf32>, vector<2x3200xf32> -> vector<2x3200xf32>
    %c0_3 = arith.constant 0 : index
    %c0_4 = arith.constant 0 : index
    %3 = vector.load %arg2[%c0_3, %c0_4] : memref<1x3200xf32, #tpu.memory_space<vmem>>, vector<1x3200xf32>
    %4 = vector.broadcast %3 : vector<1x3200xf32> to vector<2x3200xf32>
    %5 = arith.subf %2, %4 : vector<2x3200xf32>
    %cst_5 = arith.constant -1.200500e+01 : f32
    %6 = vector.broadcast %cst_5 : f32 to vector<2x3200xf32>
    %7 = arith.mulf %6, %5 : vector<2x3200xf32>
    %8 = arith.mulf %7, %5 : vector<2x3200xf32>
    %9 = math.exp %8 : vector<2x3200xf32>
    %c0_6 = arith.constant 0 : index
    %c0_7 = arith.constant 0 : index
    %10 = vector.load %arg4[%c0_6, %c0_7] : memref<2x3200xf32, #tpu.memory_space<vmem>>, vector<2x3200xf32>
    tpu.vector_store %arg4[%c0_6, %c0_7], %9 {strides = array<i32>} : memref<2x3200xf32, #tpu.memory_space<vmem>>, vector<2x3200xf32>,
    return
  }
  func.func @transform_0(%arg0: i32) -> (i32, i32) {
    %c0_i32 = arith.constant 0 : i32
    %c0_i32_0 = arith.constant 0 : i32
    return %arg0, %c0_i32 : i32, i32
  }
  func.func @transform_1(%arg0: i32) -> (i32, i32) {
    %c0_i32 = arith.constant 0 : i32
    %c0_i32_0 = arith.constant 0 : i32
    %c0_i32_1 = arith.constant 0 : i32
    return %c0_i32, %c0_i32_0 : i32, i32
  }
  func.func @transform_2(%arg0: i32) -> (i32, i32) {
    %c0_i32 = arith.constant 0 : i32
    %c0_i32_0 = arith.constant 0 : i32
    %c0_i32_1 = arith.constant 0 : i32
    return %c0_i32, %c0_i32_0 : i32, i32
  }
  func.func @transform_3(%arg0: i32) -> (i32, i32) {
    %c0_i32 = arith.constant 0 : i32
    %c0_i32_0 = arith.constant 0 : i32
    return %arg0, %c0_i32 : i32, i32
  }
}

</mosaic_0001>

<bundles_post_ra>
// kernel: tpu_custom_call.1
= control target key start
LH: loop header
LB: loop body
LE: loop exit
PB: predicated region body
PF: predicated region fallthrough
CT: control target
= control target key end

     0   :  { %8 = vsyncpa [#allocation3], 0  ;;  %s13409_s0 = inlined_call_operand.hbm [shape: f32[2,64], index: 0, kind: input, shape index: {}]   ;;  %s13410_s1 = inlined_call_operand.hbm [shape: f32[1,3200], index: 1, kind: input, shape index: {}]   ;;  %s13411_s2 = inlined_call_operand.hbm [shape: f32[64,3200], index: 2, kind: input, shape index: {}]   ;;  %s13412_s3 = inlined_call_operand.hbm [shape: f32[2,3200], index: 3, kind: output, shape index: {}]  }
   0x1   :  { %9 = vsyncpa [#allocation6], 0 }
   0x2   :  { %10 = vsyncpa [#allocation4], 0  ;;  %s10660_s12 = smov [#allocation5]   ;;  %s10661_s14 = smov [#allocation2]  }
   0x3   :  { %s27_s13 = sshll.u32 %s10660_s12, 4  ;;  %s17_s15 = sshll.u32 %s10661_s14, 4  ;;  %s28_s13 = int_to_ptr.vmem [resolvable:$true] %s27_s13  ;;  %s18_s15 = int_to_ptr.vmem [resolvable:$true] %s17_s15 }
   0x4   :  { %s10566_s18 = scalar_lea.hbm %s13410_s1, 400 }
   0x5   :  { %p10567_p0 = scmp.ne.s32.totalorder %s13410_s1, %s10566_s18  ;;  %p10570_p1 = scmp.lt.u32.totalorder %s10566_s18, %s13410_s1 }
   0x7   :  { %p10572_p2 = pnand %p10570_p1, %p10567_p0 }
   0x9   :  { %10575 = shalt.err (!%p10572_p2)
}
   0xa   :  { %s10576_s23 = scalar_lea.vmem %s28_s13, 400  ;;  %s10580_s24 = scalar_lea.vmem %s28_s13, 416 }
   0xb   :  { %p10577_p3 = scmp.ne.s32.totalorder %s28_s13, %s10576_s23  ;;  %p10581_p4 = scmp.lt.s32.totalorder %s28_s13, %s28_s13 }
   0xc   :  { %p10582_p5 = scmp.lt.s32.totalorder %s10580_s24, %s10576_s23 }
   0xe   :  { %p10583_p6 = por %p10582_p5, %p10581_p4 }
  0x10   :  { %p10584_p7 = pnand %p10583_p6, %p10577_p3 }
  0x12   :  { %10587 = shalt.err (!%p10584_p7)
}
  0x13   :  { %30 = dma.hbm_to_vmem [thread:$0]  %s13410_s1, 400, %s28_s13, [#allocation6]  }
  0x14   :  { %s10588_s29 = scalar_lea.hbm %s13409_s0, 32 }
  0x15   :  { %p10589_p8 = scmp.ne.s32.totalorder %s13409_s0, %s10588_s29  ;;  %p10592_p9 = scmp.lt.u32.totalorder %s10588_s29, %s13409_s0 }
  0x17   :  { %p10594_p10 = pnand %p10592_p9, %p10589_p8 }
  0x19   :  { %10597 = shalt.err (!%p10594_p10)
}
  0x1a   :  { %s10598_s7 = scalar_lea.vmem %s18_s15, 32  ;;  %p10603_p12 = scmp.lt.s32.totalorder %s18_s15, %s18_s15 }
  0x1b   :  { %p10599_p11 = scmp.ne.s32.totalorder %s18_s15, %s10598_s7  ;;  %p10604_p13 = scmp.lt.s32.totalorder %s10598_s7, %s10598_s7 }
  0x1d   :  { %p10605_p0 = por %p10604_p13, %p10603_p12 }
  0x1f   :  { %p10606_p1 = pnand %p10605_p0, %p10599_p11 }
  0x21   :  { %10609 = shalt.err (!%p10606_p1)
}
  0x22   :  { %20 = dma.hbm_to_vmem [thread:$0]  %s13409_s0, 32, %s18_s15, [#allocation3]  }
  0x23   :  { %s10662_s9 = smov [#allocation7]   ;;  %s10610_s13 = scalar_lea.hbm %s13411_s2, 25600 }
  0x24   :  { %s36_s10 = sshll.u32 %s10662_s9, 4  ;;  %p10611_p2 = scmp.ne.s32.totalorder %s13411_s2, %s10610_s13  ;;  %s37_s10 = int_to_ptr.vmem [resolvable:$true] %s36_s10 }
  0x25   :  { %p10614_p3 = scmp.lt.u32.totalorder %s10610_s13, %s13411_s2 }
  0x27   :  { %p10616_p4 = pnand %p10614_p3, %p10611_p2 }
  0x29   :  { %10619 = shalt.err (!%p10616_p4)
}
  0x2a   :  { %s10620_s19 = scalar_lea.vmem %s37_s10, 25600  ;;  %p10625_p6 = scmp.lt.s32.totalorder %s37_s10, %s37_s10 }
  0x2b   :  { %p10621_p5 = scmp.ne.s32.totalorder %s37_s10, %s10620_s19  ;;  %p10626_p7 = scmp.lt.s32.totalorder %s10620_s19, %s10620_s19 }
  0x2d   :  { %p10627_p8 = por %p10626_p7, %p10625_p6 }
  0x2f   :  { %p10628_p9 = pnand %p10627_p8, %p10621_p5 }
  0x31   :  { %10631 = shalt.err (!%p10628_p9)
}
  0x32   :  { %s10663_s0 = smov 3200   ;;  %s10664_s15 = smov 200  }
  0x33   :  { %42 = dma.hbm_to_vmem [thread:$0]  %s13411_s2, 25600, %s37_s10, [#allocation6], %s10663_s0, %s10663_s0, %s10664_s15  }
  0x34   :  { %10654 = dma.done.wait [#allocation3], 32  }
  0x35   :  { %10655 = vsyncadd [#allocation3], 4294967264 }
  0x36   :  { %10656 = dma.done.wait [#allocation6], 26000  }
  0x37   :  { %10657 = vsyncadd [#allocation6], 4294941296  ;;  %v13413_v0 = vmov 0.0   ;;  %v54_v1 = vld [vmem:[#allocation7 + $0x8] sm:$0xff]  ;;  %v79_v2 = vld [vmem:[#allocation7 + $0xd0] sm:$0xff]  ;;  %vm253_vm0 = vcmask 523264  }
  0x38   :  { %337 = vmatprep.mubr.f32.mxu1 %v13413_v0  ;;  %686 = vmatprep.mubr.f32.mxu0 %v13413_v0  ;;  %v53_v3 = vld [vmem:[#allocation7] sm:$0xff]  ;;  %v257_v4 = vand.u32 4294901760, %v54_v1  ;;  %v261_v5 = vand.u32 4294901760, %v79_v2  ;;  %v78_v6 = vld [vmem:[#allocation7 + $0xc8] sm:$0xff]  ;;  %v104_v8 = vld [vmem:[#allocation7 + $0x198] sm:$0xff]  ;;  %vm10668_vm1 = vmmov 0  }
  0x39   :  { %v259_v7 = vand.u32 4294901760, %v53_v3  ;;  %v129_v9 = vld [vmem:[#allocation7 + $0x260] sm:$0xff]  ;;  %v263_v10 = vand.u32 4294901760, %v78_v6  ;;  %v265_v11 = vand.u32 4294901760, %v104_v8  ;;  %v103_v13 = vld [vmem:[#allocation7 + $0x190] sm:$0xff]  ;;  %v128_v14 = vld [vmem:[#allocation7 + $0x258] sm:$0xff] }
  0x3a   :  { %v269_v12 = vand.u32 4294901760, %v129_v9  ;;  %v154_v15 = vld [vmem:[#allocation7 + $0x328] sm:$0xff]  ;;  %v10728_v16 = vpack.c.bf16 %v261_v5, %v257_v4  ;;  %v10730_v17 = vsub.f32 %v54_v1, %v257_v4  ;;  %v10732_v18 = vsub.f32 %v79_v2, %v261_v5  ;;  %v179_v19 = vld [vmem:[#allocation7 + $0x3f0] sm:$0xff]  ;;  %v153_v20 = vld [vmem:[#allocation7 + $0x320] sm:$0xff]  ;;  %s10669_s2 = smov [#allocation8]  }
  0x3b   :  { %v178_v21 = vld [vmem:[#allocation7 + $0x3e8] sm:$0xff]  ;;  %v10734_v22 = vpack.c.bf16 %v263_v10, %v259_v7  ;;  %v10736_v23 = vsub.f32 %v53_v3, %v259_v7  ;;  %v10738_v24 = vsub.f32 %v78_v6, %v263_v10  ;;  %v204_v26 = vld [vmem:[#allocation7 + $0x4b8] sm:$0xff]  ;;  %v229_v27 = vld [vmem:[#allocation7 + $0x580] sm:$0xff]  ;;  %v10744_v28 = vsub.f32 %v104_v8, %v265_v11  ;;  %s8970_s22 = sshll.u32 %s10669_s2, 4  ;;  %s8971_s22 = int_to_ptr.vmem [resolvable:$true] %s8970_s22 }
  0x3c   :  { %v10740_v25 = vpack.c.bf16 %v269_v12, %v265_v11  ;;  %9151 = vmatprep.subr.bf16.mxu1 %v10728_v16  ;;  %9199 = vmatprep.subr.bf16.mxu0 %v10728_v16  ;;  %v267_v29 = vand.u32 4294901760, %v103_v13  ;;  %v271_v30 = vand.u32 4294901760, %v128_v14  ;;  %v273_v31 = vand.u32 4294901760, %v154_v15  ;;  %v203_v40 = vld [vmem:[#allocation7 + $0x4b0] sm:$0xff]  ;;  %v228_v41 = vld [vmem:[#allocation7 + $0x578] sm:$0xff]  ;;  %s10632_s23 = scalar_lea.vmem %s8971_s22, 800  ;;  %p10637_p11 = scmp.lt.s32.totalorder %s8971_s22, %s8971_s22 }
  0x3d   :  { %9153 = vmatpush1.bf16.msra.mxu1 %v10734_v22  ;;  %9201 = vmatpush1.bf16.msra.mxu0 %v10734_v22  ;;  %v277_v32 = vand.u32 4294901760, %v179_v19  ;;  %v275_v33 = vand.u32 4294901760, %v153_v20  ;;  %v279_v34 = vand.u32 4294901760, %v178_v21  ;;  %v281_v35 = vand.u32 4294901760, %v204_v26  ;;  %v52_v46 = vld [vmem:[#allocation2] sm:$0x3]  ;;  %p10633_p10 = scmp.ne.s32.totalorder %s8971_s22, %s10632_s23  ;;  %p10638_p12 = scmp.lt.s32.totalorder %s10632_s23, %s10632_s23 }
  0x3e   :  { %9155 = vmatprep.subr.bf16.mxu1 %v10740_v25  ;;  %v10749_v36 = vsub.f32 %v129_v9, %v269_v12  ;;  %9203 = vmatprep.subr.bf16.mxu0 %v10740_v25  ;;  %v10752_v37 = vpack.c.bf16 %v271_v30, %v267_v29  ;;  %v10754_v38 = vsub.f32 %v103_v13, %v267_v29  ;;  %v285_v39 = vand.u32 4294901760, %v229_v27 }
  0x3f   :  { %v10756_v42 = vsub.f32 %v128_v14, %v271_v30  ;;  %v10758_v43 = vpack.c.bf16 %v277_v32, %v273_v31  ;;  %v10760_v44 = vsub.f32 %v154_v15, %v273_v31  ;;  %v10762_v45 = vsub.f32 %v179_v19, %v277_v32  ;;  %p10639_p13 = por %p10638_p12, %p10637_p11 }
  0x40   :  { %v10764_v47 = vpack.c.bf16 %v279_v34, %v275_v33  ;;  %v10766_v48 = vsub.f32 %v153_v20, %v275_v33  ;;  %v10768_v49 = vsub.f32 %v178_v21, %v279_v34  ;;  %v10770_v50 = vpack.c.bf16 %v285_v39, %v281_v35 }
  0x41   :  { %9157 = vmatpush1.bf16.msra.mxu1 %v10752_v37  ;;  %9205 = vmatpush1.bf16.msra.mxu0 %v10752_v37  ;;  %v10774_v51 = vsub.f32 %v204_v26, %v281_v35  ;;  %v283_v52 = vand.u32 4294901760, %v203_v40  ;;  %v287_v53 = vand.u32 4294901760, %v228_v41  ;;  %v351_v54 = vand.u32 4294901760, %v10730_v17  ;;  %p10640_p0 = pnand %p10639_p13, %p10633_p10 }
  0x42   :  { %9159 = vmatprep.subr.bf16.mxu1 %v10758_v43  ;;  %9207 = vmatprep.subr.bf16.mxu0 %v10758_v43  ;;  %v363_v55 = vand.u32 4294901760, %v10732_v18  ;;  %v255_v56 = vsel %vm253_vm0, %v52_v46, 0  ;;  %v357_v57 = vand.u32 4294901760, %v10736_v23  ;;  %v369_v58 = vand.u32 4294901760, %v10738_v24 }
  0x43   :  { %v10783_v59 = vsub.f32 %v229_v27, %v285_v39  ;;  %v10785_v60 = vpack.c.bf16 %v287_v53, %v283_v52  ;;  %v10787_v61 = vsub.f32 %v203_v40, %v283_v52  ;;  %v352_v62 = vsub.f32 %v10730_v17, %v351_v54 }
  0x44   :  { %v10790_v63 = vsub.f32 %v228_v41, %v287_v53  ;;  %v364_v1 = vsub.f32 %v10732_v18, %v363_v55  ;;  %v10793_v2 = vand.u32 4294901760, %v255_v56  ;;  %v358_v3 = vsub.f32 %v10736_v23, %v357_v57 }
  0x45   :  { %9161 = vmatpush1.bf16.msra.mxu1 %v10764_v47  ;;  %9209 = vmatpush1.bf16.msra.mxu0 %v10764_v47  ;;  %v353_v4 = vand.u32 4294901760, %v352_v62  ;;  %v9214_v5 = vpack.c.bf16 %v363_v55, %v351_v54  ;;  %v370_v6 = vsub.f32 %v10738_v24, %v369_v58  ;;  %v375_v7 = vand.u32 4294901760, %v10744_v28 }
  0x46   :  { %13746 = vst [vmem:[#allocation12_spill] sm:$0xff] %v10793_v2  ;;  %9163 = vmatprep.subr.bf16.mxu1 %v10770_v50  ;;  %9211 = vmatprep.subr.bf16.mxu0 %v10770_v50  ;;  %v365_v8 = vand.u32 4294901760, %v364_v1  ;;  %v10803_v9 = vsub.f32 %v255_v56, %v10793_v2  ;;  %v359_v10 = vand.u32 4294901760, %v358_v3  ;;  %v387_v11 = vand.u32 4294901760, %v10749_v36 }
  0x47   :  { %v371_v12 = vand.u32 4294901760, %v370_v6  ;;  %v376_v13 = vsub.f32 %v10744_v28, %v375_v7  ;;  %v381_v14 = vand.u32 4294901760, %v10754_v38  ;;  %v393_v15 = vand.u32 4294901760, %v10756_v42 }
  0x48   :  { %13747 = vst [vmem:[#allocation13_spill] sm:$0xff] %v10803_v9  ;;  %v9166_v19 = vpack.c.bf16 %v365_v8, %v353_v4  ;;  %v10810_v20 = vand.u32 4294901760, %v10803_v9  ;;  %v9216_v21 = vpack.c.bf16 %v369_v58, %v357_v57  ;;  %v388_v26 = vsub.f32 %v10749_v36, %v387_v11 }
  0x49   :  { %9165 = vmatpush1.bf16.msra.mxu1 %v10785_v60  ;;  %9213 = vmatpush1.bf16.msra.mxu0 %v10785_v60  ;;  %v377_v27 = vand.u32 4294901760, %v376_v13  ;;  %v9218_v29 = vpack.c.bf16 %v387_v11, %v375_v7  ;;  %v382_v30 = vsub.f32 %v10754_v38, %v381_v14  ;;  %v394_v31 = vsub.f32 %v10756_v42, %v393_v15 }
  0x4a   :  { %13748 = vst [vmem:[#allocation14_spill] sm:$0xff] %v10810_v20  ;;  %9167 = vmatprep.subr.bf16.mxu1 %v9166_v19  ;;  %9215 = vmatprep.subr.bf16.mxu0 %v9214_v5  ;;  %v341_v32 = vsub.f32 %v10803_v9, %v10810_v20  ;;  %v9168_v33 = vpack.c.bf16 %v371_v12, %v359_v10  ;;  %v389_v34 = vand.u32 4294901760, %v388_v26  ;;  %v399_v35 = vand.u32 4294901760, %v10760_v44 }
  0x4b   :  { %v383_v39 = vand.u32 4294901760, %v382_v30  ;;  %v395_v40 = vand.u32 4294901760, %v394_v31  ;;  %v411_v41 = vand.u32 4294901760, %v10762_v45  ;;  %v405_v46 = vand.u32 4294901760, %v10766_v48 }
  0x4c   :  { %v10822_v52 = vand.u32 4294901760, %v341_v32  ;;  %690 = vmatmul.mubr.f32.vlgmr.msra.gmra.mrb[0].mxu0 %v10810_v20  ;;  %v9170_v53 = vpack.c.bf16 %v389_v34, %v377_v27  ;;  %v400_v54 = vsub.f32 %v10760_v44, %v399_v35  ;;  %v417_v55 = vand.u32 4294901760, %v10768_v49  ;;  %v56_v32 = vld [vmem:[#allocation7 + $0x18] sm:$0xff] }
  0x4d   :  { %9217 = vmatpush1.bf16.msra.mxu0 %v9216_v21  ;;  %v9172_v56 = vpack.c.bf16 %v395_v40, %v383_v39  ;;  %v9220_v57 = vpack.c.bf16 %v393_v15, %v381_v14  ;;  %v412_v58 = vsub.f32 %v10762_v45, %v411_v41  ;;  %v406_v62 = vsub.f32 %v10766_v48, %v405_v46  ;;  %v81_v40 = vld [vmem:[#allocation7 + $0xe0] sm:$0xff] }
  0x4e   :  { %13749 = vst [vmem:[#allocation15_spill] sm:$0xff] %v10822_v52  ;;  %343 = vmatmul.mubr.f32.vlgmr.msra.gmra.mrb[0].mxu1 %v10822_v52  ;;  %9219 = vmatprep.subr.bf16.mxu0 %v9218_v29  ;;  %v401_v1 = vand.u32 4294901760, %v400_v54  ;;  %v9222_v3 = vpack.c.bf16 %v411_v41, %v399_v35  ;;  %v418_v4 = vsub.f32 %v10768_v49, %v417_v55  ;;  %v423_v5 = vand.u32 4294901760, %v10774_v51  ;;  %v58_v41 = vld [vmem:[#allocation7 + $0x28] sm:$0xff]  ;;  %v132_v54 = vld [vmem:[#allocation7 + $0x278] sm:$0xff] }
  0x4f   :  { %9169 = vmatpush1.bf16.msra.mxu1 %v9168_v33  ;;  %v413_v6 = vand.u32 4294901760, %v412_v58  ;;  %v407_v7 = vand.u32 4294901760, %v406_v62  ;;  %v435_v8 = vand.u32 4294901760, %v10783_v59  ;;  %v429_v10 = vand.u32 4294901760, %v10787_v61  ;;  %493 = vmatprep.mubr.f32.mxu1 %v13413_v0  ;;  %v80_v58 = vld [vmem:[#allocation7 + $0xd8] sm:$0xff] }
  0x50   :  { %9171 = vmatprep.subr.bf16.mxu1 %v9170_v53  ;;  %v419_v11 = vand.u32 4294901760, %v418_v4  ;;  %v9224_v12 = vpack.c.bf16 %v417_v55, %v405_v46  ;;  %v424_v13 = vsub.f32 %v10774_v51, %v423_v5  ;;  %v441_v14 = vand.u32 4294901760, %v10790_v63  ;;  %808 = vmatprep.mubr.f32.mxu0 %v13413_v0  ;;  %v83_v46 = vld [vmem:[#allocation7 + $0xf0] sm:$0xff] }
  0x51   :  { %9221 = vmatpush1.bf16.msra.mxu0 %v9220_v57  ;;  %v9174_v15 = vpack.c.bf16 %v413_v6, %v401_v1  ;;  %v436_v19 = vsub.f32 %v10783_v59, %v435_v8  ;;  %v430_v21 = vsub.f32 %v10787_v61, %v429_v10  ;;  %v9182_v26 = vpack.c.bf16 %v10732_v18, %v10730_v17  ;;  %v55_v57 = vld [vmem:[#allocation7 + $0x10] sm:$0xff]  ;;  %v105_v1 = vld [vmem:[#allocation7 + $0x1a0] sm:$0xff] }
  0x52   :  { %9223 = vmatprep.subr.bf16.mxu0 %v9222_v3  ;;  %v9176_v27 = vpack.c.bf16 %v419_v11, %v407_v7  ;;  %v425_v29 = vand.u32 4294901760, %v424_v13  ;;  %v9226_v30 = vpack.c.bf16 %v435_v8, %v423_v5  ;;  %v442_v31 = vsub.f32 %v10790_v63, %v441_v14  ;;  %v57_v5 = vld [vmem:[#allocation7 + $0x20] sm:$0xff]  ;;  %v82_v11 = vld [vmem:[#allocation7 + $0xe8] sm:$0xff] }
  0x53   :  { %9173 = vmatpush1.bf16.msra.mxu1 %v9172_v56  ;;  %v437_v33 = vand.u32 4294901760, %v436_v19  ;;  %v431_v34 = vand.u32 4294901760, %v430_v21  ;;  %v9228_v35 = vpack.c.bf16 %v441_v14, %v429_v10  ;;  %v904_v4 = vand.u32 4294901760, %v56_v32  ;;  %v106_v19 = vld [vmem:[#allocation7 + $0x1a8] sm:$0xff]  ;;  %v131_v21 = vld [vmem:[#allocation7 + $0x270] sm:$0xff]  ;;  %v133_v3 = vld [vmem:[#allocation7 + $0x280] sm:$0xff] }
  0x54   :  { %9175 = vmatprep.subr.bf16.mxu1 %v9174_v15  ;;  %v443_v53 = vand.u32 4294901760, %v442_v31  ;;  %v908_v7 = vand.u32 4294901760, %v81_v40  ;;  %v1551_v8 = vand.u32 4294901760, %v58_v41  ;;  %v1555_v10 = vand.u32 4294901760, %v83_v46  ;;  %v130_v56 = vld [vmem:[#allocation7 + $0x268] sm:$0xff] }
  0x55   :  { %9225 = vmatpush1.bf16.msra.mxu0 %v9224_v12  ;;  %v9178_v62 = vpack.c.bf16 %v437_v33, %v425_v29  ;;  %v10857_v12 = vsub.f32 %v56_v32, %v904_v4  ;;  %v906_v14 = vand.u32 4294901760, %v55_v57  ;;  %v910_v15 = vand.u32 4294901760, %v80_v58  ;;  %v108_v29 = vld [vmem:[#allocation7 + $0x1b8] sm:$0xff] }
  0x56   :  { %9227 = vmatprep.subr.bf16.mxu0 %v9226_v30  ;;  %v9180_v13 = vpack.c.bf16 %v443_v53, %v431_v34  ;;  %v10859_v31 = vpack.c.bf16 %v908_v7, %v904_v4  ;;  %v10861_v30 = vsub.f32 %v81_v40, %v908_v7  ;;  %v10863_v33 = vpack.c.bf16 %v1555_v10, %v1551_v8 }
  0x57   :  { %9177 = vmatpush1.bf16.msra.mxu1 %v9176_v27  ;;  %v1553_v6 = vand.u32 4294901760, %v57_v5  ;;  %v10865_v27 = vsub.f32 %v58_v41, %v1551_v8  ;;  %v10867_v32 = vsub.f32 %v83_v46, %v1555_v10  ;;  %v10869_v34 = vpack.c.bf16 %v910_v15, %v906_v14  ;;  %v156_v46 = vld [vmem:[#allocation7 + $0x338] sm:$0xff] }
  0x58   :  { %9179 = vmatprep.subr.bf16.mxu1 %v9178_v62  ;;  %v10871_v53 = vsub.f32 %v55_v57, %v906_v14  ;;  %v107_v62 = vld [vmem:[#allocation7 + $0x1b0] sm:$0xff]  ;;  %v10874_v40 = vsub.f32 %v80_v58, %v910_v15  ;;  %v1557_v4 = vand.u32 4294901760, %v82_v11  ;;  %v912_v7 = vand.u32 4294901760, %v106_v19  ;;  %v181_v14 = vld [vmem:[#allocation7 + $0x400] sm:$0xff] }
  0x59   :  { %9229 = vmatpush1.bf16.msra.mxu0 %v9228_v35  ;;  %v916_v55 = vand.u32 4294901760, %v131_v21  ;;  %v1559_v39 = vand.u32 4294901760, %v108_v29  ;;  %v1563_v35 = vand.u32 4294901760, %v133_v3  ;;  %v914_v41 = vand.u32 4294901760, %v105_v1 }
  0x5a   :  { %9231 = vmatprep.subr.bf16.mxu0 %v10728_v16  ;;  %v918_v8 = vand.u32 4294901760, %v130_v56  ;;  %v10880_v57 = vpack.c.bf16 %v1557_v4, %v1553_v6  ;;  %v10882_v16 = vsub.f32 %v57_v5, %v1553_v6  ;;  %v10884_v58 = vsub.f32 %v82_v11, %v1557_v4  ;;  %v183_v4 = vld [vmem:[#allocation7 + $0x410] sm:$0xff] }
  0x5b   :  { %9181 = vmatpush1.bf16.msra.mxu1 %v9180_v13  ;;  %v1561_v10 = vand.u32 4294901760, %v107_v62  ;;  %v10888_v13 = vpack.c.bf16 %v916_v55, %v912_v7  ;;  %v10890_v15 = vsub.f32 %v106_v19, %v912_v7  ;;  %v10892_v17 = vsub.f32 %v131_v21, %v916_v55 }
  0x5c   :  { %9183 = vmatprep.subr.bf16.mxu1 %v9182_v26  ;;  %810 = vmatmul.mubr.f32.vlgmr.msra.gmra.mrb[0].mxu0 %v10793_v2  ;;  %v1565_v18 = vand.u32 4294901760, %v132_v54  ;;  %v158_v26 = vld [vmem:[#allocation7 + $0x348] sm:$0xff]  ;;  %v10896_v5 = vpack.c.bf16 %v1563_v35, %v1559_v39  ;;  %v10898_v6 = vsub.f32 %v108_v29, %v1559_v39  ;;  %v10900_v11 = vsub.f32 %v133_v3, %v1563_v35  ;;  %v180_v39 = vld [vmem:[#allocation7 + $0x3f8] sm:$0xff]  ;;  %v157_v29 = vld [vmem:[#allocation7 + $0x340] sm:$0xff] }
  0x5d   :  { %9233 = vmatpush1.bf16.msra.mxu0 %v10734_v22  ;;  %896 = vmatprep.mubr.f32.mxu0 %v13413_v0  ;;  %13750 = vst [vmem:[#allocation16_spill] sm:$0xff] %v10888_v13  ;;  %v920_v22 = vand.u32 4294901760, %v156_v46  ;;  %v155_v0 = vld [vmem:[#allocation7 + $0x330] sm:$0xff]  ;;  %v13752_v19 = vpack.c.bf16 %v10738_v24, %v10736_v23  ;;  %v13753_v55 = vmov 0.0   ;;  %v10906_v21 = vpack.c.bf16 %v918_v8, %v914_v41  ;;  %v182_v3 = vld [vmem:[#allocation7 + $0x408] sm:$0xff] }
  0x5e   :  { %495 = vmatmul.mubr.f32.vlgmr.msra.gmra.mrb[0].mxu1 %v10793_v2  ;;  %9235 = vmatprep.subr.bf16.mxu0 %v10740_v25  ;;  %13751 = vst [vmem:[#allocation17_spill] sm:$0xff] %v10896_v5  ;;  %v10908_v7 = vsub.f32 %v105_v1, %v914_v41  ;;  %v10910_v25 = vsub.f32 %v130_v56, %v918_v8  ;;  %v924_v20 = vand.u32 4294901760, %v181_v14  ;;  %v1571_v41 = vand.u32 4294901760, %v183_v4 }
  0x5f   :  { %9185 = vmatpush1.bf16.msra.mxu1 %v13752_v19  ;;  %597 = vmatprep.mubr.f32.mxu1 %v13753_v55  ;;  %13754 = vst [vmem:[#allocation18_spill] sm:$0xff] %v10906_v21  ;;  %v13755_v35 = vpack.c.bf16 %v10749_v36, %v10744_v28  ;;  %v10915_v52 = vpack.c.bf16 %v1565_v18, %v1561_v10  ;;  %v1567_v19 = vand.u32 4294901760, %v158_v26  ;;  %v206_v21 = vld [vmem:[#allocation7 + $0x4c8] sm:$0xff]  ;;  %v922_v8 = vand.u32 4294901760, %v155_v0 }
  0x60   :  { %v10917_v23 = vsub.f32 %v107_v62, %v1561_v10  ;;  %v10919_v24 = vsub.f32 %v132_v54, %v1565_v18  ;;  %v10922_v56 = vpack.c.bf16 %v924_v20, %v920_v22  ;;  %v10924_v1 = vsub.f32 %v156_v46, %v920_v22  ;;  %v231_v10 = vld [vmem:[#allocation7 + $0x590] sm:$0xff]  ;;  %v208_v54 = vld [vmem:[#allocation7 + $0x4d8] sm:$0xff]  ;;  %v233_v18 = vld [vmem:[#allocation7 + $0x5a0] sm:$0xff] }
  0x61   :  { %9187 = vmatprep.subr.bf16.mxu1 %v13755_v35  ;;  %13756 = vst [vmem:[#allocation19_spill] sm:$0xff] %v10915_v52  ;;  %9237 = vmatpush1.bf16.msra.mxu0 %v10752_v37  ;;  %v10927_v28 = vsub.f32 %v181_v14, %v924_v20  ;;  %v926_v36 = vand.u32 4294901760, %v180_v39  ;;  %v1569_v35 = vand.u32 4294901760, %v157_v29  ;;  %v1573_v62 = vand.u32 4294901760, %v182_v3  ;;  %v230_v20 = vld [vmem:[#allocation7 + $0x588] sm:$0xff]  ;;  %v207_v14 = vld [vmem:[#allocation7 + $0x4d0] sm:$0xff] }
  0x62   :  { %13757 = vst [vmem:[#allocation20_spill] sm:$0xff] %v10917_v23  ;;  %13758 = vst [vmem:[#allocation21_spill] sm:$0xff] %v10919_v24  ;;  %9239 = vmatprep.subr.bf16.mxu0 %v10758_v43  ;;  %v13762_v24 = vpack.c.bf16 %v10756_v42, %v10754_v38  ;;  %v10932_v37 = vpack.c.bf16 %v1571_v41, %v1567_v19  ;;  %v10934_v46 = vsub.f32 %v158_v26, %v1567_v19  ;;  %v205_v43 = vld [vmem:[#allocation7 + $0x4c0] sm:$0xff]  ;;  %v232_v26 = vld [vmem:[#allocation7 + $0x598] sm:$0xff] }
  0x63   :  { %13759 = vst [vmem:[#allocation22_spill] sm:$0xff] %v10922_v56  ;;  %13760 = vst [vmem:[#allocation23_spill] sm:$0xff] %v10924_v1  ;;  %v10936_v22 = vsub.f32 %v183_v4, %v1571_v41  ;;  %v928_v1 = vand.u32 4294901760, %v206_v21  ;;  %v10941_v56 = vpack.c.bf16 %v926_v36, %v922_v8  ;;  %v10943_v23 = vsub.f32 %v155_v0, %v922_v8 }
  0x64   :  { %13761 = vst [vmem:[#allocation24_spill] sm:$0xff] %v10927_v28  ;;  %9189 = vmatpush1.bf16.msra.mxu1 %v13762_v24  ;;  %13763 = vst [vmem:[#allocation25_spill] sm:$0xff] %v10932_v37  ;;  %v13764_v28 = vpack.c.bf16 %v10762_v45, %v10760_v44  ;;  %v10945_v38 = vsub.f32 %v180_v39, %v926_v36  ;;  %v10947_v42 = vpack.c.bf16 %v1573_v62, %v1569_v35 }
  0x65   :  { %13765 = vst [vmem:[#allocation26_spill] sm:$0xff] %v10941_v56  ;;  %9241 = vmatpush1.bf16.msra.mxu0 %v10764_v47  ;;  %v10950_v4 = vsub.f32 %v157_v29, %v1569_v35  ;;  %v10952_v24 = vsub.f32 %v182_v3, %v1573_v62  ;;  %v932_v19 = vand.u32 4294901760, %v231_v10  ;;  %v1575_v41 = vand.u32 4294901760, %v208_v54 }
  0x66   :  { %9191 = vmatprep.subr.bf16.mxu1 %v13764_v28  ;;  %13766 = vst [vmem:[#allocation27_spill] sm:$0xff] %v10947_v42  ;;  %9243 = vmatprep.subr.bf16.mxu0 %v10770_v50  ;;  %v1579_v44 = vand.u32 4294901760, %v233_v18  ;;  %v930_v45 = vand.u32 4294901760, %v205_v43  ;;  %v934_v28 = vand.u32 4294901760, %v230_v20  ;;  %v1577_v0 = vand.u32 4294901760, %v207_v14 }
  0x67   :  { %13767 = vst [vmem:[#allocation28_spill] sm:$0xff] %v10952_v24  ;;  %v13768_v39 = vpack.c.bf16 %v10768_v49, %v10766_v48  ;;  %v10958_v8 = vpack.c.bf16 %v932_v19, %v928_v1  ;;  %v10960_v36 = vsub.f32 %v206_v21, %v928_v1  ;;  %v10962_v47 = vsub.f32 %v231_v10, %v932_v19 }
  0x68   :  { %v1581_v29 = vand.u32 4294901760, %v232_v26  ;;  %v13770_v3 = vpack.c.bf16 %v10783_v59, %v10774_v51  ;;  %v10967_v50 = vpack.c.bf16 %v1579_v44, %v1575_v41  ;;  %v10969_v35 = vsub.f32 %v208_v54, %v1575_v41 }
  0x69   :  { %9193 = vmatpush1.bf16.msra.mxu1 %v13768_v39  ;;  %13769 = vst [vmem:[#allocation29_spill] sm:$0xff] %v10958_v8  ;;  %v10971_v62 = vsub.f32 %v233_v18, %v1579_v44  ;;  %v10973_v24 = vpack.c.bf16 %v934_v28, %v930_v45  ;;  %9245 = vmatpush1.bf16.msra.mxu0 %v10785_v60  ;;  %v13428_v51 = vand.u32 4294901760, %v10857_v12  ;;  %v13426_v59 = vand.u32 4294901760, %v10861_v30 }
  0x6a   :  { %9195 = vmatprep.subr.bf16.mxu1 %v13770_v3  ;;  %13771 = vst [vmem:[#allocation30_spill] sm:$0xff] %v10967_v50  ;;  %v10976_v48 = vsub.f32 %v205_v43, %v930_v45  ;;  %v10978_v49 = vsub.f32 %v230_v20, %v934_v28  ;;  %v10980_v21 = vpack.c.bf16 %v1581_v29, %v1577_v0  ;;  %v13434_v10 = vand.u32 4294901760, %v10865_v27 }
  0x6b   :  { %13772 = vst [vmem:[#allocation31_spill] sm:$0xff] %v10973_v24  ;;  %v10982_v1 = vsub.f32 %v207_v14, %v1577_v0  ;;  %9343 = vmatprep.subr.bf16.mxu0 %v10863_v33  ;;  %v13430_v54 = vand.u32 4294901760, %v10867_v32  ;;  %v13773_v60 = vpack.c.bf16 %v10790_v63, %v10787_v61  ;;  %v13427_v18 = vand.u32 4294901760, %v10871_v53 }
  0x6c   :  { %v13429_v43 = vand.u32 4294901760, %v10874_v40  ;;  %v13431_v20 = vand.u32 4294901760, %v10882_v16  ;;  %v13432_v14 = vand.u32 4294901760, %v10884_v58  ;;  %898 = vmatmul.mubr.f32.vlgmr.msra.gmra.mrb[0].mxu0 %v10793_v2  ;;  %v999_v19 = vsub.f32 %v10857_v12, %v13428_v51 }
  0x6d   :  { %9197 = vmatpush1.bf16.msra.mxu1 %v13773_v60  ;;  %v1011_v61 = vsub.f32 %v10861_v30, %v13426_v59  ;;  %v1646_v63 = vsub.f32 %v10865_v27, %v13434_v10  ;;  %v13433_v41 = vand.u32 4294901760, %v10890_v15  ;;  %9345 = vmatpush1.bf16.msra.mxu0 %v10880_v57  ;;  %v1658_v44 = vsub.f32 %v10867_v32, %v13430_v54  ;;  %v13774_v10 = vld [vmem:[#allocation18_spill] sm:$0xff] }
  0x6e   :  { %9247 = vmatprep.subr.bf16.mxu1 %v10859_v31  ;;  %1631 = vmatprep.mubr.f32.mxu0 %v13753_v55  ;;  %v1005_v45 = vsub.f32 %v10871_v53, %v13427_v18  ;;  %v1017_v28 = vsub.f32 %v10874_v40, %v13429_v43  ;;  %v13437_v0 = vand.u32 4294901760, %v10892_v17  ;;  %v1000_v39 = vand.u32 4294901760, %v999_v19 }
  0x6f   :  { %9347 = vmatprep.subr.bf16.mxu0 %v10896_v5  ;;  %v1012_v3 = vand.u32 4294901760, %v1011_v61  ;;  %v1647_v60 = vand.u32 4294901760, %v1646_v63  ;;  %v1652_v59 = vsub.f32 %v10882_v16, %v13431_v20  ;;  %v1659_v18 = vand.u32 4294901760, %v1658_v44 }
  0x70   :  { %600 = vmatmul.mubr.f32.vlgmr.msra.gmra.mrb[0].mxu1 %v10803_v9  ;;  %v1006_v51 = vand.u32 4294901760, %v1005_v45  ;;  %v1018_v43 = vand.u32 4294901760, %v1017_v28  ;;  %v1664_v54 = vsub.f32 %v10884_v58, %v13432_v14  ;;  %v11031_v19 = vsub.f32 %v232_v26, %v1581_v29 }
  0x71   :  { %9249 = vmatpush1.bf16.msra.mxu1 %v10869_v34  ;;  %984 = vmatprep.mubr.f32.mxu1 %v13753_v55  ;;  %v1653_v61 = vand.u32 4294901760, %v1652_v59  ;;  %v1023_v63 = vsub.f32 %v10890_v15, %v13433_v41  ;;  %v1035_v20 = vsub.f32 %v10892_v17, %v13437_v0  ;;  %v9262_v44 = vpack.c.bf16 %v1012_v3, %v1000_v39 }
  0x72   :  { %9251 = vmatprep.subr.bf16.mxu1 %v10888_v13  ;;  %9349 = vmatpush1.bf16.msra.mxu0 %v10915_v52  ;;  %v9358_v45 = vpack.c.bf16 %v1659_v18, %v1647_v60  ;;  %v1665_v28 = vand.u32 4294901760, %v1664_v54  ;;  %v13438_v14 = vand.u32 4294901760, %v10898_v6  ;;  %v11042_v26 = vpack.c.bf16 %v1018_v43, %v1006_v51  ;;  %v13775_v18 = vld [vmem:[#allocation20_spill] sm:$0xff]  ;;  %v13776_v60 = vld [vmem:[#allocation22_spill] sm:$0xff] }
  0x73   :  { %9351 = vmatprep.subr.bf16.mxu0 %v10932_v37  ;;  %v1024_v29 = vand.u32 4294901760, %v1023_v63  ;;  %v13441_v59 = vand.u32 4294901760, %v10900_v11  ;;  %v13442_v41 = vand.u32 4294901760, %v10908_v7  ;;  %v1036_v13 = vand.u32 4294901760, %v1035_v20  ;;  %v13777_v20 = vld [vmem:[#allocation21_spill] sm:$0xff] }
  0x74   :  { %v1670_v39 = vsub.f32 %v10898_v6, %v13438_v14  ;;  %v13447_v54 = vand.u32 4294901760, %v10910_v25  ;;  %v9360_v51 = vpack.c.bf16 %v1665_v28, %v1653_v61  ;;  %v13450_v0 = vand.u32 4294901760, %v13777_v20  ;;  %v13779_v28 = vld [vmem:[#allocation23_spill] sm:$0xff] }
  0x75   :  { %9253 = vmatpush1.bf16.msra.mxu1 %v13774_v10  ;;  %v1682_v43 = vsub.f32 %v10900_v11, %v13441_v59  ;;  %v1029_v63 = vsub.f32 %v10908_v7, %v13442_v41  ;;  %v13453_v37 = vand.u32 4294901760, %v13779_v28  ;;  %v13461_v5 = vand.u32 4294901760, %v10934_v46 }
  0x76   :  { %9255 = vmatprep.subr.bf16.mxu1 %v13776_v60  ;;  %9353 = vmatpush1.bf16.msra.mxu0 %v10947_v42  ;;  %v1671_v14 = vand.u32 4294901760, %v1670_v39  ;;  %v1041_v3 = vsub.f32 %v10910_v25, %v13447_v54  ;;  %v13778_v60 = vand.u32 4294901760, %v13775_v18  ;;  %v1688_v41 = vsub.f32 %v13777_v20, %v13450_v0  ;;  %v13780_v42 = vld [vmem:[#allocation24_spill] sm:$0xff] }
  0x77   :  { %9355 = vmatprep.subr.bf16.mxu0 %v10967_v50  ;;  %v1683_v59 = vand.u32 4294901760, %v1682_v43  ;;  %v1030_v10 = vand.u32 4294901760, %v1029_v63  ;;  %v13458_v39 = vand.u32 4294901760, %v13780_v42  ;;  %v9266_v43 = vpack.c.bf16 %v1036_v13, %v1024_v29 }
  0x78   :  { %v1676_v61 = vsub.f32 %v13775_v18, %v13778_v60  ;;  %v1042_v52 = vand.u32 4294901760, %v1041_v3  ;;  %v1047_v60 = vsub.f32 %v13779_v28, %v13453_v37  ;;  %v1689_v63 = vand.u32 4294901760, %v1688_v41 }
  0x79   :  { %9257 = vmatpush1.bf16.msra.mxu1 %v10941_v56  ;;  %v1059_v0 = vsub.f32 %v13780_v42, %v13458_v39  ;;  %v13459_v50 = vand.u32 4294901760, %v10936_v22  ;;  %v9362_v3 = vpack.c.bf16 %v1683_v59, %v1671_v14  ;;  %v1694_v37 = vsub.f32 %v10934_v46, %v13461_v5  ;;  %v13781_v14 = vld [vmem:[#allocation28_spill] sm:$0xff] }
  0x7a   :  { %v1677_v54 = vand.u32 4294901760, %v1676_v61  ;;  %9259 = vmatprep.subr.bf16.mxu1 %v10958_v8  ;;  %9357 = vmatpush1.bf16.msra.mxu0 %v10980_v21  ;;  %v9268_v61 = vpack.c.bf16 %v1042_v52, %v1030_v10  ;;  %v13460_v56 = vand.u32 4294901760, %v10943_v23  ;;  %v1048_v13 = vand.u32 4294901760, %v1047_v60 }
  0x7b   :  { %9359 = vmatprep.subr.bf16.mxu0 %v9358_v45  ;;  %v1706_v41 = vsub.f32 %v10936_v22, %v13459_v50  ;;  %v13463_v29 = vand.u32 4294901760, %v10945_v38  ;;  %v1695_v39 = vand.u32 4294901760, %v1694_v37  ;;  %v13462_v10 = vand.u32 4294901760, %v10950_v4  ;;  %v13782_v45 = vld [vmem:[#allocation15_spill] sm:$0xff] }
  0x7c   :  { %v9364_v8 = vpack.c.bf16 %v1689_v63, %v1677_v54  ;;  %v1053_v52 = vsub.f32 %v10943_v23, %v13460_v56  ;;  %v13464_v59 = vand.u32 4294901760, %v13781_v14  ;;  %v1060_v54 = vand.u32 4294901760, %v1059_v0 }
  0x7d   :  { %9261 = vmatpush1.bf16.msra.mxu1 %v10973_v24  ;;  %1637 = vmatmul.mubr.f32.vlgmr.msra.gmra.mrb[2].mxu0 %v13782_v45  ;;  %v1707_v60 = vand.u32 4294901760, %v1706_v41  ;;  %v1065_v63 = vsub.f32 %v10945_v38, %v13463_v29  ;;  %v13468_v50 = vand.u32 4294901760, %v10960_v36  ;;  %v1700_v56 = vsub.f32 %v10950_v4, %v13462_v10 }
  0x7e   :  { %9263 = vmatprep.subr.bf16.mxu1 %v9262_v44  ;;  %9361 = vmatpush1.bf16.msra.mxu0 %v9360_v51  ;;  %v1054_v37 = vand.u32 4294901760, %v1053_v52  ;;  %v1712_v44 = vsub.f32 %v13781_v14, %v13464_v59  ;;  %v13467_v5 = vand.u32 4294901760, %v10962_v47  ;;  %v1717_v52 = vand.u32 4294901760, %v10969_v35 }
  0x7f   :  { %1787 = vmatprep.mubr.f32.mxu0 %v13753_v55  ;;  %9363 = vmatprep.subr.bf16.mxu0 %v9362_v3  ;;  %v9366_v0 = vpack.c.bf16 %v1707_v60, %v1695_v39  ;;  %v1066_v41 = vand.u32 4294901760, %v1065_v63  ;;  %v1071_v51 = vsub.f32 %v10960_v36, %v13468_v50  ;;  %v1701_v10 = vand.u32 4294901760, %v1700_v56 }
  0x80   :  { %990 = vmatmul.mubr.f32.vlgmr.msra.gmra.mrb[2].mxu1 %v13782_v45  ;;  %v1713_v29 = vand.u32 4294901760, %v1712_v44  ;;  %v1083_v59 = vsub.f32 %v10962_v47, %v13467_v5  ;;  %v1729_v24 = vand.u32 4294901760, %v10971_v62  ;;  %v9270_v39 = vpack.c.bf16 %v1060_v54, %v1048_v13  ;;  %v212_v45 = vld [vmem:[#allocation7 + $0x4f8] sm:$0xff] }
  0x81   :  { %9265 = vmatpush1.bf16.msra.mxu1 %v11042_v26  ;;  %1140 = vmatprep.mubr.f32.mxu1 %v13753_v55  ;;  %v1072_v3 = vand.u32 4294901760, %v1071_v51  ;;  %v1718_v60 = vsub.f32 %v10969_v35, %v1717_v52  ;;  %v13469_v63 = vand.u32 4294901760, %v10976_v48  ;;  %v1088_v5 = vand.u32 4294901760, %v10978_v49 }
  0x82   :  { %9267 = vmatprep.subr.bf16.mxu1 %v9266_v43  ;;  %9365 = vmatpush1.bf16.msra.mxu0 %v9364_v8  ;;  %v9368_v56 = vpack.c.bf16 %v1713_v29, %v1701_v10  ;;  %v1084_v26 = vand.u32 4294901760, %v1083_v59  ;;  %v1730_v44 = vsub.f32 %v10971_v62, %v1729_v24  ;;  %v13471_v13 = vand.u32 4294901760, %v10982_v1 }
  0x83   :  { %9367 = vmatprep.subr.bf16.mxu0 %v9366_v0  ;;  %v1719_v50 = vand.u32 4294901760, %v1718_v60  ;;  %v1077_v43 = vsub.f32 %v10976_v48, %v13469_v63  ;;  %v13470_v54 = vand.u32 4294901760, %v11031_v19  ;;  %v9272_v8 = vpack.c.bf16 %v1066_v41, %v1054_v37 }
  0x84   :  { %v1731_v29 = vand.u32 4294901760, %v1730_v44  ;;  %v1089_v10 = vsub.f32 %v10978_v49, %v1088_v5  ;;  %v9274_v59 = vpack.c.bf16 %v1084_v26, %v1072_v3  ;;  %v1724_v0 = vsub.f32 %v10982_v1, %v13471_v13  ;;  %v13799_v13 = vld [vmem:[#allocation31_spill] sm:$0xff] }
  0x85   :  { %9269 = vmatpush1.bf16.msra.mxu1 %v9268_v61  ;;  %v1078_v51 = vand.u32 4294901760, %v1077_v43  ;;  %v1736_v60 = vsub.f32 %v11031_v19, %v13470_v54  ;;  %v9278_v26 = vpack.c.bf16 %v10861_v30, %v10857_v12  ;;  %v9376_v43 = vpack.c.bf16 %v10884_v58, %v10882_v16 }
  0x86   :  { %9271 = vmatprep.subr.bf16.mxu1 %v9270_v39  ;;  %9369 = vmatpush1.bf16.msra.mxu0 %v9368_v56  ;;  %v9370_v63 = vpack.c.bf16 %v1731_v29, %v1719_v50  ;;  %v1090_v61 = vand.u32 4294901760, %v1089_v10  ;;  %v1725_v37 = vand.u32 4294901760, %v1724_v0  ;;  %v9374_v39 = vpack.c.bf16 %v10867_v32, %v10865_v27 }
  0x87   :  { %v1737_v41 = vand.u32 4294901760, %v1736_v60  ;;  %v9280_v50 = vpack.c.bf16 %v10874_v40, %v10871_v53  ;;  %v9282_v56 = vpack.c.bf16 %v10892_v17, %v10890_v15  ;;  %v9284_v29 = vpack.c.bf16 %v10910_v25, %v10908_v7 }
  0x88   :  { %9371 = vmatprep.subr.bf16.mxu0 %v9370_v63  ;;  %v9276_v44 = vpack.c.bf16 %v1090_v61, %v1078_v51  ;;  %v9378_v63 = vpack.c.bf16 %v10900_v11, %v10898_v6  ;;  %v9382_v10 = vpack.c.bf16 %v10936_v22, %v10934_v46  ;;  %v9384_v51 = vpack.c.bf16 %v13781_v14, %v10950_v4 }
  0x89   :  { %9273 = vmatpush1.bf16.msra.mxu1 %v9272_v8  ;;  %v9372_v3 = vpack.c.bf16 %v1737_v41, %v1725_v37  ;;  %v9380_v8 = vpack.c.bf16 %v13777_v20, %v13775_v18  ;;  %v9288_v0 = vpack.c.bf16 %v10945_v38, %v10943_v23  ;;  %v9386_v60 = vpack.c.bf16 %v10971_v62, %v10969_v35  ;;  %v112_v62 = vld [vmem:[#allocation7 + $0x1d8] sm:$0xff] }
  0x8a   :  { %9275 = vmatprep.subr.bf16.mxu1 %v9274_v59  ;;  %v9286_v59 = vpack.c.bf16 %v13780_v42, %v13779_v28  ;;  %v9290_v61 = vpack.c.bf16 %v10962_v47, %v10960_v36  ;;  %v9388_v37 = vpack.c.bf16 %v11031_v19, %v10982_v1  ;;  %v9292_v41 = vpack.c.bf16 %v10978_v49, %v10976_v48 }
  0x8b   :  { %9373 = vmatpush1.bf16.msra.mxu0 %v9372_v3  ;;  %v13785_v3 = vld [vmem:[#allocation19_spill] sm:$0xff] }
  0x8c   :  { %9375 = vmatprep.subr.bf16.mxu0 %v9374_v39  ;;  %v13784_v39 = vld [vmem:[#allocation16_spill] sm:$0xff] }
  0x8d   :  { %9277 = vmatpush1.bf16.msra.mxu1 %v9276_v44  ;;  %v13783_v44 = vld [vmem:[#allocation17_spill] sm:$0xff] }
  0x8e   :  { %9279 = vmatprep.subr.bf16.mxu1 %v9278_v26  ;;  %1789 = vmatmul.mubr.f32.vlgmr.msra.gmra.mrb[2].mxu0 %v10793_v2  ;;  %v13786_v26 = vld [vmem:[#allocation18_spill] sm:$0xff] }
  0x8f   :  { %9377 = vmatpush1.bf16.msra.mxu0 %v9376_v43  ;;  %1891 = vmatprep.mubr.f32.mxu0 %v13753_v55  ;;  %v13787_v43 = vld [vmem:[#allocation25_spill] sm:$0xff] }
  0x90   :  { %1142 = vmatmul.mubr.f32.vlgmr.msra.gmra.mrb[2].mxu1 %v10793_v2  ;;  %9379 = vmatprep.subr.bf16.mxu0 %v9378_v63  ;;  %v13789_v63 = vld [vmem:[#allocation27_spill] sm:$0xff] }
  0x91   :  { %9281 = vmatpush1.bf16.msra.mxu1 %v9280_v50  ;;  %1244 = vmatprep.mubr.f32.mxu1 %v13753_v55  ;;  %v13788_v50 = vld [vmem:[#allocation22_spill] sm:$0xff] }
  0x92   :  { %9283 = vmatprep.subr.bf16.mxu1 %v9282_v56  ;;  %v13790_v56 = vld [vmem:[#allocation26_spill] sm:$0xff] }
  0x93   :  { %9381 = vmatpush1.bf16.msra.mxu0 %v9380_v8  ;;  %v13791_v8 = vld [vmem:[#allocation30_spill] sm:$0xff] }
  0x94   :  { %9383 = vmatprep.subr.bf16.mxu0 %v9382_v10  ;;  %v13793_v10 = vand.u32 4294901760, %v10867_v32  ;;  %v13801_v32 = vand.u32 4294901760, %v10874_v40  ;;  %v13808_v40 = vand.u32 4294901760, %v13777_v20  ;;  %v13814_v20 = vand.u32 4294901760, %v13780_v42  ;;  %v61_v42 = vld [vmem:[#allocation7 + $0x40] sm:$0xff] }
  0x95   :  { %9285 = vmatpush1.bf16.msra.mxu1 %v9284_v29  ;;  %v13792_v29 = vand.u32 4294901760, %v10865_v27  ;;  %v13800_v27 = vand.u32 4294901760, %v10871_v53  ;;  %v13807_v53 = vand.u32 4294901760, %v13775_v18  ;;  %v13813_v18 = vand.u32 4294901760, %v13779_v28  ;;  %v86_v28 = vld [vmem:[#allocation7 + $0x108] sm:$0xff] }
  0x96   :  { %9287 = vmatprep.subr.bf16.mxu1 %v9286_v59 }
  0x97   :  { %9385 = vmatpush1.bf16.msra.mxu0 %v9384_v51  ;;  %v9406_v59 = vpack.c.bf16 %v13793_v10, %v13792_v29  ;;  %v13794_v51 = vld [vmem:[#allocation29_spill] sm:$0xff]  ;;  %v9312_v29 = vpack.c.bf16 %v13801_v32, %v13800_v27  ;;  %v62_v32 = vld [vmem:[#allocation7 + $0x48] sm:$0xff] }
  0x98   :  { %9387 = vmatprep.subr.bf16.mxu0 %v9386_v60  ;;  %v13796_v60 = vand.u32 4294901760, %v10861_v30  ;;  %v13803_v30 = vand.u32 4294901760, %v10900_v11  ;;  %v13809_v11 = vand.u32 4294901760, %v10908_v7 }
  0x99   :  { %9289 = vmatpush1.bf16.msra.mxu1 %v9288_v0  ;;  %v13795_v0 = vand.u32 4294901760, %v10857_v12  ;;  %v13802_v12 = vand.u32 4294901760, %v10898_v6  ;;  %v9412_v6 = vpack.c.bf16 %v13808_v40, %v13807_v53  ;;  %v13819_v53 = vand.u32 4294901760, %v10960_v36 }
  0x9a   :  { %9291 = vmatprep.subr.bf16.mxu1 %v9290_v61  ;;  %v13820_v40 = vand.u32 4294901760, %v10962_v47  ;;  %v13822_v36 = vand.u32 4294901760, %v10982_v1  ;;  %v13823_v47 = vand.u32 4294901760, %v11031_v19 }
  0x9b   :  { %9389 = vmatpush1.bf16.msra.mxu0 %v9388_v37  ;;  %v9310_v61 = vpack.c.bf16 %v13796_v60, %v13795_v0  ;;  %v13797_v37 = vand.u32 4294901760, %v10882_v16  ;;  %v9410_v10 = vpack.c.bf16 %v13803_v30, %v13802_v12  ;;  %v13804_v0 = vand.u32 4294901760, %v10890_v15  ;;  %v13806_v60 = vld [vmem:[#allocation14_spill] sm:$0xff]  ;;  %v87_v12 = vld [vmem:[#allocation7 + $0x110] sm:$0xff] }
  0x9c   :  { %9391 = vmatprep.subr.bf16.mxu0 %v10863_v33  ;;  %v13805_v16 = vand.u32 4294901760, %v10892_v17  ;;  %v13810_v15 = vand.u32 4294901760, %v10910_v25  ;;  %v59_v30 = vld [vmem:[#allocation7 + $0x30] sm:$0xff]  ;;  %v84_v25 = vld [vmem:[#allocation7 + $0xf8] sm:$0xff] }
  0x9d   :  { %9293 = vmatpush1.bf16.msra.mxu1 %v9292_v41  ;;  %v13798_v41 = vand.u32 4294901760, %v10884_v58  ;;  %v2200_v35 = vand.u32 4294901760, %v59_v30 }
  0x9e   :  { %9295 = vmatprep.subr.bf16.mxu1 %v10859_v31  ;;  %1894 = vmatmul.mubr.f32.vlgmr.msra.gmra.mrb[2].mxu0 %v10803_v9  ;;  %v9314_v58 = vpack.c.bf16 %v13805_v16, %v13804_v0  ;;  %v9316_v17 = vpack.c.bf16 %v13810_v15, %v13809_v11  ;;  %v13817_v0 = vand.u32 4294901760, %v10950_v4  ;;  %v13818_v16 = vand.u32 4294901760, %v13781_v14  ;;  %v110_v15 = vld [vmem:[#allocation7 + $0x1c8] sm:$0xff]  ;;  %v135_v14 = vld [vmem:[#allocation7 + $0x290] sm:$0xff] }
  0x9f   :  { %9393 = vmatpush1.bf16.msra.mxu0 %v10880_v57  ;;  %1980 = vmatprep.mubr.f32.mxu0 %v13753_v55  ;;  %v9408_v54 = vpack.c.bf16 %v13798_v41, %v13797_v37  ;;  %v60_v37 = vld [vmem:[#allocation7 + $0x38] sm:$0xff]  ;;  %v13812_v41 = vand.u32 4294901760, %v10936_v22  ;;  %v9322_v11 = vpack.c.bf16 %v13820_v40, %v13819_v53  ;;  %v2849_v4 = vand.u32 4294901760, %v87_v12 }
  0xa0   :  { %1247 = vmatmul.mubr.f32.vlgmr.msra.gmra.mrb[2].mxu1 %v10803_v9  ;;  %9395 = vmatprep.subr.bf16.mxu0 %v13783_v44  ;;  %v2206_v1 = vand.u32 4294901760, %v110_v15  ;;  %v2210_v19 = vand.u32 4294901760, %v135_v14  ;;  %v2853_v53 = vand.u32 4294901760, %v112_v62  ;;  %v11282_v40 = vsub.f32 %v59_v30, %v2200_v35  ;;  %v162_v30 = vld [vmem:[#allocation7 + $0x368] sm:$0xff]  ;;  %v159_v9 = vld [vmem:[#allocation7 + $0x350] sm:$0xff] }
  0xa1   :  { %9297 = vmatpush1.bf16.msra.mxu1 %v10869_v34  ;;  %1333 = vmatprep.mubr.f32.mxu1 %v13753_v55 }
  0xa2   :  { %9299 = vmatprep.subr.bf16.mxu1 %v13784_v39 }
  0xa3   :  { %9397 = vmatpush1.bf16.msra.mxu0 %v13785_v3 }
  0xa4   :  { %9399 = vmatprep.subr.bf16.mxu0 %v13787_v43 }
  0xa5   :  { %9301 = vmatpush1.bf16.msra.mxu1 %v13786_v26 }
  0xa6   :  { %9303 = vmatprep.subr.bf16.mxu1 %v13788_v50 }
  0xa7   :  { %9401 = vmatpush1.bf16.msra.mxu0 %v13789_v63 }
  0xa8   :  { %9403 = vmatprep.subr.bf16.mxu0 %v13791_v8 }
  0xa9   :  { %9305 = vmatpush1.bf16.msra.mxu1 %v13790_v56 }
  0xaa   :  { %9307 = vmatprep.subr.bf16.mxu1 %v13794_v51 }
  0xab   :  { %9405 = vmatpush1.bf16.msra.mxu0 %v10980_v21 }
  0xac   :  { %9407 = vmatprep.subr.bf16.mxu0 %v9406_v59  ;;  %v85_v59 = vld [vmem:[#allocation7 + $0x100] sm:$0xff] }
  0xad   :  { %9309 = vmatpush1.bf16.msra.mxu1 %v13799_v13  ;;  %v2202_v7 = vand.u32 4294901760, %v85_v59 }
  0xae   :  { %9311 = vmatprep.subr.bf16.mxu1 %v9310_v61  ;;  %1984 = vmatmul.mubr.f32.vlgmr.msra.gmra.mrb[2].mxu0 %v13806_v60  ;;  %v13811_v61 = vand.u32 4294901760, %v10934_v46  ;;  %v13816_v46 = vand.u32 4294901760, %v10945_v38  ;;  %v2845_v38 = vand.u32 4294901760, %v62_v32 }
  0xaf   :  { %9409 = vmatpush1.bf16.msra.mxu0 %v9408_v54  ;;  %v9318_v54 = vpack.c.bf16 %v13814_v20, %v13813_v18  ;;  %2102 = vmatprep.mubr.f32.mxu0 %v13753_v55  ;;  %v2204_v18 = vand.u32 4294901760, %v84_v25  ;;  %v11272_v49 = vsub.f32 %v85_v59, %v2202_v7 }
  0xb0   :  { %1337 = vmatmul.mubr.f32.vlgmr.msra.gmra.mrb[2].mxu1 %v13806_v60  ;;  %9411 = vmatprep.subr.bf16.mxu0 %v9410_v10  ;;  %v9414_v27 = vpack.c.bf16 %v13812_v41, %v13811_v61  ;;  %v13815_v10 = vand.u32 4294901760, %v10943_v23  ;;  %v9418_v23 = vpack.c.bf16 %v1729_v24, %v1717_v52  ;;  %v13821_v61 = vand.u32 4294901760, %v10976_v48  ;;  %v137_v24 = vld [vmem:[#allocation7 + $0x2a0] sm:$0xff] }
  0xb1   :  { %9313 = vmatpush1.bf16.msra.mxu1 %v9312_v29  ;;  %1455 = vmatprep.mubr.f32.mxu1 %v13753_v55  ;;  %v2198_v29 = vand.u32 4294901760, %v60_v37  ;;  %v9420_v41 = vpack.c.bf16 %v13823_v47, %v13822_v36  ;;  %v109_v48 = vld [vmem:[#allocation7 + $0x1c0] sm:$0xff]  ;;  %v160_v36 = vld [vmem:[#allocation7 + $0x358] sm:$0xff] }
  0xb2   :  { %9315 = vmatprep.subr.bf16.mxu1 %v9314_v58  ;;  %v9320_v22 = vpack.c.bf16 %v13816_v46, %v13815_v10  ;;  %v9416_v58 = vpack.c.bf16 %v13818_v16, %v13817_v0  ;;  %v134_v10 = vld [vmem:[#allocation7 + $0x288] sm:$0xff]  ;;  %v111_v46 = vld [vmem:[#allocation7 + $0x1d0] sm:$0xff]  ;;  %v136_v0 = vld [vmem:[#allocation7 + $0x298] sm:$0xff]  ;;  %v11276_v16 = vpack.c.bf16 %v2849_v4, %v2845_v38  ;;  %v2208_v59 = vand.u32 4294901760, %v109_v48 }
  0xb3   :  { %9413 = vmatpush1.bf16.msra.mxu0 %v9412_v6  ;;  %v9324_v6 = vpack.c.bf16 %v1088_v5, %v13821_v61  ;;  %v11268_v52 = vpack.c.bf16 %v2202_v7, %v2198_v29  ;;  %v11270_v20 = vsub.f32 %v60_v37, %v2198_v29  ;;  %v11274_v5 = vsub.f32 %v62_v32, %v2845_v38 }
  0xb4   :  { %9415 = vmatprep.subr.bf16.mxu0 %v9414_v27  ;;  %v2851_v27 = vand.u32 4294901760, %v86_v28  ;;  %13825 = vst [vmem:[#allocation21_spill] sm:$0xff] %v11276_v16  ;;  %v2857_v37 = vand.u32 4294901760, %v137_v24  ;;  %v11280_v29 = vpack.c.bf16 %v2204_v18, %v2200_v35  ;;  %v2212_v32 = vand.u32 4294901760, %v134_v10  ;;  %v187_v35 = vld [vmem:[#allocation7 + $0x430] sm:$0xff] }
  0xb5   :  { %9317 = vmatpush1.bf16.msra.mxu1 %v9316_v17  ;;  %13824 = vst [vmem:[#allocation20_spill] sm:$0xff] %v11268_v52  ;;  %v2847_v17 = vand.u32 4294901760, %v61_v42  ;;  %v11284_v7 = vsub.f32 %v84_v25, %v2204_v18  ;;  %v2859_v38 = vand.u32 4294901760, %v136_v0  ;;  %v11300_v18 = vsub.f32 %v112_v62, %v2853_v53 }
  0xb6   :  { %9319 = vmatprep.subr.bf16.mxu1 %v9318_v54  ;;  %v11278_v54 = vsub.f32 %v87_v12, %v2849_v4  ;;  %13826 = vst [vmem:[#allocation23_spill] sm:$0xff] %v11280_v29  ;;  %v185_v12 = vld [vmem:[#allocation7 + $0x420] sm:$0xff]  ;;  %v11290_v47 = vsub.f32 %v86_v28, %v2851_v27  ;;  %v11298_v25 = vpack.c.bf16 %v2857_v37, %v2853_v53  ;;  %v2861_v53 = vand.u32 4294901760, %v162_v30 }
  0xb7   :  { %9417 = vmatpush1.bf16.msra.mxu0 %v9416_v58  ;;  %v11286_v61 = vpack.c.bf16 %v2851_v27, %v2847_v17  ;;  %v2855_v58 = vand.u32 4294901760, %v111_v46  ;;  %v11288_v4 = vsub.f32 %v61_v42, %v2847_v17  ;;  %v11302_v60 = vsub.f32 %v137_v24, %v2857_v37  ;;  %v184_v42 = vld [vmem:[#allocation7 + $0x418] sm:$0xff]  ;;  %v161_v17 = vld [vmem:[#allocation7 + $0x360] sm:$0xff] }
  0xb8   :  { %9419 = vmatprep.subr.bf16.mxu0 %v9418_v23  ;;  %v11294_v23 = vsub.f32 %v110_v15, %v2206_v1  ;;  %13829 = vst [vmem:[#allocation17_spill] sm:$0xff] %v11298_v25  ;;  %v11305_v28 = vpack.c.bf16 %v2212_v32, %v2208_v59  ;;  %v11307_v15 = vsub.f32 %v109_v48, %v2208_v59  ;;  %v2214_v27 = vand.u32 4294901760, %v160_v36 }
  0xb9   :  { %9321 = vmatpush1.bf16.msra.mxu1 %v9320_v22  ;;  %13827 = vst [vmem:[#allocation24_spill] sm:$0xff] %v11286_v61  ;;  %v11292_v22 = vpack.c.bf16 %v2210_v19, %v2206_v1  ;;  %v210_v1 = vld [vmem:[#allocation7 + $0x4e8] sm:$0xff]  ;;  %v11310_v62 = vsub.f32 %v134_v10, %v2212_v32  ;;  %v11312_v24 = vpack.c.bf16 %v2859_v38, %v2855_v58  ;;  %v2865_v37 = vand.u32 4294901760, %v187_v35 }
  0xba   :  { %9323 = vmatprep.subr.bf16.mxu1 %v9322_v11  ;;  %v11296_v11 = vsub.f32 %v135_v14, %v2210_v19  ;;  %13830 = vst [vmem:[#allocation16_spill] sm:$0xff] %v11305_v28  ;;  %13831 = vst [vmem:[#allocation19_spill] sm:$0xff] %v11307_v15  ;;  %v186_v14 = vld [vmem:[#allocation7 + $0x428] sm:$0xff]  ;;  %v235_v19 = vld [vmem:[#allocation7 + $0x5b0] sm:$0xff]  ;;  %v2216_v48 = vand.u32 4294901760, %v159_v9  ;;  %v2220_v59 = vand.u32 4294901760, %v184_v42 }
  0xbb   :  { %13828 = vst [vmem:[#allocation28_spill] sm:$0xff] %v11292_v22  ;;  %9421 = vmatpush1.bf16.msra.mxu0 %v9420_v41  ;;  %v2218_v41 = vand.u32 4294901760, %v185_v12  ;;  %13832 = vst [vmem:[#allocation18_spill] sm:$0xff] %v11312_v24  ;;  %v237_v28 = vld [vmem:[#allocation7 + $0x5c0] sm:$0xff]  ;;  %v2867_v10 = vand.u32 4294901760, %v186_v14  ;;  %v2222_v32 = vand.u32 4294901760, %v210_v1 }
  0xbc   :  { %9423 = vmatprep.subr.bf16.mxu0 %v10863_v33  ;;  %v11315_v33 = vsub.f32 %v111_v46, %v2855_v58  ;;  %v2226_v24 = vand.u32 4294901760, %v235_v19  ;;  %v2869_v22 = vand.u32 4294901760, %v212_v45 }
  0xbd   :  { %9325 = vmatpush1.bf16.msra.mxu1 %v9324_v6  ;;  %v11317_v6 = vsub.f32 %v136_v0, %v2859_v38  ;;  %v11323_v46 = vpack.c.bf16 %v2218_v41, %v2214_v27  ;;  %v11325_v0 = vsub.f32 %v160_v36, %v2214_v27  ;;  %v11327_v58 = vsub.f32 %v185_v12, %v2218_v41  ;;  %v236_v41 = vld [vmem:[#allocation7 + $0x5b8] sm:$0xff] }
  0xbe   :  { %9327 = vmatprep.subr.bf16.mxu1 %v10859_v31  ;;  %2104 = vmatmul.mubr.f32.vlgmr.msra.gmra.mrb[2].mxu0 %v10793_v2  ;;  %13833 = vst [vmem:[#allocation25_spill] sm:$0xff] %v11315_v33  ;;  %v2863_v31 = vand.u32 4294901760, %v161_v17  ;;  %v11331_v38 = vpack.c.bf16 %v2865_v37, %v2861_v53  ;;  %v209_v33 = vld [vmem:[#allocation7 + $0x4e0] sm:$0xff]  ;;  %v11338_v36 = vpack.c.bf16 %v2220_v59, %v2216_v48 }
  0xbf   :  { %13834 = vst [vmem:[#allocation22_spill] sm:$0xff] %v11317_v6  ;;  %9425 = vmatpush1.bf16.msra.mxu0 %v10880_v57  ;;  %13835 = vst [vmem:[#allocation27_spill] sm:$0xff] %v11323_v46  ;;  %v11333_v57 = vsub.f32 %v162_v30, %v2861_v53  ;;  %v2873_v6 = vand.u32 4294901760, %v237_v28  ;;  %2190 = vmatprep.mubr.f32.mxu0 %v13753_v55  ;;  %v11340_v12 = vsub.f32 %v159_v9, %v2216_v48 }
  0xc0   :  { %1457 = vmatmul.mubr.f32.vlgmr.msra.gmra.mrb[2].mxu1 %v10793_v2  ;;  %9427 = vmatprep.subr.bf16.mxu0 %v13783_v44  ;;  %13836 = vst [vmem:[#allocation26_spill] sm:$0xff] %v11327_v58  ;;  %13837 = vst [vmem:[#allocation30_spill] sm:$0xff] %v11331_v38  ;;  %v11336_v44 = vsub.f32 %v187_v35, %v2865_v37  ;;  %v11342_v27 = vsub.f32 %v184_v42, %v2220_v59  ;;  %v2224_v42 = vand.u32 4294901760, %v209_v33 }
  0xc1   :  { %9329 = vmatpush1.bf16.msra.mxu1 %v10869_v34  ;;  %1543 = vmatprep.mubr.f32.mxu1 %v13753_v55  ;;  %v234_v34 = vld [vmem:[#allocation7 + $0x5a8] sm:$0xff]  ;;  %13838 = vst [vmem:[#allocation29_spill] sm:$0xff] %v11338_v36  ;;  %v11345_v30 = vpack.c.bf16 %v2867_v10, %v2863_v31  ;;  %v11347_v53 = vsub.f32 %v161_v17, %v2863_v31  ;;  %v2875_v48 = vand.u32 4294901760, %v236_v41  ;;  %v13483_v59 = vand.u32 4294901760, %v11272_v49 }
  0xc2   :  { %9331 = vmatprep.subr.bf16.mxu1 %v13784_v39  ;;  %v211_v39 = vld [vmem:[#allocation7 + $0x4f0] sm:$0xff]  ;;  %v11349_v58 = vsub.f32 %v186_v14, %v2867_v10  ;;  %v11351_v46 = vpack.c.bf16 %v2226_v24, %v2222_v32  ;;  %v11355_v9 = vsub.f32 %v210_v1, %v2222_v32  ;;  %v11357_v35 = vsub.f32 %v235_v19, %v2226_v24 }
  0xc3   :  { %9429 = vmatpush1.bf16.msra.mxu0 %v13785_v3  ;;  %13839 = vst [vmem:[#allocation31_spill] sm:$0xff] %v11345_v30  ;;  %v2228_v37 = vand.u32 4294901760, %v234_v34  ;;  %v11360_v3 = vpack.c.bf16 %v2873_v6, %v2869_v22  ;;  %v2871_v17 = vand.u32 4294901760, %v211_v39  ;;  %v13484_v14 = vand.u32 4294901760, %v11270_v20 }
  0xc4   :  { %13840 = vst [vmem:[#allocation32_spill] sm:$0xff] %v11351_v46  ;;  %9431 = vmatprep.subr.bf16.mxu0 %v13787_v43  ;;  %v13485_v43 = vand.u32 4294901760, %v11278_v54  ;;  %v11368_v19 = vsub.f32 %v212_v45, %v2869_v22  ;;  %v11370_v24 = vsub.f32 %v237_v28, %v2873_v6  ;;  %v13486_v31 = vand.u32 4294901760, %v11284_v7 }
  0xc5   :  { %9333 = vmatpush1.bf16.msra.mxu1 %v13786_v26  ;;  %13841 = vst [vmem:[#allocation33_spill] sm:$0xff] %v11360_v3  ;;  %v13488_v26 = vand.u32 4294901760, %v11274_v5  ;;  %v11377_v10 = vpack.c.bf16 %v2228_v37, %v2224_v42  ;;  %v11379_v32 = vsub.f32 %v234_v34, %v2228_v37  ;;  %v13487_v1 = vand.u32 4294901760, %v11288_v4 }
  0xc6   :  { %9335 = vmatprep.subr.bf16.mxu1 %v13788_v50  ;;  %13842 = vst [vmem:[#allocation34_spill] sm:$0xff] %v11370_v24  ;;  %v11372_v50 = vsub.f32 %v209_v33, %v2224_v42  ;;  %v11384_v45 = vpack.c.bf16 %v2875_v48, %v2871_v17  ;;  %v2293_v22 = vsub.f32 %v11270_v20, %v13484_v14  ;;  %v13845_v6 = vand.u32 4294901760, %v11282_v40 }
  0xc7   :  { %9433 = vmatpush1.bf16.msra.mxu0 %v13789_v63  ;;  %13843 = vst [vmem:[#allocation35_spill] sm:$0xff] %v11377_v10  ;;  %v13491_v63 = vand.u32 4294901760, %v11290_v47  ;;  %v2305_v28 = vsub.f32 %v11272_v49, %v13483_v59  ;;  %v2940_v33 = vsub.f32 %v11274_v5, %v13488_v26  ;;  %v11404_v42 = vsub.f32 %v211_v39, %v2871_v17 }
  0xc8   :  { %9435 = vmatprep.subr.bf16.mxu0 %v13791_v8  ;;  %13844 = vst [vmem:[#allocation36_spill] sm:$0xff] %v11384_v45  ;;  %v13490_v8 = vand.u32 4294901760, %v11296_v11  ;;  %v2299_v34 = vsub.f32 %v11282_v40, %v13845_v6  ;;  %v2311_v37 = vsub.f32 %v11284_v7, %v13486_v31  ;;  %v13494_v59 = vand.u32 4294901760, %v11300_v18 }
  0xc9   :  { %9337 = vmatpush1.bf16.msra.mxu1 %v13790_v56  ;;  %v13489_v56 = vand.u32 4294901760, %v11294_v23  ;;  %v13497_v14 = vand.u32 4294901760, %v11302_v60  ;;  %v2958_v39 = vsub.f32 %v11290_v47, %v13491_v63  ;;  %v2294_v17 = vand.u32 4294901760, %v2293_v22 }
  0xca   :  { %9339 = vmatprep.subr.bf16.mxu1 %v13794_v51  ;;  %v2952_v51 = vsub.f32 %v11278_v54, %v13485_v43  ;;  %v11413_v43 = vsub.f32 %v236_v41, %v2875_v48  ;;  %v2306_v48 = vand.u32 4294901760, %v2305_v28  ;;  %v2941_v31 = vand.u32 4294901760, %v2940_v33  ;;  %v13847_v41 = vld [vmem:[#allocation22_spill] sm:$0xff] }
  0xcb   :  { %9437 = vmatpush1.bf16.msra.mxu0 %v10980_v21  ;;  %v2946_v21 = vsub.f32 %v11288_v4, %v13487_v1  ;;  %v2317_v6 = vsub.f32 %v11294_v23, %v13489_v56  ;;  %v2300_v26 = vand.u32 4294901760, %v2299_v34  ;;  %v2312_v22 = vand.u32 4294901760, %v2311_v37  ;;  %v13850_v34 = vld [vmem:[#allocation18_spill] sm:$0xff] }
  0xcc   :  { %9535 = vmatprep.subr.bf16.mxu0 %v11276_v16  ;;  %v2953_v1 = vand.u32 4294901760, %v2952_v51  ;;  %v2964_v56 = vsub.f32 %v11300_v18, %v13494_v59  ;;  %v2959_v33 = vand.u32 4294901760, %v2958_v39  ;;  %v13846_v51 = vld [vmem:[#allocation25_spill] sm:$0xff]  ;;  %v9454_v16 = vpack.c.bf16 %v2306_v48, %v2294_v17  ;;  %v13856_v37 = vld [vmem:[#allocation26_spill] sm:$0xff] }
  0xcd   :  { %9341 = vmatpush1.bf16.msra.mxu1 %v13799_v13  ;;  %v2329_v13 = vsub.f32 %v11296_v11, %v13490_v8  ;;  %v2976_v8 = vsub.f32 %v11302_v60, %v13497_v14  ;;  %v2947_v28 = vand.u32 4294901760, %v2946_v21  ;;  %v2318_v59 = vand.u32 4294901760, %v2317_v6 }
  0xce   :  { %9439 = vmatprep.subr.bf16.mxu1 %v11268_v52  ;;  %2192 = vmatmul.mubr.f32.vlgmr.msra.gmra.mrb[2].mxu0 %v10793_v2  ;;  %v13849_v14 = vand.u32 4294901760, %v11307_v15  ;;  %v9550_v21 = vpack.c.bf16 %v2953_v1, %v2941_v31  ;;  %v2965_v6 = vand.u32 4294901760, %v2964_v56  ;;  %v13853_v1 = vand.u32 4294901760, %v13846_v51 }
  0xcf   :  { %9537 = vmatpush1.bf16.msra.mxu0 %v11286_v61  ;;  %v13848_v61 = vld [vmem:[#allocation28_spill] sm:$0xff]  ;;  %v2330_v52 = vand.u32 4294901760, %v2329_v13  ;;  %2925 = vmatprep.mubr.f32.mxu0 %v13753_v55  ;;  %v2977_v13 = vand.u32 4294901760, %v2976_v8  ;;  %v9552_v17 = vpack.c.bf16 %v2959_v33, %v2947_v28  ;;  %v13854_v48 = vand.u32 4294901760, %v13847_v41 }
  0xd0   :  { %1545 = vmatmul.mubr.f32.vlgmr.msra.gmra.mrb[2].mxu1 %v10793_v2  ;;  %9539 = vmatprep.subr.bf16.mxu0 %v11298_v25  ;;  %v2323_v63 = vsub.f32 %v11307_v15, %v13849_v14  ;;  %v13851_v25 = vand.u32 4294901760, %v11310_v62  ;;  %v13852_v15 = vld [vmem:[#allocation16_spill] sm:$0xff]  ;;  %v2970_v31 = vsub.f32 %v13846_v51, %v13853_v1  ;;  %v13857_v28 = vand.u32 4294901760, %v11333_v57 }
  0xd1   :  { %9441 = vmatpush1.bf16.msra.mxu1 %v11280_v29  ;;  %2278 = vmatprep.mubr.f32.mxu1 %v13753_v55  ;;  %v13508_v29 = vand.u32 4294901760, %v11325_v0  ;;  %v9458_v56 = vpack.c.bf16 %v2330_v52, %v2318_v59  ;;  %v13858_v1 = vand.u32 4294901760, %v11336_v44  ;;  %v9554_v52 = vpack.c.bf16 %v2977_v13, %v2965_v6 }
  0xd2   :  { %9443 = vmatprep.subr.bf16.mxu1 %v13848_v61  ;;  %v11453_v61 = vpack.c.bf16 %v2312_v22, %v2300_v26  ;;  %v2335_v14 = vsub.f32 %v11310_v62, %v13851_v25  ;;  %v2982_v26 = vsub.f32 %v13847_v41, %v13854_v48  ;;  %v13855_v22 = vld [vmem:[#allocation27_spill] sm:$0xff]  ;;  %v2324_v8 = vand.u32 4294901760, %v2323_v63 }
  0xd3   :  { %9541 = vmatpush1.bf16.msra.mxu0 %v13850_v34  ;;  %v2341_v25 = vsub.f32 %v11325_v0, %v13508_v29  ;;  %v2988_v33 = vsub.f32 %v11333_v57, %v13857_v28  ;;  %v2971_v28 = vand.u32 4294901760, %v2970_v31  ;;  %v13859_v6 = vand.u32 4294901760, %v13856_v37 }
  0xd4   :  { %9543 = vmatprep.subr.bf16.mxu0 %v11331_v38  ;;  %v3000_v38 = vsub.f32 %v11336_v44, %v13858_v1  ;;  %v2336_v59 = vand.u32 4294901760, %v2335_v14  ;;  %v2983_v39 = vand.u32 4294901760, %v2982_v26  ;;  %v13860_v31 = vand.u32 4294901760, %v11340_v12 }
  0xd5   :  { %9445 = vmatpush1.bf16.msra.mxu1 %v13852_v15  ;;  %v2353_v13 = vsub.f32 %v13856_v37, %v13859_v6  ;;  %v2989_v63 = vand.u32 4294901760, %v2988_v33  ;;  %v13861_v1 = vand.u32 4294901760, %v11342_v27  ;;  %v13863_v14 = vand.u32 4294901760, %v11349_v58 }
  0xd6   :  { %9447 = vmatprep.subr.bf16.mxu1 %v13855_v22  ;;  %v2342_v22 = vand.u32 4294901760, %v2341_v25  ;;  %v2347_v26 = vsub.f32 %v11340_v12, %v13860_v31  ;;  %v13862_v25 = vand.u32 4294901760, %v11347_v53  ;;  %v13864_v31 = vand.u32 4294901760, %v11368_v19 }
  0xd7   :  { %9545 = vmatpush1.bf16.msra.mxu0 %v11345_v30  ;;  %v2359_v48 = vsub.f32 %v11342_v27, %v13861_v1  ;;  %v3006_v29 = vsub.f32 %v11349_v58, %v13863_v14  ;;  %v9460_v14 = vpack.c.bf16 %v2336_v59, %v2324_v8  ;;  %v13866_v33 = vand.u32 4294901760, %v11355_v9 }
  0xd8   :  { %9547 = vmatprep.subr.bf16.mxu0 %v11360_v3  ;;  %v2994_v6 = vsub.f32 %v11347_v53, %v13862_v25  ;;  %v3012_v1 = vsub.f32 %v11368_v19, %v13864_v31  ;;  %v2370_v25 = vand.u32 4294901760, %v11372_v50  ;;  %v13868_v31 = vld [vmem:[#allocation15_spill] sm:$0xff]  ;;  %v9556_v15 = vpack.c.bf16 %v2983_v39, %v2971_v28 }
  0xd9   :  { %9449 = vmatpush1.bf16.msra.mxu1 %v11338_v36  ;;  %v3001_v36 = vand.u32 4294901760, %v3000_v38  ;;  %v2354_v38 = vand.u32 4294901760, %v2353_v13  ;;  %v3007_v8 = vand.u32 4294901760, %v3006_v29  ;;  %v13869_v59 = vand.u32 4294901760, %v11404_v42 }
  0xda   :  { %9451 = vmatprep.subr.bf16.mxu1 %v11351_v46  ;;  %v3013_v39 = vand.u32 4294901760, %v3012_v1 }
  0xdb   :  { %9549 = vmatpush1.bf16.msra.mxu0 %v11384_v45  ;;  %v13865_v45 = vand.u32 4294901760, %v11370_v24  ;;  %v9558_v34 = vpack.c.bf16 %v3001_v36, %v2989_v63  ;;  %v3018_v13 = vsub.f32 %v11404_v42, %v13869_v59  ;;  %v9462_v63 = vpack.c.bf16 %v2354_v38, %v2342_v22 }
  0xdc   :  { %9551 = vmatprep.subr.bf16.mxu0 %v9550_v21  ;;  %v13867_v21 = vand.u32 4294901760, %v11357_v35  ;;  %v9572_v38 = vpack.c.bf16 %v13847_v41, %v13846_v51 }
  0xdd   :  { %9453 = vmatpush1.bf16.msra.mxu1 %v11377_v10  ;;  %v3024_v46 = vsub.f32 %v11370_v24, %v13865_v45  ;;  %v2365_v10 = vsub.f32 %v11355_v9, %v13866_v33  ;;  %v2348_v45 = vand.u32 4294901760, %v2347_v26  ;;  %v2360_v24 = vand.u32 4294901760, %v2359_v48 }
  0xde   :  { %9455 = vmatprep.subr.bf16.mxu1 %v9454_v16  ;;  %v2377_v30 = vsub.f32 %v11357_v35, %v13867_v21  ;;  %2931 = vmatmul.mubr.f32.vlgmr.msra.gmra.mrb[4].mxu0 %v13868_v31  ;;  %v2995_v16 = vand.u32 4294901760, %v2994_v6  ;;  %v13870_v33 = vand.u32 4294901760, %v11413_v43  ;;  %v2371_v48 = vsub.f32 %v11372_v50, %v2370_v25 }
  0xdf   :  { %9553 = vmatpush1.bf16.msra.mxu0 %v9552_v17  ;;  %v3025_v36 = vand.u32 4294901760, %v3024_v46  ;;  %v13871_v17 = vand.u32 4294901760, %v11379_v32  ;;  %v2366_v28 = vand.u32 4294901760, %v2365_v10  ;;  %3081 = vmatprep.mubr.f32.mxu0 %v13753_v55  ;;  %v9464_v6 = vpack.c.bf16 %v2360_v24, %v2348_v45 }
  0xe0   :  { %2284 = vmatmul.mubr.f32.vlgmr.msra.gmra.mrb[4].mxu1 %v13868_v31  ;;  %v3030_v3 = vsub.f32 %v11413_v43, %v13870_v33  ;;  %9555 = vmatprep.subr.bf16.mxu0 %v9554_v52  ;;  %v2378_v26 = vand.u32 4294901760, %v2377_v30  ;;  %v3019_v52 = vand.u32 4294901760, %v3018_v13  ;;  %v2372_v21 = vand.u32 4294901760, %v2371_v48  ;;  %v165_v31 = vld [vmem:[#allocation7 + $0x380] sm:$0xff] }
  0xe1   :  { %9457 = vmatpush1.bf16.msra.mxu1 %v11453_v61  ;;  %v2383_v29 = vsub.f32 %v11379_v32, %v13871_v17  ;;  %2434 = vmatprep.mubr.f32.mxu1 %v13753_v55  ;;  %v9560_v61 = vpack.c.bf16 %v3007_v8, %v2995_v16  ;;  %v9562_v1 = vpack.c.bf16 %v3025_v36, %v3013_v39  ;;  %v13873_v36 = vld [vmem:[#allocation34_spill] sm:$0xff] }
  0xe2   :  { %9459 = vmatprep.subr.bf16.mxu1 %v9458_v56  ;;  %v3031_v46 = vand.u32 4294901760, %v3030_v3  ;;  %v9466_v33 = vpack.c.bf16 %v2378_v26, %v2366_v28  ;;  %v9566_v10 = vpack.c.bf16 %v11278_v54, %v11274_v5  ;;  %v9568_v3 = vpack.c.bf16 %v11290_v47, %v11288_v4  ;;  %v13874_v28 = vld [vmem:[#allocation21_spill] sm:$0xff]  ;;  %v13875_v26 = vld [vmem:[#allocation20_spill] sm:$0xff] }
  0xe3   :  { %9557 = vmatpush1.bf16.msra.mxu0 %v9556_v15  ;;  %v2384_v59 = vand.u32 4294901760, %v2383_v29  ;;  %v9470_v15 = vpack.c.bf16 %v11272_v49, %v11270_v20  ;;  %v9472_v24 = vpack.c.bf16 %v11284_v7, %v11282_v40  ;;  %v9474_v56 = vpack.c.bf16 %v11296_v11, %v11294_v23 }
  0xe4   :  { %9559 = vmatprep.subr.bf16.mxu0 %v9558_v34  ;;  %v9564_v22 = vpack.c.bf16 %v3031_v46, %v3019_v52  ;;  %v9570_v34 = vpack.c.bf16 %v11302_v60, %v11300_v18  ;;  %v9574_v16 = vpack.c.bf16 %v11336_v44, %v11333_v57  ;;  %v9478_v8 = vpack.c.bf16 %v13856_v37, %v11325_v0  ;;  %v13877_v52 = vld [vmem:[#allocation24_spill] sm:$0xff]  ;;  %v13878_v46 = vld [vmem:[#allocation23_spill] sm:$0xff] }
  0xe5   :  { %9461 = vmatpush1.bf16.msra.mxu1 %v9460_v14  ;;  %v9468_v30 = vpack.c.bf16 %v2384_v59, %v2372_v21  ;;  %v13872_v14 = vld [vmem:[#allocation19_spill] sm:$0xff]  ;;  %v9576_v13 = vpack.c.bf16 %v11349_v58, %v11347_v53  ;;  %v9480_v39 = vpack.c.bf16 %v11342_v27, %v11340_v12  ;;  %v9578_v48 = vpack.c.bf16 %v13873_v36, %v11368_v19  ;;  %v13881_v21 = vld [vmem:[#allocation18_spill] sm:$0xff]  ;;  %v13882_v59 = vld [vmem:[#allocation16_spill] sm:$0xff] }
  0xe6   :  { %9463 = vmatprep.subr.bf16.mxu1 %v9462_v63  ;;  %v9476_v45 = vpack.c.bf16 %v11310_v62, %v13872_v14  ;;  %v9482_v17 = vpack.c.bf16 %v11357_v35, %v11355_v9  ;;  %v9580_v29 = vpack.c.bf16 %v11413_v43, %v11404_v42  ;;  %v9484_v63 = vpack.c.bf16 %v11379_v32, %v11372_v50 }
  0xe7   :  { %9561 = vmatpush1.bf16.msra.mxu0 %v9560_v61  ;;  %v13876_v61 = vld [vmem:[#allocation13_spill] sm:$0xff] }
  0xe8   :  { %9563 = vmatprep.subr.bf16.mxu0 %v9562_v1  ;;  %v13880_v1 = vld [vmem:[#allocation28_spill] sm:$0xff] }
  0xe9   :  { %9465 = vmatpush1.bf16.msra.mxu1 %v9464_v6  ;;  %v13879_v6 = vld [vmem:[#allocation17_spill] sm:$0xff] }
  0xea   :  { %9467 = vmatprep.subr.bf16.mxu1 %v9466_v33  ;;  %v13883_v33 = vld [vmem:[#allocation30_spill] sm:$0xff] }
  0xeb   :  { %9565 = vmatpush1.bf16.msra.mxu0 %v9564_v22  ;;  %v13884_v22 = vld [vmem:[#allocation27_spill] sm:$0xff] }
  0xec   :  { %9567 = vmatprep.subr.bf16.mxu0 %v9566_v10  ;;  %v13886_v10 = vld [vmem:[#allocation29_spill] sm:$0xff] }
  0xed   :  { %9469 = vmatpush1.bf16.msra.mxu1 %v9468_v30  ;;  %v13885_v30 = vld [vmem:[#allocation31_spill] sm:$0xff] }
  0xee   :  { %9471 = vmatprep.subr.bf16.mxu1 %v9470_v15  ;;  %3083 = vmatmul.mubr.f32.vlgmr.msra.gmra.mrb[4].mxu0 %v10793_v2  ;;  %v13887_v15 = vld [vmem:[#allocation33_spill] sm:$0xff] }
  0xef   :  { %9569 = vmatpush1.bf16.msra.mxu0 %v9568_v3  ;;  %3185 = vmatprep.mubr.f32.mxu0 %v13753_v55  ;;  %v13888_v3 = vand.u32 4294901760, %v11274_v5  ;;  %v13897_v5 = vand.u32 4294901760, %v11282_v40  ;;  %v13904_v40 = vand.u32 4294901760, %v13846_v51  ;;  %v88_v51 = vld [vmem:[#allocation7 + $0x118] sm:$0xff] }
  0xf0   :  { %2436 = vmatmul.mubr.f32.vlgmr.msra.gmra.mrb[4].mxu1 %v10793_v2  ;;  %9571 = vmatprep.subr.bf16.mxu0 %v9570_v34 }
  0xf1   :  { %9473 = vmatpush1.bf16.msra.mxu1 %v9472_v24  ;;  %2538 = vmatprep.mubr.f32.mxu1 %v13753_v55  ;;  %v13889_v24 = vand.u32 4294901760, %v11278_v54  ;;  %v13898_v54 = vand.u32 4294901760, %v11284_v7  ;;  %v13905_v7 = vand.u32 4294901760, %v13847_v41  ;;  %v13910_v41 = vand.u32 4294901760, %v11325_v0 }
  0xf2   :  { %9475 = vmatprep.subr.bf16.mxu1 %v9474_v56  ;;  %v13890_v56 = vld [vmem:[#allocation32_spill] sm:$0xff]  ;;  %v13916_v0 = vand.u32 4294901760, %v11355_v9 }
  0xf3   :  { %9573 = vmatpush1.bf16.msra.mxu0 %v9572_v38  ;;  %v9598_v34 = vpack.c.bf16 %v13889_v24, %v13888_v3  ;;  %v13891_v38 = vand.u32 4294901760, %v11270_v20  ;;  %v13899_v20 = vand.u32 4294901760, %v11300_v18  ;;  %v13901_v3 = vand.u32 4294901760, %v11294_v23  ;;  %v64_v24 = vld [vmem:[#allocation7 + $0x58] sm:$0xff]  ;;  %v91_v18 = vld [vmem:[#allocation7 + $0x130] sm:$0xff] }
  0xf4   :  { %9575 = vmatprep.subr.bf16.mxu0 %v9574_v16  ;;  %v13906_v23 = vand.u32 4294901760, %v13872_v14 }
  0xf5   :  { %9477 = vmatpush1.bf16.msra.mxu1 %v9476_v45  ;;  %v13892_v45 = vand.u32 4294901760, %v11272_v49  ;;  %v13900_v49 = vand.u32 4294901760, %v11302_v60  ;;  %v9604_v60 = vpack.c.bf16 %v13905_v7, %v13904_v40  ;;  %v13915_v40 = vand.u32 4294901760, %v11349_v58 }
  0xf6   :  { %9479 = vmatprep.subr.bf16.mxu1 %v9478_v8  ;;  %v13893_v8 = vld [vmem:[#allocation36_spill] sm:$0xff]  ;;  %v13920_v58 = vand.u32 4294901760, %v11379_v32 }
  0xf7   :  { %9577 = vmatpush1.bf16.msra.mxu0 %v9576_v13  ;;  %v9502_v16 = vpack.c.bf16 %v13892_v45, %v13891_v38  ;;  %v13894_v13 = vand.u32 4294901760, %v11288_v4  ;;  %v13902_v4 = vand.u32 4294901760, %v11296_v11  ;;  %v89_v38 = vld [vmem:[#allocation7 + $0x120] sm:$0xff]  ;;  %v13907_v11 = vand.u32 4294901760, %v11310_v62 }
  0xf8   :  { %9579 = vmatprep.subr.bf16.mxu0 %v9578_v48  ;;  %v13903_v45 = vld [vmem:[#allocation14_spill] sm:$0xff] }
  0xf9   :  { %9481 = vmatpush1.bf16.msra.mxu1 %v9480_v39  ;;  %v13895_v39 = vand.u32 4294901760, %v11290_v47  ;;  %v9506_v47 = vpack.c.bf16 %v13902_v4, %v13901_v3  ;;  %v65_v62 = vld [vmem:[#allocation7 + $0x60] sm:$0xff]  ;;  %v13914_v4 = vand.u32 4294901760, %v11347_v53  ;;  %v9516_v53 = vpack.c.bf16 %v13920_v58, %v2370_v25 }
  0xfa   :  { %9483 = vmatprep.subr.bf16.mxu1 %v9482_v17  ;;  %v13896_v17 = vld [vmem:[#allocation35_spill] sm:$0xff] }
  0xfb   :  { %9581 = vmatpush1.bf16.msra.mxu0 %v9580_v29  ;;  %v9600_v48 = vpack.c.bf16 %v13895_v39, %v13894_v13  ;;  %v9504_v29 = vpack.c.bf16 %v13898_v54, %v13897_v5  ;;  %v13908_v13 = vand.u32 4294901760, %v11333_v57  ;;  %v13909_v39 = vand.u32 4294901760, %v11336_v44 }
  0xfc   :  { %9583 = vmatprep.subr.bf16.mxu0 %v13874_v28  ;;  %v3492_v54 = vand.u32 4294901760, %v64_v24  ;;  %v13912_v57 = vand.u32 4294901760, %v11340_v12  ;;  %v13913_v44 = vand.u32 4294901760, %v11342_v27  ;;  %v13918_v12 = vand.u32 4294901760, %v11368_v19 }
  0xfd   :  { %9485 = vmatpush1.bf16.msra.mxu1 %v9484_v63  ;;  %v9602_v63 = vpack.c.bf16 %v13900_v49, %v13899_v20  ;;  %v9606_v5 = vpack.c.bf16 %v13909_v39, %v13908_v13  ;;  %v63_v20 = vld [vmem:[#allocation7 + $0x50] sm:$0xff]  ;;  %v13919_v27 = vand.u32 4294901760, %v13873_v36  ;;  %v4141_v36 = vand.u32 4294901760, %v65_v62 }
  0xfe   :  { %9487 = vmatprep.subr.bf16.mxu1 %v13875_v26  ;;  %3188 = vmatmul.mubr.f32.vlgmr.msra.gmra.mrb[4].mxu0 %v13876_v61  ;;  %v9512_v3 = vpack.c.bf16 %v13913_v44, %v13912_v57  ;;  %v139_v13 = vld [vmem:[#allocation7 + $0x2b0] sm:$0xff]  ;;  %v3494_v9 = vand.u32 4294901760, %v63_v20  ;;  %v13921_v57 = vand.u32 4294901760, %v11404_v42  ;;  %v11665_v50 = vsub.f32 %v64_v24, %v3492_v54 }
  0xff   :  { %9585 = vmatpush1.bf16.msra.mxu0 %v13877_v52  ;;  %3274 = vmatprep.mubr.f32.mxu0 %v13753_v55  ;;  %v9610_v39 = vpack.c.bf16 %v13919_v27, %v13918_v12  ;;  %v115_v12 = vld [vmem:[#allocation7 + $0x1f0] sm:$0xff]  ;;  %v140_v27 = vld [vmem:[#allocation7 + $0x2b8] sm:$0xff] }
 0x100   :  { %2541 = vmatmul.mubr.f32.vlgmr.msra.gmra.mrb[4].mxu1 %v13876_v61  ;;  %9587 = vmatprep.subr.bf16.mxu0 %v13879_v6  ;;  %v11677_v24 = vsub.f32 %v63_v20, %v3494_v9  ;;  %v4153_v20 = vand.u32 4294901760, %v140_v27 }
 0x101   :  { %9489 = vmatpush1.bf16.msra.mxu1 %v13878_v46  ;;  %2627 = vmatprep.mubr.f32.mxu1 %v13753_v55 }
 0x102   :  { %9491 = vmatprep.subr.bf16.mxu1 %v13880_v1 }
 0x103   :  { %9589 = vmatpush1.bf16.msra.mxu0 %v13881_v21 }
 0x104   :  { %9591 = vmatprep.subr.bf16.mxu0 %v13883_v33 }
 0x105   :  { %9493 = vmatpush1.bf16.msra.mxu1 %v13882_v59 }
 0x106   :  { %9495 = vmatprep.subr.bf16.mxu1 %v13884_v22 }
 0x107   :  { %9593 = vmatpush1.bf16.msra.mxu0 %v13885_v30 }
 0x108   :  { %9595 = vmatprep.subr.bf16.mxu0 %v13887_v15 }
 0x109   :  { %9497 = vmatpush1.bf16.msra.mxu1 %v13886_v10 }
 0x10a   :  { %9499 = vmatprep.subr.bf16.mxu1 %v13890_v56 }
 0x10b   :  { %9597 = vmatpush1.bf16.msra.mxu0 %v13893_v8 }
 0x10c   :  { %9599 = vmatprep.subr.bf16.mxu0 %v9598_v34  ;;  %v66_v34 = vld [vmem:[#allocation7 + $0x68] sm:$0xff] }
 0x10d   :  { %9501 = vmatpush1.bf16.msra.mxu1 %v13896_v17  ;;  %v4139_v14 = vand.u32 4294901760, %v66_v34 }
 0x10e   :  { %9503 = vmatprep.subr.bf16.mxu1 %v9502_v16  ;;  %3278 = vmatmul.mubr.f32.vlgmr.msra.gmra.mrb[4].mxu0 %v13903_v45  ;;  %v9508_v16 = vpack.c.bf16 %v13907_v11, %v13906_v23  ;;  %v4143_v23 = vand.u32 4294901760, %v91_v18  ;;  %v114_v11 = vld [vmem:[#allocation7 + $0x1e8] sm:$0xff] }
 0x10f   :  { %9601 = vmatpush1.bf16.msra.mxu0 %v9600_v48  ;;  %v3496_v48 = vand.u32 4294901760, %v89_v38  ;;  %3396 = vmatprep.mubr.f32.mxu0 %v13753_v55  ;;  %v3500_v25 = vand.u32 4294901760, %v114_v11 }
 0x110   :  { %2631 = vmatmul.mubr.f32.vlgmr.msra.gmra.mrb[4].mxu1 %v13903_v45  ;;  %9603 = vmatprep.subr.bf16.mxu0 %v9602_v63  ;;  %v90_v63 = vld [vmem:[#allocation7 + $0x128] sm:$0xff]  ;;  %v11673_v58 = vsub.f32 %v91_v18, %v4143_v23  ;;  %v188_v45 = vld [vmem:[#allocation7 + $0x438] sm:$0xff] }
 0x111   :  { %9505 = vmatpush1.bf16.msra.mxu1 %v9504_v29  ;;  %v13911_v29 = vand.u32 4294901760, %v13856_v37  ;;  %2749 = vmatprep.mubr.f32.mxu1 %v13753_v55  ;;  %v13917_v37 = vand.u32 4294901760, %v11357_v35  ;;  %v116_v35 = vld [vmem:[#allocation7 + $0x1f8] sm:$0xff]  ;;  %v11663_v19 = vpack.c.bf16 %v3496_v48, %v3492_v54  ;;  %v11667_v32 = vsub.f32 %v89_v38, %v3496_v48 }
 0x112   :  { %9507 = vmatprep.subr.bf16.mxu1 %v9506_v47  ;;  %v9608_v47 = vpack.c.bf16 %v13915_v40, %v13914_v4  ;;  %v4145_v4 = vand.u32 4294901760, %v90_v63  ;;  %v3504_v40 = vand.u32 4294901760, %v139_v13  ;;  %v4147_v42 = vand.u32 4294901760, %v116_v35 }
 0x113   :  { %v9510_v49 = vpack.c.bf16 %v13911_v29, %v13910_v41  ;;  %v9514_v7 = vpack.c.bf16 %v13917_v37, %v13916_v0  ;;  %9605 = vmatpush1.bf16.msra.mxu0 %v9604_v60  ;;  %v3498_v41 = vand.u32 4294901760, %v88_v51  ;;  %v141_v29 = vld [vmem:[#allocation7 + $0x2c0] sm:$0xff]  ;;  %v13922_v60 = vand.u32 4294901760, %v11413_v43  ;;  %13923 = vst [vmem:[#allocation25_spill] sm:$0xff] %v11663_v19  ;;  %v138_v37 = vld [vmem:[#allocation7 + $0x2a8] sm:$0xff] }
 0x114   :  { %9607 = vmatprep.subr.bf16.mxu0 %v9606_v5  ;;  %v113_v0 = vld [vmem:[#allocation7 + $0x1e0] sm:$0xff]  ;;  %v11671_v5 = vsub.f32 %v66_v34, %v4139_v14  ;;  %v4151_v43 = vand.u32 4294901760, %v141_v29  ;;  %v11681_v54 = vpack.c.bf16 %v4145_v4, %v4141_v36  ;;  %v11683_v48 = vsub.f32 %v65_v62, %v4141_v36  ;;  %v163_v36 = vld [vmem:[#allocation7 + $0x370] sm:$0xff] }
 0x115   :  { %9509 = vmatpush1.bf16.msra.mxu1 %v9508_v16  ;;  %v9612_v44 = vpack.c.bf16 %v13922_v60, %v13921_v57  ;;  %v11669_v16 = vpack.c.bf16 %v4143_v23, %v4139_v14  ;;  %v11679_v38 = vsub.f32 %v88_v51, %v3498_v41  ;;  %v3502_v34 = vand.u32 4294901760, %v113_v0  ;;  %v164_v57 = vld [vmem:[#allocation7 + $0x378] sm:$0xff]  ;;  %v189_v60 = vld [vmem:[#allocation7 + $0x440] sm:$0xff]  ;;  %v191_v51 = vld [vmem:[#allocation7 + $0x450] sm:$0xff] }
 0x116   :  { %9511 = vmatprep.subr.bf16.mxu1 %v9510_v49  ;;  %v11675_v49 = vpack.c.bf16 %v3498_v41, %v3494_v9  ;;  %13926 = vst [vmem:[#allocation19_spill] sm:$0xff] %v11681_v54  ;;  %v3506_v14 = vand.u32 4294901760, %v138_v37  ;;  %v11687_v18 = vpack.c.bf16 %v3504_v40, %v3500_v25  ;;  %v4149_v23 = vand.u32 4294901760, %v115_v12  ;;  %v166_v9 = vld [vmem:[#allocation7 + $0x388] sm:$0xff] }
 0x117   :  { %13924 = vst [vmem:[#allocation22_spill] sm:$0xff] %v11669_v16  ;;  %9609 = vmatpush1.bf16.msra.mxu0 %v9608_v47  ;;  %v11685_v47 = vsub.f32 %v90_v63, %v4145_v4  ;;  %v11689_v41 = vsub.f32 %v114_v11, %v3500_v25  ;;  %v11695_v62 = vsub.f32 %v116_v35, %v4147_v42  ;;  %v3508_v4 = vand.u32 4294901760, %v164_v57 }
 0x118   :  { %13925 = vst [vmem:[#allocation26_spill] sm:$0xff] %v11675_v49  ;;  %9611 = vmatprep.subr.bf16.mxu0 %v9610_v39  ;;  %13927 = vst [vmem:[#allocation34_spill] sm:$0xff] %v11687_v18  ;;  %v11693_v39 = vpack.c.bf16 %v4151_v43, %v4147_v42  ;;  %v11699_v63 = vsub.f32 %v113_v0, %v3502_v34  ;;  %v3512_v61 = vand.u32 4294901760, %v189_v60  ;;  %v190_v18 = vld [vmem:[#allocation7 + $0x448] sm:$0xff]  ;;  %v4155_v35 = vand.u32 4294901760, %v166_v9 }
 0x119   :  { %9513 = vmatpush1.bf16.msra.mxu1 %v9512_v3  ;;  %v11691_v3 = vsub.f32 %v139_v13, %v3504_v40  ;;  %v11702_v11 = vpack.c.bf16 %v3506_v14, %v3502_v34  ;;  %v11704_v13 = vsub.f32 %v138_v37, %v3506_v14  ;;  %v4159_v25 = vand.u32 4294901760, %v191_v51  ;;  %v214_v42 = vld [vmem:[#allocation7 + $0x508] sm:$0xff]  ;;  %v216_v14 = vld [vmem:[#allocation7 + $0x518] sm:$0xff] }
 0x11a   :  { %9515 = vmatprep.subr.bf16.mxu1 %v9514_v7  ;;  %13928 = vst [vmem:[#allocation21_spill] sm:$0xff] %v11693_v39  ;;  %v11697_v7 = vsub.f32 %v141_v29, %v4151_v43  ;;  %13929 = vst [vmem:[#allocation20_spill] sm:$0xff] %v11699_v63  ;;  %v11709_v29 = vsub.f32 %v115_v12, %v4149_v23  ;;  %v3510_v40 = vand.u32 4294901760, %v163_v36  ;;  %v3514_v0 = vand.u32 4294901760, %v188_v45  ;;  %v239_v43 = vld [vmem:[#allocation7 + $0x5d0] sm:$0xff] }
 0x11b   :  { %9613 = vmatpush1.bf16.msra.mxu0 %v9612_v44  ;;  %13930 = vst [vmem:[#allocation24_spill] sm:$0xff] %v11702_v11  ;;  %13931 = vst [vmem:[#allocation23_spill] sm:$0xff] %v11704_v13  ;;  %v11707_v44 = vpack.c.bf16 %v4153_v20, %v4149_v23  ;;  %v4157_v37 = vand.u32 4294901760, %v165_v31  ;;  %v4161_v34 = vand.u32 4294901760, %v190_v18  ;;  %v241_v11 = vld [vmem:[#allocation7 + $0x5e0] sm:$0xff]  ;;  %v11720_v12 = vsub.f32 %v189_v60, %v3512_v61 }
 0x11c   :  { %9615 = vmatprep.subr.bf16.mxu0 %v13874_v28  ;;  %v11714_v28 = vsub.f32 %v164_v57, %v3508_v4  ;;  %v11722_v23 = vsub.f32 %v166_v9, %v4155_v35  ;;  %v11728_v57 = vsub.f32 %v191_v51, %v4159_v25  ;;  %v4163_v60 = vand.u32 4294901760, %v216_v14  ;;  %v215_v9 = vld [vmem:[#allocation7 + $0x510] sm:$0xff] }
 0x11d   :  { %9517 = vmatpush1.bf16.msra.mxu1 %v9516_v53  ;;  %13932 = vst [vmem:[#allocation17_spill] sm:$0xff] %v11707_v44  ;;  %v11712_v53 = vsub.f32 %v140_v27, %v4153_v20  ;;  %v11726_v27 = vpack.c.bf16 %v4159_v25, %v4155_v35  ;;  %v3516_v20 = vand.u32 4294901760, %v214_v42  ;;  %v213_v44 = vld [vmem:[#allocation7 + $0x500] sm:$0xff]  ;;  %v11739_v51 = vpack.c.bf16 %v4161_v34, %v4157_v37 }
 0x11e   :  { %9519 = vmatprep.subr.bf16.mxu1 %v13875_v26  ;;  %3398 = vmatmul.mubr.f32.vlgmr.msra.gmra.mrb[4].mxu0 %v10793_v2  ;;  %13934 = vst [vmem:[#allocation18_spill] sm:$0xff] %v11714_v28  ;;  %v11718_v26 = vpack.c.bf16 %v3512_v61, %v3508_v4  ;;  %v3520_v28 = vand.u32 4294901760, %v239_v43  ;;  %v11732_v61 = vpack.c.bf16 %v3514_v0, %v3510_v40 }
 0x11f   :  { %13933 = vst [vmem:[#allocation28_spill] sm:$0xff] %v11712_v53  ;;  %9617 = vmatpush1.bf16.msra.mxu0 %v13877_v52  ;;  %13936 = vst [vmem:[#allocation30_spill] sm:$0xff] %v11726_v27  ;;  %v238_v53 = vld [vmem:[#allocation7 + $0x5c8] sm:$0xff]  ;;  %v11734_v52 = vsub.f32 %v163_v36, %v3510_v40  ;;  %3484 = vmatprep.mubr.f32.mxu0 %v13753_v55  ;;  %v11741_v4 = vsub.f32 %v165_v31, %v4157_v37  ;;  %v3518_v36 = vand.u32 4294901760, %v213_v44 }
 0x120   :  { %2751 = vmatmul.mubr.f32.vlgmr.msra.gmra.mrb[4].mxu1 %v10793_v2  ;;  %13935 = vst [vmem:[#allocation16_spill] sm:$0xff] %v11718_v26  ;;  %9619 = vmatprep.subr.bf16.mxu0 %v13879_v6  ;;  %13937 = vst [vmem:[#allocation27_spill] sm:$0xff] %v11732_v61  ;;  %v11737_v6 = vsub.f32 %v188_v45, %v3514_v0  ;;  %v11743_v35 = vsub.f32 %v190_v18, %v4161_v34  ;;  %v3522_v40 = vand.u32 4294901760, %v238_v53 }
 0x121   :  { %9521 = vmatpush1.bf16.msra.mxu1 %v13878_v46  ;;  %2837 = vmatprep.mubr.f32.mxu1 %v13753_v55  ;;  %v4167_v46 = vand.u32 4294901760, %v241_v11  ;;  %13938 = vst [vmem:[#allocation31_spill] sm:$0xff] %v11739_v51  ;;  %v11746_v25 = vsub.f32 %v214_v42, %v3516_v20  ;;  %v13533_v61 = vand.u32 4294901760, %v11665_v50  ;;  %v11751_v45 = vpack.c.bf16 %v3520_v28, %v3516_v20 }
 0x122   :  { %9523 = vmatprep.subr.bf16.mxu1 %v13880_v1  ;;  %v240_v1 = vld [vmem:[#allocation7 + $0x5d8] sm:$0xff]  ;;  %v11753_v0 = vsub.f32 %v239_v43, %v3520_v28  ;;  %v4165_v31 = vand.u32 4294901760, %v215_v9  ;;  %v13532_v18 = vand.u32 4294901760, %v11667_v32  ;;  %v11759_v42 = vsub.f32 %v216_v14, %v4163_v60 }
 0x123   :  { %9621 = vmatpush1.bf16.msra.mxu0 %v13881_v21  ;;  %13939 = vst [vmem:[#allocation29_spill] sm:$0xff] %v11751_v45  ;;  %v11757_v21 = vpack.c.bf16 %v4167_v46, %v4163_v60  ;;  %v4169_v37 = vand.u32 4294901760, %v240_v1  ;;  %v13534_v34 = vand.u32 4294901760, %v11671_v5  ;;  %v13536_v43 = vand.u32 4294901760, %v11683_v48 }
 0x124   :  { %9623 = vmatprep.subr.bf16.mxu0 %v13883_v33  ;;  %13940 = vst [vmem:[#allocation33_spill] sm:$0xff] %v11753_v0  ;;  %v11767_v28 = vsub.f32 %v241_v11, %v4167_v46  ;;  %v3587_v14 = vsub.f32 %v11665_v50, %v13533_v61  ;;  %v13537_v60 = vand.u32 4294901760, %v11685_v47  ;;  %v11777_v33 = vsub.f32 %v213_v44, %v3518_v36 }
 0x125   :  { %9525 = vmatpush1.bf16.msra.mxu1 %v13882_v59  ;;  %13941 = vst [vmem:[#allocation32_spill] sm:$0xff] %v11757_v21  ;;  %v13535_v59 = vand.u32 4294901760, %v11673_v58  ;;  %v11779_v20 = vsub.f32 %v238_v53, %v3522_v40  ;;  %v11785_v11 = vpack.c.bf16 %v4169_v37, %v4165_v31  ;;  %v4234_v46 = vsub.f32 %v11671_v5, %v13534_v34 }
 0x126   :  { %9527 = vmatprep.subr.bf16.mxu1 %v13884_v22  ;;  %v11769_v22 = vpack.c.bf16 %v3522_v40, %v3518_v36  ;;  %v13945_v53 = vand.u32 4294901760, %v11677_v24  ;;  %v3588_v61 = vand.u32 4294901760, %v3587_v14  ;;  %v4252_v34 = vsub.f32 %v11685_v47, %v13537_v60 }
 0x127   :  { %9625 = vmatpush1.bf16.msra.mxu0 %v13885_v30  ;;  %13943 = vst [vmem:[#allocation35_spill] sm:$0xff] %v11779_v20  ;;  %v3599_v30 = vsub.f32 %v11667_v32, %v13532_v18  ;;  %13944 = vst [vmem:[#allocation37_spill] sm:$0xff] %v11785_v11  ;;  %v4246_v44 = vsub.f32 %v11673_v58, %v13535_v59  ;;  %v4240_v18 = vsub.f32 %v11683_v48, %v13536_v43 }
 0x128   :  { %13942 = vst [vmem:[#allocation36_spill] sm:$0xff] %v11769_v22  ;;  %9627 = vmatprep.subr.bf16.mxu0 %v13887_v15  ;;  %v3593_v36 = vsub.f32 %v11677_v24, %v13945_v53  ;;  %v11817_v14 = vsub.f32 %v240_v1, %v4169_v37  ;;  %v13947_v60 = vand.u32 4294901760, %v11689_v41  ;;  %v4253_v1 = vand.u32 4294901760, %v4252_v34 }
 0x129   :  { %9529 = vmatpush1.bf16.msra.mxu1 %v13886_v10  ;;  %v3600_v53 = vand.u32 4294901760, %v3599_v30  ;;  %v4235_v30 = vand.u32 4294901760, %v4234_v46  ;;  %v4247_v10 = vand.u32 4294901760, %v4246_v44  ;;  %v13953_v34 = vand.u32 4294901760, %v11704_v13 }
 0x12a   :  { %9531 = vmatprep.subr.bf16.mxu1 %v13890_v56  ;;  %v13946_v56 = vand.u32 4294901760, %v11679_v38  ;;  %v3611_v15 = vsub.f32 %v11689_v41, %v13947_v60  ;;  %v13950_v60 = vand.u32 4294901760, %v11697_v7 }
 0x12b   :  { %9629 = vmatpush1.bf16.msra.mxu0 %v13893_v8  ;;  %v11815_v8 = vsub.f32 %v215_v9, %v4165_v31  ;;  %v4241_v9 = vand.u32 4294901760, %v4240_v18  ;;  %v13949_v31 = vand.u32 4294901760, %v11695_v62  ;;  %v11836_v46 = vpack.c.bf16 %v3600_v53, %v3588_v61  ;;  %v13955_v61 = vld [vmem:[#allocation28_spill] sm:$0xff] }
 0x12c   :  { %v3605_v40 = vsub.f32 %v11679_v38, %v13946_v56  ;;  %9727 = vmatprep.subr.bf16.mxu0 %v11669_v16  ;;  %v8566_v56 = vlaneseq  ;;  %v3594_v16 = vand.u32 4294901760, %v3593_v36  ;;  %v13952_v36 = vand.u32 4294901760, %v11699_v63 }
 0x12d   :  { %9533 = vmatpush1.bf16.msra.mxu1 %v13896_v17  ;;  %v13948_v17 = vand.u32 4294901760, %v11691_v3  ;;  %v4258_v37 = vsub.f32 %v11695_v62, %v13949_v31  ;;  %v13954_v31 = vld [vmem:[#allocation34_spill] sm:$0xff] }
 0x12e   :  { %9631 = vmatprep.subr.bf16.mxu1 %v11663_v19  ;;  %3486 = vmatmul.mubr.f32.vlgmr.msra.gmra.mrb[4].mxu0 %v10793_v2  ;;  %v3606_v43 = vand.u32 4294901760, %v3605_v40  ;;  %v11838_v44 = vshrl.u32 %v8566_v56, 7  ;;  %v3617_v18 = vsub.f32 %v11699_v63, %v13952_v36  ;;  %v3629_v40 = vsub.f32 %v11704_v13, %v13953_v34  ;;  %v13956_v34 = vld [vmem:[#allocation17_spill] sm:$0xff] }
 0x12f   :  { %v3623_v59 = vsub.f32 %v11691_v3, %v13948_v17  ;;  %9729 = vmatpush1.bf16.msra.mxu0 %v11681_v54  ;;  %v4270_v17 = vsub.f32 %v11697_v7, %v13950_v60  ;;  %v3612_v60 = vand.u32 4294901760, %v3611_v15  ;;  %4219 = vmatprep.mubr.f32.mxu0 %v13753_v55  ;;  %v9742_v56 = vpack.c.bf16 %v4247_v10, %v4235_v30  ;;  %v13957_v15 = vld [vmem:[#allocation18_spill] sm:$0xff] }
 0x130   :  { %2839 = vmatmul.mubr.f32.vlgmr.msra.gmra.mrb[4].mxu1 %v10793_v2  ;;  %9731 = vmatprep.subr.bf16.mxu0 %v11693_v39  ;;  %13951 = vst [vmem:[#allocation38_spill] sm:$0xff] %v11838_v44  ;;  %v13554_v39 = vand.u32 4294901760, %v11709_v29  ;;  %v11851_v54 = vpack.c.bf16 %v3606_v43, %v3594_v16  ;;  %v13557_v36 = vand.u32 4294901760, %v11722_v23  ;;  %v13558_v19 = vand.u32 4294901760, %v11728_v57  ;;  %v13958_v2 = vld [vmem:[#allocation24_spill] sm:$0xff] }
 0x131   :  { %9633 = vmatpush1.bf16.msra.mxu1 %v11675_v49  ;;  %3572 = vmatprep.mubr.f32.mxu1 %v13753_v55  ;;  %v3624_v49 = vand.u32 4294901760, %v3623_v59  ;;  %v4259_v13 = vand.u32 4294901760, %v4258_v37  ;;  %v4271_v63 = vand.u32 4294901760, %v4270_v17  ;;  %v13559_v59 = vand.u32 4294901760, %v13957_v15 }
 0x132   :  { %9635 = vmatprep.subr.bf16.mxu1 %v13954_v31  ;;  %v9744_v31 = vpack.c.bf16 %v4253_v1, %v4241_v9  ;;  %v11860_v53 = vsub.s32 0, %v11838_v44  ;;  %v3618_v16 = vand.u32 4294901760, %v3617_v18  ;;  %v3630_v43 = vand.u32 4294901760, %v3629_v40 }
 0x133   :  { %9733 = vmatpush1.bf16.msra.mxu0 %v13956_v34  ;;  %v11865_v30 = vsub.s32 1, %v11838_v44  ;;  %v11867_v9 = vpack.c.bf16 %v3624_v49, %v3612_v60  ;;  %v4264_v1 = vsub.f32 %v11709_v29, %v13554_v39  ;;  %v13961_v37 = vand.u32 4294901760, %v13955_v61 }
 0x134   :  { %9735 = vmatprep.subr.bf16.mxu0 %v11726_v27  ;;  %13959 = vst [vmem:[#allocation28_spill] sm:$0xff] %v11860_v53  ;;  %v4282_v18 = vsub.f32 %v11722_v23, %v13557_v36  ;;  %v4294_v40 = vsub.f32 %v11728_v57, %v13558_v19  ;;  %v9746_v60 = vpack.c.bf16 %v4271_v63, %v4259_v13  ;;  %v13962_v36 = vld [vmem:[#allocation27_spill] sm:$0xff]  ;;  %v13963_v10 = vand.u32 4294901760, %v11720_v12 }
 0x135   :  { %9637 = vmatpush1.bf16.msra.mxu1 %v13958_v2  ;;  %13960 = vst [vmem:[#allocation18_spill] sm:$0xff] %v11865_v30  ;;  %v4276_v17 = vsub.f32 %v13955_v61, %v13961_v37  ;;  %v3635_v39 = vsub.f32 %v13957_v15, %v13559_v59  ;;  %v11891_v19 = vpack.c.bf16 %v3630_v43, %v3618_v16  ;;  %v4265_v59 = vand.u32 4294901760, %v4264_v1  ;;  %v11933_v27 = vld [vmem:[#allocation5] sm:$0xff] }
 0x136   :  { %9639 = vmatprep.subr.bf16.mxu1 %v11718_v26  ;;  %v3647_v49 = vsub.f32 %v11720_v12, %v13963_v10  ;;  %v13964_v16 = vand.u32 4294901760, %v11734_v52  ;;  %v13965_v10 = vand.u32 4294901760, %v11737_v6  ;;  %v13966_v13 = vand.u32 4294901760, %v11741_v4  ;;  %v13972_v26 = vld [vmem:[#allocation15_spill] sm:$0xff]  ;;  %13973 = vst [vmem:[#allocation39_spill] sm:$0xff] %v11933_v27 }
 0x137   :  { %9737 = vmatpush1.bf16.msra.mxu0 %v11739_v51  ;;  %v4277_v37 = vand.u32 4294901760, %v4276_v17  ;;  %v4283_v51 = vand.u32 4294901760, %v4282_v18  ;;  %v13967_v17 = vand.u32 4294901760, %v11743_v35  ;;  %v13969_v44 = vand.u32 4294901760, %v11767_v28 }
 0x138   :  { %9739 = vmatprep.subr.bf16.mxu0 %v11757_v21  ;;  %v4295_v21 = vand.u32 4294901760, %v4294_v40  ;;  %v3641_v43 = vsub.f32 %v11734_v52, %v13964_v16  ;;  %v3653_v63 = vsub.f32 %v11737_v6, %v13965_v10  ;;  %v4288_v1 = vsub.f32 %v11741_v4, %v13966_v13 }
 0x139   :  { %9641 = vmatpush1.bf16.msra.mxu1 %v13962_v36  ;;  %v4300_v36 = vsub.f32 %v11743_v35, %v13967_v17  ;;  %v13968_v16 = vand.u32 4294901760, %v11759_v42  ;;  %v3636_v17 = vand.u32 4294901760, %v3635_v39  ;;  %v3648_v18 = vand.u32 4294901760, %v3647_v49 }
 0x13a   :  { %9643 = vmatprep.subr.bf16.mxu1 %v11751_v45  ;;  %v13970_v40 = vand.u32 4294901760, %v11746_v25  ;;  %v9750_v13 = vpack.c.bf16 %v4295_v21, %v4283_v51  ;;  %v3642_v2 = vand.u32 4294901760, %v3641_v43  ;;  %v3654_v45 = vand.u32 4294901760, %v3653_v63 }
 0x13b   :  { %9741 = vmatpush1.bf16.msra.mxu0 %v11785_v11  ;;  %v4306_v10 = vsub.f32 %v11759_v42, %v13968_v16  ;;  %v4318_v11 = vsub.f32 %v11767_v28, %v13969_v44  ;;  %v9748_v44 = vpack.c.bf16 %v4277_v37, %v4265_v59  ;;  %v4289_v39 = vand.u32 4294901760, %v4288_v1 }
 0x13c   :  { %9743 = vmatprep.subr.bf16.mxu0 %v9742_v56  ;;  %v3659_v56 = vsub.f32 %v11746_v25, %v13970_v40  ;;  %v13974_v49 = vand.u32 4294901760, %v11815_v8  ;;  %v13975_v34 = vand.u32 4294901760, %v11817_v14  ;;  %v13976_v59 = vand.u32 4294901760, %v11777_v33 }
 0x13d   :  { %9645 = vmatpush1.bf16.msra.mxu1 %v11769_v22  ;;  %v13971_v22 = vand.u32 4294901760, %v11753_v0  ;;  %v4307_v51 = vand.u32 4294901760, %v4306_v10  ;;  %v4319_v21 = vand.u32 4294901760, %v4318_v11  ;;  %v8569_v63 = vrot.slane %v11933_v27, %v11860_v53 }
 0x13e   :  { %9647 = vmatprep.subr.bf16.mxu1 %v11836_v46  ;;  %4225 = vmatmul.mubr.f32.vlgmr.msra.gmra.mrb[6].mxu0 %v13972_v26  ;;  %v4301_v46 = vand.u32 4294901760, %v4300_v36  ;;  %v4312_v40 = vsub.f32 %v11815_v8, %v13974_v49  ;;  %v13977_v36 = vand.u32 4294901760, %v11779_v20  ;;  %v9656_v10 = vpack.c.bf16 %v3654_v45, %v3642_v2 }
 0x13f   :  { %v3671_v16 = vsub.f32 %v11753_v0, %v13971_v22  ;;  %9745 = vmatpush1.bf16.msra.mxu0 %v9744_v31  ;;  %v4324_v22 = vsub.f32 %v11817_v14, %v13975_v34  ;;  %v899_v0 = vpop.f32.mrb[0].mxu0  ;;  %v3665_v31 = vsub.f32 %v11777_v33, %v13976_v59  ;;  %v9654_v34 = vpack.c.bf16 %v3648_v18, %v3636_v17 }
 0x140   :  { %3578 = vmatmul.mubr.f32.vlgmr.msra.gmra.mrb[6].mxu1 %v13972_v26  ;;  %9747 = vmatprep.subr.bf16.mxu0 %v9746_v60  ;;  %v3677_v37 = vsub.f32 %v11779_v20, %v13977_v36  ;;  %v901_v43 = vpop.f32.mrb[1].mxu0  ;;  %v8573_v60 = vrot.slane %v11933_v27, %v11865_v30  ;;  %v9752_v36 = vpack.c.bf16 %v4301_v46, %v4289_v39  ;;  %v4313_v53 = vand.u32 4294901760, %v4312_v40  ;;  %v194_v27 = vld [vmem:[#allocation7 + $0x468] sm:$0xff] }
 0x141   :  { %9649 = vmatpush1.bf16.msra.mxu1 %v11851_v54  ;;  %v3660_v54 = vand.u32 4294901760, %v3659_v56  ;;  %v3672_v1 = vand.u32 4294901760, %v3671_v16  ;;  %3728 = vmatprep.mubr.f32.mxu1 %v13753_v55  ;;  %v4325_v26 = vand.u32 4294901760, %v4324_v22  ;;  %v3666_v18 = vand.u32 4294901760, %v3665_v31  ;;  %v13979_v31 = vld [vmem:[#allocation20_spill] sm:$0xff] }
 0x142   :  { %9651 = vmatprep.subr.bf16.mxu1 %v11867_v9  ;;  %4375 = vmatprep.mubr.f32.mxu0 %v13753_v55  ;;  %v9754_v9 = vpack.c.bf16 %v4319_v21, %v4307_v51  ;;  %v3678_v17 = vand.u32 4294901760, %v3677_v37  ;;  %v9758_v39 = vpack.c.bf16 %v11673_v58, %v11671_v5  ;;  %v9666_v51 = vpack.c.bf16 %v11691_v3, %v11689_v41  ;;  %v13980_v37 = vld [vmem:[#allocation23_spill] sm:$0xff] }
 0x143   :  { %v601_v11 = vpop.f32.mrb[0].mxu1  ;;  %9749 = vmatpush1.bf16.msra.mxu0 %v9748_v44  ;;  %v9658_v16 = vpack.c.bf16 %v3672_v1, %v3660_v54  ;;  %v9756_v45 = vpack.c.bf16 %v4325_v26, %v4313_v53  ;;  %v9664_v26 = vpack.c.bf16 %v11679_v38, %v11677_v24  ;;  %v9762_v53 = vpack.c.bf16 %v11697_v7, %v11695_v62 }
 0x144   :  { %v10374_v49 = vadd.f32 %v899_v0, %v601_v11  ;;  %v603_v59 = vpop.f32.mrb[1].mxu1  ;;  %9751 = vmatprep.subr.bf16.mxu0 %v9750_v13  ;;  %v9660_v44 = vpack.c.bf16 %v3678_v17, %v3666_v18  ;;  %v9764_v21 = vpack.c.bf16 %v13955_v61, %v11709_v29  ;;  %v9768_v54 = vpack.c.bf16 %v11743_v35, %v11741_v4  ;;  %v14007_v17 = vld [vmem:[#allocation36_spill] sm:$0xff] }
 0x145   :  { %v10375_v20 = vadd.f32 %v901_v43, %v603_v59  ;;  %9653 = vmatpush1.bf16.msra.mxu1 %v11891_v19  ;;  %v9662_v19 = vpack.c.bf16 %v11667_v32, %v11665_v50  ;;  %v9766_v43 = vpack.c.bf16 %v11728_v57, %v11722_v23  ;;  %v9672_v1 = vpack.c.bf16 %v11737_v6, %v11734_v52 }
 0x146   :  { %v8691_v56 = vsub.f32 %v10374_v49, %v8569_v63  ;;  %9655 = vmatprep.subr.bf16.mxu1 %v9654_v34  ;;  %v9668_v63 = vpack.c.bf16 %v13980_v37, %v13979_v31  ;;  %v9670_v34 = vpack.c.bf16 %v11720_v12, %v13957_v15  ;;  %v9770_v11 = vpack.c.bf16 %v11767_v28, %v11759_v42 }
 0x147   :  { %v8692_v30 = vsub.f32 %v10375_v20, %v8573_v60  ;;  %9753 = vmatpush1.bf16.msra.mxu0 %v9752_v36  ;;  %v9760_v20 = vpack.c.bf16 %v11685_v47, %v11683_v48  ;;  %v13981_v60 = vld [vmem:[#allocation33_spill] sm:$0xff]  ;;  %v9772_v59 = vpack.c.bf16 %v11817_v14, %v11815_v8 }
 0x148   :  { %v8716_v2 = vmul.f32 -12.005, %v8691_v56  ;;  %9755 = vmatprep.subr.bf16.mxu0 %v9754_v9  ;;  %v13984_v9 = vld [vmem:[#allocation35_spill] sm:$0xff] }
 0x149   :  { %v8717_v0 = vmul.f32 -12.005, %v8692_v30  ;;  %9657 = vmatpush1.bf16.msra.mxu1 %v9656_v10  ;;  %v9674_v10 = vpack.c.bf16 %v13981_v60, %v11746_v25  ;;  %v9676_v18 = vpack.c.bf16 %v13984_v9, %v11777_v33 }
 0x14a   :  { %v8741_v46 = vmul.f32 %v8716_v2, %v8691_v56  ;;  %9659 = vmatprep.subr.bf16.mxu1 %v9658_v16  ;;  %v13985_v56 = vld [vmem:[#allocation22_spill] sm:$0xff]  ;;  %v13986_v16 = vld [vmem:[#allocation25_spill] sm:$0xff] }
 0x14b   :  { %v8742_v13 = vmul.f32 %v8717_v0, %v8692_v30  ;;  %9757 = vmatpush1.bf16.msra.mxu0 %v9756_v45  ;;  %v13978_v30 = vld [vmem:[#allocation12_spill] sm:$0xff]  ;;  %v13987_v2 = vld [vmem:[#allocation13_spill] sm:$0xff]  ;;  %v13988_v45 = vld [vmem:[#allocation19_spill] sm:$0xff] }
 0x14c   :  { %v8766_v40 = vmul.f32 1.442695, %v8741_v46  ;;  %9759 = vmatprep.subr.bf16.mxu0 %v9758_v39  ;;  %v13989_v0 = vld [vmem:[#allocation26_spill] sm:$0xff]  ;;  %v13992_v46 = vld [vmem:[#allocation17_spill] sm:$0xff] }
 0x14d   :  { %v8768_v22 = vmul.f32 1.442695, %v8742_v13  ;;  %9661 = vmatpush1.bf16.msra.mxu1 %v9660_v44  ;;  %v13990_v44 = vld [vmem:[#allocation21_spill] sm:$0xff]  ;;  %v13991_v39 = vld [vmem:[#allocation34_spill] sm:$0xff] }
 0x14e   :  { %10514 = vpow2.f32 %v8766_v40  ;;  %9663 = vmatprep.subr.bf16.mxu1 %v9662_v19  ;;  %4377 = vmatmul.mubr.f32.vlgmr.msra.gmra.mrb[6].mxu0 %v13978_v30  ;;  %v13993_v19 = vld [vmem:[#allocation24_spill] sm:$0xff]  ;;  %v13994_v13 = vld [vmem:[#allocation30_spill] sm:$0xff] }
 0x14f   :  { %10516 = vpow2.f32 %v8768_v22  ;;  %9761 = vmatpush1.bf16.msra.mxu0 %v9760_v20  ;;  %4479 = vmatprep.mubr.f32.mxu0 %v13753_v55  ;;  %v13995_v40 = vld [vmem:[#allocation16_spill] sm:$0xff]  ;;  %v13996_v20 = vld [vmem:[#allocation31_spill] sm:$0xff] }
 0x150   :  { %3730 = vmatmul.mubr.f32.vlgmr.msra.gmra.mrb[6].mxu1 %v13978_v30  ;;  %9763 = vmatprep.subr.bf16.mxu0 %v9762_v53  ;;  %v13997_v22 = vld [vmem:[#allocation27_spill] sm:$0xff]  ;;  %v13999_v53 = vand.u32 4294901760, %v11671_v5  ;;  %v14008_v5 = vand.u32 4294901760, %v11677_v24  ;;  %v14014_v24 = vld [vmem:[#allocation14_spill] sm:$0xff] }
 0x151   :  { %9665 = vmatpush1.bf16.msra.mxu1 %v9664_v26  ;;  %3832 = vmatprep.mubr.f32.mxu1 %v13753_v55  ;;  %v13998_v26 = vld [vmem:[#allocation32_spill] sm:$0xff] }
 0x152   :  { %9667 = vmatprep.subr.bf16.mxu1 %v9666_v51  ;;  %v14000_v51 = vand.u32 4294901760, %v11673_v58  ;;  %v14009_v58 = vand.u32 4294901760, %v11679_v38  ;;  %v14015_v38 = vand.u32 4294901760, %v11709_v29  ;;  %v14019_v29 = vand.u32 4294901760, %v11722_v23 }
 0x153   :  { %9765 = vmatpush1.bf16.msra.mxu0 %v9764_v21  ;;  %v14026_v23 = vand.u32 4294901760, %v11743_v35  ;;  %v120_v35 = vld [vmem:[#allocation7 + $0x218] sm:$0xff] }
 0x154   :  { %9767 = vmatprep.subr.bf16.mxu0 %v9766_v43  ;;  %v9790_v21 = vpack.c.bf16 %v14000_v51, %v13999_v53  ;;  %v14002_v43 = vand.u32 4294901760, %v11665_v50  ;;  %v9696_v53 = vpack.c.bf16 %v14009_v58, %v14008_v5  ;;  %v14010_v50 = vand.u32 4294901760, %v11695_v62 }
 0x155   :  { %9669 = vmatpush1.bf16.msra.mxu1 %v9668_v63  ;;  %v14001_v63 = vld [vmem:[#allocation29_spill] sm:$0xff]  ;;  %v14016_v62 = vand.u32 4294901760, %v13955_v61  ;;  %v14020_v61 = vand.u32 4294901760, %v11728_v57  ;;  %v118_v57 = vld [vmem:[#allocation7 + $0x208] sm:$0xff] }
 0x156   :  { %9671 = vmatprep.subr.bf16.mxu1 %v9670_v34  ;;  %v14003_v34 = vand.u32 4294901760, %v11667_v32  ;;  %v14011_v32 = vand.u32 4294901760, %v11697_v7 }
 0x157   :  { %9769 = vmatpush1.bf16.msra.mxu0 %v9768_v54  ;;  %v9796_v5 = vpack.c.bf16 %v14016_v62, %v14015_v38  ;;  %v9798_v38 = vpack.c.bf16 %v14020_v61, %v14019_v29  ;;  %v145_v29 = vld [vmem:[#allocation7 + $0x2e0] sm:$0xff]  ;;  %v14031_v61 = vand.u32 4294901760, %v11777_v33 }
 0x158   :  { %v11989_v49 = vpop.eup %10514  ;;  %9771 = vmatprep.subr.bf16.mxu0 %v9770_v11  ;;  %v9694_v54 = vpack.c.bf16 %v14003_v34, %v14002_v43  ;;  %v14005_v11 = vand.u32 4294901760, %v11683_v48  ;;  %v9794_v51 = vpack.c.bf16 %v14011_v32, %v14010_v50  ;;  %v93_v43 = vld [vmem:[#allocation7 + $0x140] sm:$0xff]  ;;  %v70_v34 = vld [vmem:[#allocation7 + $0x88] sm:$0xff]  ;;  %v95_v48 = vld [vmem:[#allocation7 + $0x150] sm:$0xff] }
 0x159   :  { %13982 = vst [vmem:[#allocation20_spill] sm:$0xff] %v11989_v49  ;;  %v11993_v36 = vpop.eup %10516  ;;  %9673 = vmatpush1.bf16.msra.mxu1 %v9672_v1  ;;  %v14004_v1 = vld [vmem:[#allocation37_spill] sm:$0xff]  ;;  %v4790_v58 = vand.u32 4294901760, %v93_v43  ;;  %v5437_v50 = vand.u32 4294901760, %v95_v48  ;;  %v94_v32 = vld [vmem:[#allocation7 + $0x148] sm:$0xff] }
 0x15a   :  { %13983 = vst [vmem:[#allocation23_spill] sm:$0xff] %v11993_v36  ;;  %9675 = vmatprep.subr.bf16.mxu1 %v9674_v10  ;;  %v14006_v10 = vand.u32 4294901760, %v11685_v47  ;;  %v14012_v47 = vand.u32 4294901760, %v11689_v41  ;;  %v69_v41 = vld [vmem:[#allocation7 + $0x80] sm:$0xff]  ;;  %v14022_v36 = vand.u32 4294901760, %v11720_v12 }
 0x15b   :  { %9773 = vmatpush1.bf16.msra.mxu0 %v9772_v59 }
 0x15c   :  { %9775 = vmatprep.subr.bf16.mxu0 %v13985_v56  ;;  %v9792_v59 = vpack.c.bf16 %v14006_v10, %v14005_v11  ;;  %v14013_v11 = vand.u32 4294901760, %v11691_v3  ;;  %v14017_v3 = vand.u32 4294901760, %v13979_v31  ;;  %v14024_v31 = vand.u32 4294901760, %v11737_v6 }
 0x15d   :  { %9677 = vmatpush1.bf16.msra.mxu1 %v9676_v18  ;;  %v68_v18 = vld [vmem:[#allocation7 + $0x78] sm:$0xff] }
 0x15e   :  { %9679 = vmatprep.subr.bf16.mxu1 %v13986_v16  ;;  %4482 = vmatmul.mubr.f32.vlgmr.msra.gmra.mrb[6].mxu0 %v13987_v2  ;;  %v9698_v10 = vpack.c.bf16 %v14013_v11, %v14012_v47  ;;  %v4786_v7 = vand.u32 4294901760, %v68_v18  ;;  %v14018_v47 = vand.u32 4294901760, %v13980_v37  ;;  %v14025_v37 = vand.u32 4294901760, %v11741_v4 }
 0x15f   :  { %9777 = vmatpush1.bf16.msra.mxu0 %v13988_v45  ;;  %4568 = vmatprep.mubr.f32.mxu0 %v13753_v55  ;;  %v5435_v4 = vand.u32 4294901760, %v69_v41 }
 0x160   :  { %3835 = vmatmul.mubr.f32.vlgmr.msra.gmra.mrb[6].mxu1 %v13987_v2  ;;  %9779 = vmatprep.subr.bf16.mxu0 %v13990_v44  ;;  %v92_v2 = vld [vmem:[#allocation7 + $0x138] sm:$0xff]  ;;  %v9700_v11 = vpack.c.bf16 %v14018_v47, %v14017_v3  ;;  %v9800_v3 = vpack.c.bf16 %v14026_v23, %v14025_v37  ;;  %v143_v47 = vld [vmem:[#allocation7 + $0x2d0] sm:$0xff]  ;;  %v12087_v37 = vpack.c.bf16 %v4790_v58, %v4786_v7 }
 0x161   :  { %9681 = vmatpush1.bf16.msra.mxu1 %v13989_v0  ;;  %3921 = vmatprep.mubr.f32.mxu1 %v13753_v55  ;;  %v12091_v23 = vsub.f32 %v68_v18, %v4786_v7  ;;  %v4798_v33 = vand.u32 4294901760, %v143_v47  ;;  %v119_v7 = vld [vmem:[#allocation7 + $0x210] sm:$0xff] }
 0x162   :  { %9683 = vmatprep.subr.bf16.mxu1 %v13991_v39  ;;  %14035 = vst [vmem:[#allocation33_spill] sm:$0xff] %v12087_v37  ;;  %v243_v37 = vld [vmem:[#allocation7 + $0x5f0] sm:$0xff] }
 0x163   :  { %9781 = vmatpush1.bf16.msra.mxu0 %v13992_v46 }
 0x164   :  { %9783 = vmatprep.subr.bf16.mxu0 %v13994_v13 }
 0x165   :  { %9685 = vmatpush1.bf16.msra.mxu1 %v13993_v19 }
 0x166   :  { %9687 = vmatprep.subr.bf16.mxu1 %v13995_v40 }
 0x167   :  { %9785 = vmatpush1.bf16.msra.mxu0 %v13996_v20 }
 0x168   :  { %9787 = vmatprep.subr.bf16.mxu0 %v13998_v26 }
 0x169   :  { %9689 = vmatpush1.bf16.msra.mxu1 %v13997_v22 }
 0x16a   :  { %9691 = vmatprep.subr.bf16.mxu1 %v14001_v63 }
 0x16b   :  { %9789 = vmatpush1.bf16.msra.mxu0 %v14004_v1 }
 0x16c   :  { %9791 = vmatprep.subr.bf16.mxu0 %v9790_v21  ;;  %v67_v21 = vld [vmem:[#allocation7 + $0x70] sm:$0xff] }
 0x16d   :  { %9693 = vmatpush1.bf16.msra.mxu1 %v14007_v17  ;;  %v4788_v62 = vand.u32 4294901760, %v67_v21 }
 0x16e   :  { %9695 = vmatprep.subr.bf16.mxu1 %v9694_v54  ;;  %4572 = vmatmul.mubr.f32.vlgmr.msra.gmra.mrb[6].mxu0 %v14014_v24  ;;  %v5433_v54 = vand.u32 4294901760, %v70_v34 }
 0x16f   :  { %9793 = vmatpush1.bf16.msra.mxu0 %v9792_v59  ;;  %v4792_v59 = vand.u32 4294901760, %v92_v2  ;;  %4690 = vmatprep.mubr.f32.mxu0 %v13753_v55 }
 0x170   :  { %3925 = vmatmul.mubr.f32.vlgmr.msra.gmra.mrb[6].mxu1 %v14014_v24  ;;  %9795 = vmatprep.subr.bf16.mxu0 %v9794_v51  ;;  %v14021_v24 = vand.u32 4294901760, %v13957_v15  ;;  %v14028_v15 = vand.u32 4294901760, %v13981_v60  ;;  %v14033_v60 = vand.u32 4294901760, %v11815_v8  ;;  %v12097_v8 = vsub.f32 %v70_v34, %v5433_v54 }
 0x171   :  { %9697 = vmatpush1.bf16.msra.mxu1 %v9696_v53  ;;  %v14023_v53 = vand.u32 4294901760, %v11734_v52  ;;  %4043 = vmatprep.mubr.f32.mxu1 %v13753_v55  ;;  %v14030_v52 = vand.u32 4294901760, %v11767_v28  ;;  %v12089_v28 = vpack.c.bf16 %v5437_v50, %v5433_v54  ;;  %v170_v54 = vld [vmem:[#allocation7 + $0x3a8] sm:$0xff] }
 0x172   :  { %9699 = vmatprep.subr.bf16.mxu1 %v9698_v10  ;;  %v9702_v49 = vpack.c.bf16 %v14022_v36, %v14021_v24  ;;  %v14027_v10 = vand.u32 4294901760, %v11746_v25  ;;  %v14029_v36 = vand.u32 4294901760, %v11759_v42  ;;  %v5439_v24 = vand.u32 4294901760, %v94_v32 }
 0x173   :  { %v9704_v51 = vpack.c.bf16 %v14024_v31, %v14023_v53  ;;  %9797 = vmatpush1.bf16.msra.mxu0 %v9796_v5  ;;  %v14032_v53 = vand.u32 4294901760, %v13984_v9  ;;  %v14034_v31 = vand.u32 4294901760, %v11817_v14  ;;  %14036 = vst [vmem:[#allocation35_spill] sm:$0xff] %v12089_v28  ;;  %v4794_v5 = vand.u32 4294901760, %v118_v57  ;;  %v142_v9 = vld [vmem:[#allocation7 + $0x2c8] sm:$0xff] }
 0x174   :  { %v9706_v12 = vpack.c.bf16 %v14028_v15, %v14027_v10  ;;  %v9802_v6 = vpack.c.bf16 %v14030_v52, %v14029_v36  ;;  %9799 = vmatprep.subr.bf16.mxu0 %v9798_v38  ;;  %v12093_v10 = vpack.c.bf16 %v4792_v59, %v4788_v62  ;;  %v117_v15 = vld [vmem:[#allocation7 + $0x200] sm:$0xff]  ;;  %v12095_v36 = vsub.f32 %v93_v43, %v4790_v58  ;;  %v144_v38 = vld [vmem:[#allocation7 + $0x2d8] sm:$0xff] }
 0x175   :  { %v9708_v25 = vpack.c.bf16 %v14032_v53, %v14031_v61  ;;  %v9804_v42 = vpack.c.bf16 %v14034_v31, %v14033_v60  ;;  %9701 = vmatpush1.bf16.msra.mxu1 %v9700_v11  ;;  %v5441_v14 = vand.u32 4294901760, %v120_v35  ;;  %v5445_v52 = vand.u32 4294901760, %v145_v29  ;;  %v168_v60 = vld [vmem:[#allocation7 + $0x398] sm:$0xff]  ;;  %v193_v58 = vld [vmem:[#allocation7 + $0x460] sm:$0xff] }
 0x176   :  { %14037 = vst [vmem:[#allocation22_spill] sm:$0xff] %v12093_v10  ;;  %9703 = vmatprep.subr.bf16.mxu1 %v9702_v49  ;;  %v12099_v61 = vsub.f32 %v95_v48, %v5437_v50  ;;  %v12101_v53 = vsub.f32 %v67_v21, %v4788_v62  ;;  %v12103_v11 = vsub.f32 %v92_v2, %v4792_v59  ;;  %v4796_v43 = vand.u32 4294901760, %v117_v15  ;;  %v195_v48 = vld [vmem:[#allocation7 + $0x470] sm:$0xff]  ;;  %v192_v59 = vld [vmem:[#allocation7 + $0x458] sm:$0xff] }
 0x177   :  { %v12105_v18 = vpack.c.bf16 %v5439_v24, %v5435_v4  ;;  %9801 = vmatpush1.bf16.msra.mxu0 %v9800_v3  ;;  %v12107_v31 = vsub.f32 %v69_v41, %v5435_v4  ;;  %v12109_v49 = vsub.f32 %v94_v32, %v5439_v24  ;;  %v4800_v34 = vand.u32 4294901760, %v142_v9  ;;  %v167_v62 = vld [vmem:[#allocation7 + $0x390] sm:$0xff]  ;;  %v169_v24 = vld [vmem:[#allocation7 + $0x3a0] sm:$0xff] }
 0x178   :  { %9803 = vmatprep.subr.bf16.mxu0 %v9802_v6  ;;  %v12111_v21 = vpack.c.bf16 %v4798_v33, %v4794_v5  ;;  %v12113_v2 = vsub.f32 %v118_v57, %v4794_v5  ;;  %v12115_v50 = vsub.f32 %v143_v47, %v4798_v33  ;;  %v12117_v41 = vpack.c.bf16 %v5445_v52, %v5441_v14 }
 0x179   :  { %14038 = vst [vmem:[#allocation25_spill] sm:$0xff] %v12105_v18  ;;  %9705 = vmatpush1.bf16.msra.mxu1 %v9704_v51  ;;  %v12119_v32 = vsub.f32 %v120_v35, %v5441_v14  ;;  %v5443_v3 = vand.u32 4294901760, %v119_v7  ;;  %v5447_v4 = vand.u32 4294901760, %v144_v38  ;;  %v4802_v10 = vand.u32 4294901760, %v168_v60 }
 0x17a   :  { %14039 = vst [vmem:[#allocation19_spill] sm:$0xff] %v12111_v21  ;;  %14040 = vst [vmem:[#allocation26_spill] sm:$0xff] %v12113_v2  ;;  %9707 = vmatprep.subr.bf16.mxu1 %v9706_v12  ;;  %v4806_v51 = vand.u32 4294901760, %v193_v58  ;;  %v5449_v6 = vand.u32 4294901760, %v170_v54  ;;  %v5453_v18 = vand.u32 4294901760, %v195_v48  ;;  %v12121_v57 = vsub.f32 %v145_v29, %v5445_v52 }
 0x17b   :  { %14041 = vst [vmem:[#allocation21_spill] sm:$0xff] %v12115_v50  ;;  %14042 = vst [vmem:[#allocation34_spill] sm:$0xff] %v12117_v41  ;;  %9805 = vmatpush1.bf16.msra.mxu0 %v9804_v42  ;;  %v12123_v47 = vpack.c.bf16 %v4800_v34, %v4796_v43  ;;  %v4804_v5 = vand.u32 4294901760, %v167_v62  ;;  %v4808_v33 = vand.u32 4294901760, %v192_v59  ;;  %v12126_v12 = vsub.f32 %v117_v15, %v4796_v43  ;;  %v218_v41 = vld [vmem:[#allocation7 + $0x528] sm:$0xff]  ;;  %v220_v43 = vld [vmem:[#allocation7 + $0x538] sm:$0xff] }
 0x17c   :  { %14043 = vst [vmem:[#allocation17_spill] sm:$0xff] %v12121_v57  ;;  %9807 = vmatprep.subr.bf16.mxu0 %v13985_v56  ;;  %v12128_v35 = vsub.f32 %v142_v9, %v4800_v34  ;;  %v5451_v14 = vand.u32 4294901760, %v169_v24  ;;  %v5455_v21 = vand.u32 4294901760, %v194_v27  ;;  %v12131_v42 = vpack.c.bf16 %v5447_v4, %v5443_v3 }
 0x17d   :  { %14044 = vst [vmem:[#allocation24_spill] sm:$0xff] %v12123_v47  ;;  %9709 = vmatpush1.bf16.msra.mxu1 %v9708_v25  ;;  %14045 = vst [vmem:[#allocation30_spill] sm:$0xff] %v12126_v12  ;;  %v12133_v29 = vsub.f32 %v119_v7, %v5443_v3  ;;  %v12135_v52 = vsub.f32 %v144_v38, %v5447_v4  ;;  %v12137_v47 = vsub.f32 %v168_v60, %v4802_v10  ;;  %v242_v3 = vld [vmem:[#allocation7 + $0x5e8] sm:$0xff] }
 0x17e   :  { %9711 = vmatprep.subr.bf16.mxu1 %v13986_v16  ;;  %14046 = vst [vmem:[#allocation16_spill] sm:$0xff] %v12131_v42  ;;  %4692 = vmatmul.mubr.f32.vlgmr.msra.gmra.mrb[6].mxu0 %v13978_v30  ;;  %v12140_v56 = vpack.c.bf16 %v4806_v51, %v4802_v10  ;;  %v12142_v25 = vsub.f32 %v193_v58, %v4806_v51  ;;  %v245_v16 = vld [vmem:[#allocation7 + $0x600] sm:$0xff]  ;;  %v4810_v60 = vand.u32 4294901760, %v218_v41  ;;  %v4814_v34 = vand.u32 4294901760, %v243_v37  ;;  %v219_v51 = vld [vmem:[#allocation7 + $0x530] sm:$0xff] }
 0x17f   :  { %v12144_v15 = vpack.c.bf16 %v5453_v18, %v5449_v6  ;;  %v12146_v9 = vsub.f32 %v170_v54, %v5449_v6  ;;  %9809 = vmatpush1.bf16.msra.mxu0 %v13988_v45  ;;  %v12150_v7 = vsub.f32 %v195_v48, %v5453_v18  ;;  %v12152_v38 = vpack.c.bf16 %v4808_v33, %v4804_v5  ;;  %v217_v10 = vld [vmem:[#allocation7 + $0x520] sm:$0xff] }
 0x180   :  { %14047 = vst [vmem:[#allocation31_spill] sm:$0xff] %v12140_v56  ;;  %4045 = vmatmul.mubr.f32.vlgmr.msra.gmra.mrb[6].mxu1 %v13978_v30  ;;  %9811 = vmatprep.subr.bf16.mxu0 %v13990_v44  ;;  %v12156_v58 = vsub.f32 %v167_v62, %v4804_v5  ;;  %v12158_v54 = vsub.f32 %v192_v59, %v4808_v33  ;;  %v5457_v45 = vand.u32 4294901760, %v220_v43  ;;  %v5461_v18 = vand.u32 4294901760, %v245_v16 }
 0x181   :  { %14048 = vst [vmem:[#allocation27_spill] sm:$0xff] %v12144_v15  ;;  %14049 = vst [vmem:[#allocation32_spill] sm:$0xff] %v12152_v38  ;;  %9713 = vmatpush1.bf16.msra.mxu1 %v13989_v0  ;;  %v12160_v4 = vpack.c.bf16 %v5455_v21, %v5451_v14  ;;  %4131 = vmatprep.mubr.f32.mxu1 %v13753_v55  ;;  %v12167_v0 = vsub.f32 %v169_v24, %v5451_v14  ;;  %v4812_v62 = vand.u32 4294901760, %v217_v10 }
 0x182   :  { %9715 = vmatprep.subr.bf16.mxu1 %v13991_v39  ;;  %4778 = vmatprep.mubr.f32.mxu0 %v13753_v55  ;;  %v12169_v44 = vsub.f32 %v194_v27, %v5455_v21  ;;  %v4816_v59 = vand.u32 4294901760, %v242_v3  ;;  %v12172_v5 = vpack.c.bf16 %v4814_v34, %v4810_v60  ;;  %v244_v39 = vld [vmem:[#allocation7 + $0x5f8] sm:$0xff]  ;;  %v5459_v33 = vand.u32 4294901760, %v219_v51 }
 0x183   :  { %14050 = vst [vmem:[#allocation29_spill] sm:$0xff] %v12160_v4  ;;  %9813 = vmatpush1.bf16.msra.mxu0 %v13992_v46  ;;  %v13597_v38 = vand.u32 4294901760, %v12097_v8  ;;  %v12178_v24 = vsub.f32 %v218_v41, %v4810_v60  ;;  %v12180_v27 = vsub.f32 %v243_v37, %v4814_v34  ;;  %v13596_v21 = vand.u32 4294901760, %v12101_v53 }
 0x184   :  { %14051 = vst [vmem:[#allocation37_spill] sm:$0xff] %v12172_v5  ;;  %9815 = vmatprep.subr.bf16.mxu0 %v13994_v13  ;;  %v12185_v14 = vpack.c.bf16 %v5461_v18, %v5457_v45  ;;  %v12187_v6 = vsub.f32 %v220_v43, %v5457_v45  ;;  %v14053_v48 = vand.u32 4294901760, %v12091_v23  ;;  %v14054_v13 = vand.u32 4294901760, %v12095_v36 }
 0x185   :  { %9717 = vmatpush1.bf16.msra.mxu1 %v13993_v19  ;;  %v12195_v37 = vsub.f32 %v245_v16, %v5461_v18  ;;  %v12197_v60 = vpack.c.bf16 %v4816_v59, %v4812_v62  ;;  %v12199_v34 = vsub.f32 %v217_v10, %v4812_v62  ;;  %v5463_v46 = vand.u32 4294901760, %v244_v39 }
 0x186   :  { %9719 = vmatprep.subr.bf16.mxu1 %v13995_v40  ;;  %14052 = vst [vmem:[#allocation36_spill] sm:$0xff] %v12185_v14  ;;  %v4881_v19 = vsub.f32 %v12091_v23, %v14053_v48  ;;  %v4893_v41 = vsub.f32 %v12095_v36, %v14054_v13  ;;  %v12202_v40 = vsub.f32 %v242_v3, %v4816_v59  ;;  %v14057_v48 = vand.u32 4294901760, %v12099_v61 }
 0x187   :  { %14055 = vst [vmem:[#allocation40_spill] sm:$0xff] %v12197_v60  ;;  %14056 = vst [vmem:[#allocation41_spill] sm:$0xff] %v12199_v34  ;;  %9817 = vmatpush1.bf16.msra.mxu0 %v13996_v20  ;;  %v12204_v43 = vsub.f32 %v219_v51, %v5459_v33  ;;  %v5528_v45 = vsub.f32 %v12097_v8, %v13597_v38  ;;  %v4887_v20 = vsub.f32 %v12101_v53, %v13596_v21 }
 0x188   :  { %v5540_v16 = vsub.f32 %v12099_v61, %v14057_v48  ;;  %9819 = vmatprep.subr.bf16.mxu0 %v13998_v26  ;;  %v14058_v10 = vand.u32 4294901760, %v12103_v11  ;;  %v13600_v51 = vand.u32 4294901760, %v12107_v31  ;;  %v4882_v62 = vand.u32 4294901760, %v4881_v19 }
 0x189   :  { %9721 = vmatpush1.bf16.msra.mxu1 %v13997_v22  ;;  %v4894_v59 = vand.u32 4294901760, %v4893_v41  ;;  %v13598_v22 = vand.u32 4294901760, %v12113_v2  ;;  %v13599_v26 = vand.u32 4294901760, %v12115_v50  ;;  %v12225_v13 = vpack.c.bf16 %v5463_v46, %v5459_v33 }
 0x18a   :  { %v4899_v3 = vsub.f32 %v12103_v11, %v14058_v10  ;;  %9723 = vmatprep.subr.bf16.mxu1 %v14001_v63  ;;  %v12227_v48 = vsub.f32 %v244_v39, %v5463_v46  ;;  %v13603_v21 = vand.u32 4294901760, %v12119_v32  ;;  %v13606_v10 = vand.u32 4294901760, %v12121_v57  ;;  %v14062_v63 = vld [vmem:[#allocation38_spill] sm:$0xff] }
 0x18b   :  { %14059 = vst [vmem:[#allocation42_spill] sm:$0xff] %v12225_v13  ;;  %9821 = vmatpush1.bf16.msra.mxu0 %v14004_v1  ;;  %v5529_v38 = vand.u32 4294901760, %v5528_v45  ;;  %v5541_v18 = vand.u32 4294901760, %v5540_v16  ;;  %v4888_v33 = vand.u32 4294901760, %v4887_v20  ;;  %v5534_v39 = vsub.f32 %v12107_v31, %v13600_v51  ;;  %v14061_v45 = vld [vmem:[#allocation33_spill] sm:$0xff] }
 0x18c   :  { %9919 = vmatprep.subr.bf16.mxu0 %v12089_v28  ;;  %v4900_v41 = vand.u32 4294901760, %v4899_v3  ;;  %v14060_v46 = vand.u32 4294901760, %v12109_v49  ;;  %v12243_v16 = vpack.c.bf16 %v4894_v59, %v4882_v62  ;;  %v12246_v19 = vsub.s32 2, %v14062_v63 }
 0x18d   :  { %9725 = vmatpush1.bf16.msra.mxu1 %v14007_v17  ;;  %v4905_v17 = vsub.f32 %v12113_v2, %v13598_v22  ;;  %v4917_v20 = vsub.f32 %v12115_v50, %v13599_v26  ;;  %v12256_v3 = vsub.s32 4, %v14062_v63  ;;  %v5552_v62 = vsub.f32 %v12119_v32, %v13603_v21  ;;  %v14065_v22 = vld [vmem:[#allocation25_spill] sm:$0xff]  ;;  %v14071_v2 = vld [vmem:[#allocation19_spill] sm:$0xff] }
 0x18e   :  { %v5546_v1 = vsub.f32 %v12109_v49, %v14060_v46  ;;  %9823 = vmatprep.subr.bf16.mxu1 %v14061_v45  ;;  %14063 = vst [vmem:[#allocation43_spill] sm:$0xff] %v12246_v19  ;;  %4780 = vmatmul.mubr.f32.vlgmr.msra.gmra.mrb[6].mxu0 %v13978_v30  ;;  %v5564_v59 = vsub.f32 %v12121_v57, %v13606_v10  ;;  %v12270_v51 = vsub.s32 3, %v14062_v63  ;;  %v14067_v45 = vand.u32 4294901760, %v12126_v12  ;;  %v14069_v10 = vld [vmem:[#allocation22_spill] sm:$0xff] }
 0x18f   :  { %14064 = vst [vmem:[#allocation44_spill] sm:$0xff] %v12256_v3  ;;  %9921 = vmatpush1.bf16.msra.mxu0 %v14065_v22  ;;  %v12267_v26 = vpack.c.bf16 %v5541_v18, %v5529_v38  ;;  %v14068_v21 = vand.u32 4294901760, %v12128_v35  ;;  %v14070_v46 = vld [vmem:[#allocation34_spill] sm:$0xff]  ;;  %v5535_v22 = vand.u32 4294901760, %v5534_v39  ;;  %v12288_v57 = vsub.s32 5, %v14062_v63  ;;  %5513 = vmatprep.mubr.f32.mxu0 %v13753_v55 }
 0x190   :  { %4133 = vmatmul.mubr.f32.vlgmr.msra.gmra.mrb[6].mxu1 %v13978_v30  ;;  %14066 = vst [vmem:[#allocation45_spill] sm:$0xff] %v12270_v51  ;;  %v4911_v28 = vsub.f32 %v12126_v12, %v14067_v45  ;;  %9923 = vmatprep.subr.bf16.mxu0 %v14070_v46  ;;  %v12280_v30 = vpack.c.bf16 %v4900_v41, %v4888_v33  ;;  %v5547_v38 = vand.u32 4294901760, %v5546_v1  ;;  %v14072_v45 = vld [vmem:[#allocation39_spill] sm:$0xff]  ;;  %v5553_v41 = vand.u32 4294901760, %v5552_v62 }
 0x191   :  { %v4923_v50 = vsub.f32 %v12128_v35, %v14068_v21  ;;  %9825 = vmatpush1.bf16.msra.mxu1 %v14069_v10  ;;  %4866 = vmatprep.mubr.f32.mxu1 %v13753_v55  ;;  %14073 = vst [vmem:[#allocation39_spill] sm:$0xff] %v12288_v57  ;;  %v4906_v21 = vand.u32 4294901760, %v4905_v17  ;;  %v4918_v10 = vand.u32 4294901760, %v4917_v20  ;;  %v5565_v39 = vand.u32 4294901760, %v5564_v59  ;;  %v14075_v20 = vld [vmem:[#allocation24_spill] sm:$0xff] }
 0x192   :  { %9827 = vmatprep.subr.bf16.mxu1 %v14071_v2  ;;  %v14074_v1 = vand.u32 4294901760, %v12133_v29  ;;  %v4912_v12 = vand.u32 4294901760, %v4911_v28  ;;  %v9936_v33 = vpack.c.bf16 %v5547_v38, %v5535_v22  ;;  %v14076_v59 = vand.u32 4294901760, %v12135_v52 }
 0x193   :  { %9925 = vmatpush1.bf16.msra.mxu0 %v12131_v42  ;;  %v4924_v2 = vand.u32 4294901760, %v4923_v50  ;;  %v9842_v50 = vpack.c.bf16 %v4918_v10, %v4906_v21  ;;  %v13622_v17 = vand.u32 4294901760, %v12142_v25  ;;  %v13623_v46 = vand.u32 4294901760, %v12156_v58 }
 0x194   :  { %v12296_v18 = vsub.f32 %v12133_v29, %v14074_v1  ;;  %9927 = vmatprep.subr.bf16.mxu0 %v12144_v15  ;;  %v5570_v1 = vsub.f32 %v12135_v52, %v14076_v59  ;;  %v9938_v22 = vpack.c.bf16 %v5565_v39, %v5553_v41  ;;  %v14077_v28 = vand.u32 4294901760, %v12137_v47  ;;  %v14079_v39 = vld [vmem:[#allocation32_spill] sm:$0xff] }
 0x195   :  { %9829 = vmatpush1.bf16.msra.mxu1 %v14075_v20  ;;  %v12318_v59 = vpack.c.bf16 %v4924_v2, %v4912_v12  ;;  %v14078_v21 = vand.u32 4294901760, %v12146_v9  ;;  %v14080_v15 = vand.u32 4294901760, %v12150_v7 }
 0x196   :  { %9831 = vmatprep.subr.bf16.mxu1 %v12140_v56  ;;  %v5559_v42 = vand.u32 4294901760, %v12296_v18  ;;  %v4929_v10 = vsub.f32 %v12137_v47, %v14077_v28  ;;  %v5571_v62 = vand.u32 4294901760, %v5570_v1  ;;  %v4941_v28 = vsub.f32 %v12142_v25, %v13622_v17 }
 0x197   :  { %9929 = vmatpush1.bf16.msra.mxu0 %v12160_v4  ;;  %v5576_v41 = vsub.f32 %v12146_v9, %v14078_v21  ;;  %v5588_v2 = vsub.f32 %v12150_v7, %v14080_v15  ;;  %v4935_v21 = vsub.f32 %v12156_v58, %v13623_v46  ;;  %v14081_v15 = vand.u32 4294901760, %v12158_v54 }
 0x198   :  { %9931 = vmatprep.subr.bf16.mxu0 %v12185_v14  ;;  %v14082_v18 = vand.u32 4294901760, %v12167_v0  ;;  %v14083_v14 = vand.u32 4294901760, %v12169_v44  ;;  %v4930_v46 = vand.u32 4294901760, %v4929_v10  ;;  %v14086_v4 = vand.u32 4294901760, %v12178_v24 }
 0x199   :  { %9833 = vmatpush1.bf16.msra.mxu1 %v14079_v39  ;;  %v4947_v12 = vsub.f32 %v12158_v54, %v14081_v15  ;;  %v5577_v1 = vand.u32 4294901760, %v5576_v41  ;;  %v5589_v15 = vand.u32 4294901760, %v5588_v2  ;;  %v4942_v41 = vand.u32 4294901760, %v4941_v28 }
 0x19a   :  { %9835 = vmatprep.subr.bf16.mxu1 %v12172_v5  ;;  %v5582_v5 = vsub.f32 %v12167_v0, %v14082_v18  ;;  %v5594_v17 = vsub.f32 %v12169_v44, %v14083_v14  ;;  %v14084_v18 = vand.u32 4294901760, %v12187_v6  ;;  %v14085_v14 = vand.u32 4294901760, %v12195_v37 }
 0x19b   :  { %9933 = vmatpush1.bf16.msra.mxu0 %v12225_v13  ;;  %v4936_v38 = vand.u32 4294901760, %v4935_v21  ;;  %v14088_v13 = vld [vmem:[#allocation15_spill] sm:$0xff]  ;;  %v14090_v28 = vand.u32 4294901760, %v12204_v43  ;;  %v14091_v21 = vand.u32 4294901760, %v12227_v48 }
 0x19c   :  { %9935 = vmatprep.subr.bf16.mxu0 %v12267_v26  ;;  %v5600_v56 = vsub.f32 %v12187_v6, %v14084_v18  ;;  %v5612_v39 = vsub.f32 %v12195_v37, %v14085_v14  ;;  %v14087_v26 = vand.u32 4294901760, %v12180_v27  ;;  %v4948_v18 = vand.u32 4294901760, %v4947_v12 }
 0x19d   :  { %9837 = vmatpush1.bf16.msra.mxu1 %v12197_v60  ;;  %v4953_v60 = vsub.f32 %v12178_v24, %v14086_v4  ;;  %v5583_v20 = vand.u32 4294901760, %v5582_v5  ;;  %v5595_v63 = vand.u32 4294901760, %v5594_v17  ;;  %v14089_v14 = vand.u32 4294901760, %v12199_v34 }
 0x19e   :  { %9839 = vmatprep.subr.bf16.mxu1 %v12243_v16  ;;  %v4965_v2 = vsub.f32 %v12180_v27, %v14087_v26  ;;  %5519 = vmatmul.mubr.f32.vlgmr.msra.gmra.mrb[8].mxu0 %v14088_v13  ;;  %v9940_v16 = vpack.c.bf16 %v5571_v62, %v5559_v42  ;;  %v5606_v4 = vsub.f32 %v12204_v43, %v14090_v28  ;;  %v5601_v17 = vand.u32 4294901760, %v5600_v56 }
 0x19f   :  { %v4959_v10 = vsub.f32 %v12199_v34, %v14089_v14  ;;  %9937 = vmatpush1.bf16.msra.mxu0 %v9936_v33  ;;  %v5618_v26 = vsub.f32 %v12227_v48, %v14091_v21  ;;  %v9942_v5 = vpack.c.bf16 %v5589_v15, %v5577_v1  ;;  %v5613_v12 = vand.u32 4294901760, %v5612_v39  ;;  %5669 = vmatprep.mubr.f32.mxu0 %v13753_v55 }
 0x1a0   :  { %4872 = vmatmul.mubr.f32.vlgmr.msra.gmra.mrb[8].mxu1 %v14088_v13  ;;  %9939 = vmatprep.subr.bf16.mxu0 %v9938_v22  ;;  %v14092_v14 = vand.u32 4294901760, %v12202_v40  ;;  %v9846_v42 = vpack.c.bf16 %v4942_v41, %v4930_v46  ;;  %v4954_v62 = vand.u32 4294901760, %v4953_v60  ;;  %v4966_v34 = vand.u32 4294901760, %v4965_v2 }
 0x1a1   :  { %9841 = vmatpush1.bf16.msra.mxu1 %v12280_v30  ;;  %v2193_v33 = vpop.f32.mrb[2].mxu0  ;;  %5022 = vmatprep.mubr.f32.mxu1 %v13753_v55  ;;  %v14093_v21 = vrot.slane %v14072_v45, %v12256_v3  ;;  %v9848_v1 = vpack.c.bf16 %v4948_v18, %v4936_v38  ;;  %v9944_v56 = vpack.c.bf16 %v5595_v63, %v5583_v20  ;;  %v4960_v39 = vand.u32 4294901760, %v4959_v10 }
 0x1a2   :  { %v4971_v13 = vsub.f32 %v12202_v40, %v14092_v14  ;;  %9843 = vmatprep.subr.bf16.mxu1 %v9842_v50  ;;  %v2195_v22 = vpop.f32.mrb[3].mxu0  ;;  %v14094_v15 = vrot.slane %v14072_v45, %v12246_v19  ;;  %v14095_v60 = vrot.slane %v14072_v45, %v12288_v57  ;;  %v5607_v2 = vand.u32 4294901760, %v5606_v4  ;;  %v14132_v19 = vld [vmem:[#allocation40_spill] sm:$0xff] }
 0x1a3   :  { %v1546_v28 = vpop.f32.mrb[2].mxu1  ;;  %v8695_v30 = vsub.f32 %v2193_v33, %v14093_v21  ;;  %9941 = vmatpush1.bf16.msra.mxu0 %v9940_v16  ;;  %v5619_v14 = vand.u32 4294901760, %v5618_v26  ;;  %v14096_v38 = vrot.slane %v14072_v45, %v12270_v51  ;;  %v9946_v20 = vpack.c.bf16 %v5613_v12, %v5601_v17 }
 0x1a4   :  { %v8693_v50 = vsub.f32 %v1546_v28, %v14094_v15  ;;  %v1548_v46 = vpop.f32.mrb[3].mxu1  ;;  %v8696_v41 = vsub.f32 %v2195_v22, %v14095_v60  ;;  %9943 = vmatprep.subr.bf16.mxu0 %v9942_v5  ;;  %v4972_v10 = vand.u32 4294901760, %v4971_v13  ;;  %v9850_v28 = vpack.c.bf16 %v4966_v34, %v4954_v62 }
 0x1a5   :  { %v8720_v3 = vmul.f32 -12.005, %v8695_v30  ;;  %v8694_v63 = vsub.f32 %v1548_v46, %v14096_v38  ;;  %9845 = vmatpush1.bf16.msra.mxu1 %v12318_v59  ;;  %v9948_v4 = vpack.c.bf16 %v5619_v14, %v5607_v2  ;;  %v9950_v59 = vpack.c.bf16 %v12099_v61, %v12097_v8  ;;  %v14100_v46 = vld [vmem:[#allocation12_spill] sm:$0xff]  ;;  %v14101_v2 = vld [vmem:[#allocation30_spill] sm:$0xff] }
 0x1a6   :  { %v8718_v18 = vmul.f32 -12.005, %v8693_v50  ;;  %v8721_v33 = vmul.f32 -12.005, %v8696_v41  ;;  %9847 = vmatprep.subr.bf16.mxu1 %v9846_v42  ;;  %v9852_v45 = vpack.c.bf16 %v4972_v10, %v4960_v39  ;;  %v9854_v34 = vpack.c.bf16 %v12095_v36, %v12091_v23  ;;  %v14097_v42 = vld [vmem:[#allocation17_spill] sm:$0xff] }
 0x1a7   :  { %v8745_v21 = vmul.f32 %v8720_v3, %v8695_v30  ;;  %v8719_v15 = vmul.f32 -12.005, %v8694_v63  ;;  %9945 = vmatpush1.bf16.msra.mxu0 %v9944_v56  ;;  %v9952_v17 = vpack.c.bf16 %v12109_v49, %v12107_v31  ;;  %v9856_v12 = vpack.c.bf16 %v12103_v11, %v12101_v53  ;;  %v14098_v56 = vld [vmem:[#allocation26_spill] sm:$0xff]  ;;  %v14099_v39 = vld [vmem:[#allocation21_spill] sm:$0xff] }
 0x1a8   :  { %v8743_v22 = vmul.f32 %v8718_v18, %v8693_v50  ;;  %v8746_v16 = vmul.f32 %v8721_v33, %v8696_v41  ;;  %9947 = vmatprep.subr.bf16.mxu0 %v9946_v20  ;;  %v9954_v62 = vpack.c.bf16 %v14097_v42, %v12119_v32  ;;  %v10666_v30 = vmov 1983009808  }
 0x1a9   :  { %v8774_v26 = vmul.f32 1.442695, %v8745_v21  ;;  %v8744_v60 = vmul.f32 %v8719_v15, %v8694_v63  ;;  %9849 = vmatpush1.bf16.msra.mxu1 %v9848_v1  ;;  %v8844_v1 = vunpack.c.l.s4 %v10666_v30  ;;  %v9858_v50 = vpack.c.bf16 %v14099_v39, %v14098_v56  ;;  %v14103_v15 = vld [vmem:[#allocation38_spill] sm:$0xff] }
 0x1aa   :  { %v8770_v5 = vmul.f32 1.442695, %v8743_v22  ;;  %v8776_v13 = vmul.f32 1.442695, %v8746_v16  ;;  %9851 = vmatprep.subr.bf16.mxu1 %v9850_v28  ;;  %v9956_v41 = vpack.c.bf16 %v12135_v52, %v12133_v29  ;;  %v9860_v14 = vpack.c.bf16 %v12128_v35, %v14101_v2 }
 0x1ab   :  { %10518 = vpow2.f32 %v8774_v26  ;;  %v8772_v3 = vmul.f32 1.442695, %v8744_v60  ;;  %9949 = vmatpush1.bf16.msra.mxu0 %v9948_v4  ;;  %v9958_v38 = vpack.c.bf16 %v12150_v7, %v12146_v9  ;;  %v8845_v63 = vunpack.c.0.s8 %v8844_v1  ;;  %v14110_v1 = vld [vmem:[#allocation35_spill] sm:$0xff] }
 0x1ac   :  { %10520 = vpow2.f32 %v8770_v5  ;;  %9951 = vmatprep.subr.bf16.mxu0 %v9950_v59  ;;  %v9862_v20 = vpack.c.bf16 %v12142_v25, %v12137_v47  ;;  %v9960_v10 = vpack.c.bf16 %v12169_v44, %v12167_v0  ;;  %v9864_v33 = vpack.c.bf16 %v12158_v54, %v12156_v58  ;;  %v14106_v5 = vld [vmem:[#allocation41_spill] sm:$0xff] }
 0x1ad   :  { %10522 = vpow2.f32 %v8772_v3  ;;  %9853 = vmatpush1.bf16.msra.mxu1 %v9852_v45  ;;  %v9962_v28 = vpack.c.bf16 %v12195_v37, %v12187_v6  ;;  %v12435_v22 = vsub.s32 %v8845_v63, %v14103_v15  ;;  %v9866_v16 = vpack.c.bf16 %v12180_v27, %v12178_v24  ;;  %v14108_v3 = vld [vmem:[#allocation23_spill] sm:$0xff]  ;;  %v14115_v63 = vld [vmem:[#allocation34_spill] sm:$0xff] }
 0x1ae   :  { %10524 = vpow2.f32 %v8776_v13  ;;  %9855 = vmatprep.subr.bf16.mxu1 %v9854_v34  ;;  %5671 = vmatmul.mubr.f32.vlgmr.msra.gmra.mrb[8].mxu0 %v14100_v46  ;;  %v9964_v45 = vpack.c.bf16 %v12227_v48, %v12204_v43  ;;  %v9868_v13 = vpack.c.bf16 %v12202_v40, %v14106_v5  ;;  %v14107_v34 = vld [vmem:[#allocation20_spill] sm:$0xff]  ;;  %v14130_v59 = vand.u32 4294901760, %v12107_v31 }
 0x1af   :  { %9953 = vmatpush1.bf16.msra.mxu0 %v9952_v17  ;;  %5773 = vmatprep.mubr.f32.mxu0 %v13753_v55  ;;  %14104 = vst [vmem:[#allocation26_spill] sm:$0xff] %v12435_v22  ;;  %v14109_v17 = vcombine.low %v14107_v34, %v14108_v3  ;;  %v14126_v3 = vld [vmem:[#allocation37_spill] sm:$0xff]  ;;  %v14131_v57 = vand.u32 4294901760, %v12109_v49  ;;  %v14138_v31 = vand.u32 4294901760, %v14099_v39 }
 0x1b0   :  { %5024 = vmatmul.mubr.f32.vlgmr.msra.gmra.mrb[8].mxu1 %v14100_v46  ;;  %9955 = vmatprep.subr.bf16.mxu0 %v9954_v62 }
 0x1b1   :  { %9857 = vmatpush1.bf16.msra.mxu1 %v9856_v12  ;;  %5126 = vmatprep.mubr.f32.mxu1 %v13753_v55  ;;  %v8849_v12 = vrot.slane %v14109_v17, %v12435_v22  ;;  %v14127_v17 = vand.u32 4294901760, %v12091_v23  ;;  %v9984_v51 = vpack.c.bf16 %v14131_v57, %v14130_v59  ;;  %v14135_v23 = vand.u32 4294901760, %v12119_v32  ;;  %v72_v57 = vld [vmem:[#allocation7 + $0x98] sm:$0xff]  ;;  %v97_v59 = vld [vmem:[#allocation7 + $0x160] sm:$0xff] }
 0x1b2   :  { %9859 = vmatprep.subr.bf16.mxu1 %v9858_v50  ;;  %v14111_v50 = vld [vmem:[#allocation33_spill] sm:$0xff]  ;;  %v14141_v32 = vand.u32 4294901760, %v12128_v35 }
 0x1b3   :  { %9957 = vmatpush1.bf16.msra.mxu0 %v9956_v41  ;;  %v14112_v41 = vld [vmem:[#allocation13_spill] sm:$0xff] }
 0x1b4   :  { %9959 = vmatprep.subr.bf16.mxu0 %v9958_v38  ;;  %v14114_v38 = vld [vmem:[#allocation22_spill] sm:$0xff] }
 0x1b5   :  { %v12428_v18 = vpop.eup %10518  ;;  %9861 = vmatpush1.bf16.msra.mxu1 %v9860_v14  ;;  %v14113_v14 = vld [vmem:[#allocation25_spill] sm:$0xff] }
 0x1b6   :  { %14102 = vst [vmem:[#allocation17_spill] sm:$0xff] %v12428_v18  ;;  %v10521_v21 = vpop.eup %10520  ;;  %9863 = vmatprep.subr.bf16.mxu1 %v9862_v20  ;;  %v14116_v20 = vld [vmem:[#allocation19_spill] sm:$0xff] }
 0x1b7   :  { %v10523_v4 = vpop.eup %10522  ;;  %9961 = vmatpush1.bf16.msra.mxu0 %v9960_v10  ;;  %v14117_v10 = vld [vmem:[#allocation16_spill] sm:$0xff]  ;;  %v174_v18 = vld [vmem:[#allocation7 + $0x3c8] sm:$0xff] }
 0x1b8   :  { %v12439_v26 = vpop.eup %10524  ;;  %v8842_v60 = vcombine.low %v10521_v21, %v10523_v4  ;;  %9963 = vmatprep.subr.bf16.mxu0 %v9962_v28  ;;  %v14119_v28 = vld [vmem:[#allocation27_spill] sm:$0xff]  ;;  %v14122_v4 = vld [vmem:[#allocation32_spill] sm:$0xff] }
 0x1b9   :  { %14105 = vst [vmem:[#allocation21_spill] sm:$0xff] %v12439_v26  ;;  %9865 = vmatpush1.bf16.msra.mxu1 %v9864_v33  ;;  %v14118_v33 = vld [vmem:[#allocation24_spill] sm:$0xff]  ;;  %v14120_v21 = vld [vmem:[#allocation31_spill] sm:$0xff] }
 0x1ba   :  { %v8856_v62 = vrot.slane %v8842_v60, %v12435_v22  ;;  %9867 = vmatprep.subr.bf16.mxu1 %v9866_v16  ;;  %v14121_v16 = vld [vmem:[#allocation29_spill] sm:$0xff]  ;;  %v14123_v60 = vld [vmem:[#allocation36_spill] sm:$0xff] }
 0x1bb   :  { %9965 = vmatpush1.bf16.msra.mxu0 %v9964_v45  ;;  %v14124_v45 = vand.u32 4294901760, %v12097_v8  ;;  %v14133_v8 = vand.u32 4294901760, %v12101_v53  ;;  %v99_v53 = vld [vmem:[#allocation7 + $0x170] sm:$0xff] }
 0x1bc   :  { %v8857_v30 = vcombine.low %v8849_v12, %v8856_v62  ;;  %9967 = vmatprep.subr.bf16.mxu0 %v14110_v1  ;;  %v14128_v12 = vand.u32 4294901760, %v12095_v36  ;;  %v14136_v36 = vand.u32 4294901760, %v14097_v42 }
 0x1bd   :  { %9869 = vmatpush1.bf16.msra.mxu1 %v9868_v13  ;;  %v14125_v13 = vand.u32 4294901760, %v12099_v61  ;;  %v14134_v61 = vand.u32 4294901760, %v12103_v11  ;;  %v14140_v11 = vand.u32 4294901760, %v14101_v2  ;;  %v14147_v2 = vand.u32 4294901760, %v12150_v7 }
 0x1be   :  { %8957 = vst [vmem:[#allocation8] sm:$0xff] %v8857_v30  ;;  %9871 = vmatprep.subr.bf16.mxu1 %v14111_v50  ;;  %5776 = vmatmul.mubr.f32.vlgmr.msra.gmra.mrb[8].mxu0 %v14112_v41  ;;  %v9886_v62 = vpack.c.bf16 %v14128_v12, %v14127_v17  ;;  %v14129_v30 = vld [vmem:[#allocation42_spill] sm:$0xff]  ;;  %v14137_v17 = vand.u32 4294901760, %v14098_v56  ;;  %v14143_v56 = vand.u32 4294901760, %v12135_v52  ;;  %v14148_v52 = vand.u32 4294901760, %v12156_v58 }
 0x1bf   :  { %9969 = vmatpush1.bf16.msra.mxu0 %v14113_v14  ;;  %5862 = vmatprep.mubr.f32.mxu0 %v13753_v55  ;;  %v9982_v34 = vpack.c.bf16 %v14125_v13, %v14124_v45  ;;  %v9888_v45 = vpack.c.bf16 %v14134_v61, %v14133_v8  ;;  %v9986_v13 = vpack.c.bf16 %v14136_v36, %v14135_v23  ;;  %v14139_v12 = vld [vmem:[#allocation14_spill] sm:$0xff]  ;;  %v71_v8 = vld [vmem:[#allocation7 + $0x90] sm:$0xff]  ;;  %v96_v61 = vld [vmem:[#allocation7 + $0x158] sm:$0xff]  ;;  %v14144_v23 = vand.u32 4294901760, %v12137_v47 }
 0x1c0   :  { %5129 = vmatmul.mubr.f32.vlgmr.msra.gmra.mrb[8].mxu1 %v14112_v41  ;;  %9971 = vmatprep.subr.bf16.mxu0 %v14115_v63  ;;  %v9890_v49 = vpack.c.bf16 %v14138_v31, %v14137_v17  ;;  %v9892_v42 = vpack.c.bf16 %v14141_v32, %v14140_v11  ;;  %v14145_v36 = vand.u32 4294901760, %v12142_v25  ;;  %v6080_v31 = vand.u32 4294901760, %v72_v57  ;;  %v98_v32 = vld [vmem:[#allocation7 + $0x168] sm:$0xff] }
 0x1c1   :  { %9873 = vmatpush1.bf16.msra.mxu1 %v14114_v38  ;;  %5215 = vmatprep.mubr.f32.mxu1 %v13753_v55  ;;  %v6084_v11 = vand.u32 4294901760, %v97_v59  ;;  %v14150_v47 = vand.u32 4294901760, %v12167_v0  ;;  %v14151_v25 = vand.u32 4294901760, %v12169_v44  ;;  %v6731_v7 = vand.u32 4294901760, %v99_v53  ;;  %v122_v44 = vld [vmem:[#allocation7 + $0x228] sm:$0xff] }
 0x1c2   :  { %9875 = vmatprep.subr.bf16.mxu1 %v14116_v20  ;;  %v9894_v17 = vpack.c.bf16 %v14145_v36, %v14144_v23  ;;  %v14153_v23 = vand.u32 4294901760, %v12180_v27  ;;  %v14155_v58 = vand.u32 4294901760, %v12195_v37  ;;  %v6082_v0 = vand.u32 4294901760, %v71_v8 }
 0x1c3   :  { %9973 = vmatpush1.bf16.msra.mxu0 %v14117_v10  ;;  %v14158_v27 = vand.u32 4294901760, %v12204_v43  ;;  %v6733_v37 = vand.u32 4294901760, %v98_v32  ;;  %v6088_v43 = vand.u32 4294901760, %v122_v44 }
 0x1c4   :  { %9975 = vmatprep.subr.bf16.mxu0 %v14119_v28 }
 0x1c5   :  { %9877 = vmatpush1.bf16.msra.mxu1 %v14118_v33 }
 0x1c6   :  { %9879 = vmatprep.subr.bf16.mxu1 %v14120_v21 }
 0x1c7   :  { %9977 = vmatpush1.bf16.msra.mxu0 %v14121_v16 }
 0x1c8   :  { %9979 = vmatprep.subr.bf16.mxu0 %v14123_v60 }
 0x1c9   :  { %9881 = vmatpush1.bf16.msra.mxu1 %v14122_v4 }
 0x1ca   :  { %9883 = vmatprep.subr.bf16.mxu1 %v14126_v3 }
 0x1cb   :  { %9981 = vmatpush1.bf16.msra.mxu0 %v14129_v30 }
 0x1cc   :  { %9983 = vmatprep.subr.bf16.mxu0 %v9982_v34  ;;  %v74_v34 = vld [vmem:[#allocation7 + $0xa8] sm:$0xff] }
 0x1cd   :  { %9885 = vmatpush1.bf16.msra.mxu1 %v14132_v19 }
 0x1ce   :  { %9887 = vmatprep.subr.bf16.mxu1 %v9886_v62  ;;  %5866 = vmatmul.mubr.f32.vlgmr.msra.gmra.mrb[8].mxu0 %v14139_v12  ;;  %v14142_v62 = vand.u32 4294901760, %v12133_v29  ;;  %v73_v29 = vld [vmem:[#allocation7 + $0xa0] sm:$0xff] }
 0x1cf   :  { %9985 = vmatpush1.bf16.msra.mxu0 %v9984_v51  ;;  %v14146_v51 = vand.u32 4294901760, %v12146_v9  ;;  %v6727_v9 = vand.u32 4294901760, %v74_v34  ;;  %5984 = vmatprep.mubr.f32.mxu0 %v13753_v55 }
 0x1d0   :  { %5219 = vmatmul.mubr.f32.vlgmr.msra.gmra.mrb[8].mxu1 %v14139_v12  ;;  %v9988_v39 = vpack.c.bf16 %v14143_v56, %v14142_v62  ;;  %9987 = vmatprep.subr.bf16.mxu0 %v9986_v13  ;;  %v9992_v62 = vpack.c.bf16 %v14151_v25, %v14150_v47  ;;  %v14152_v56 = vand.u32 4294901760, %v12178_v24  ;;  %v14159_v47 = vand.u32 4294901760, %v12227_v48  ;;  %v123_v12 = vld [vmem:[#allocation7 + $0x230] sm:$0xff] }
 0x1d1   :  { %9889 = vmatpush1.bf16.msra.mxu1 %v9888_v45  ;;  %v9990_v35 = vpack.c.bf16 %v14147_v2, %v14146_v51  ;;  %v14149_v45 = vand.u32 4294901760, %v12158_v54  ;;  %5337 = vmatprep.mubr.f32.mxu1 %v13753_v55  ;;  %v6086_v51 = vand.u32 4294901760, %v96_v61  ;;  %v147_v2 = vld [vmem:[#allocation7 + $0x2f0] sm:$0xff]  ;;  %v6729_v25 = vand.u32 4294901760, %v73_v29 }
 0x1d2   :  { %9891 = vmatprep.subr.bf16.mxu1 %v9890_v49  ;;  %v9898_v36 = vpack.c.bf16 %v14153_v23, %v14152_v56  ;;  %v14154_v49 = vand.u32 4294901760, %v12187_v6  ;;  %v9996_v6 = vpack.c.bf16 %v14159_v47, %v14158_v27  ;;  %v124_v56 = vld [vmem:[#allocation7 + $0x238] sm:$0xff]  ;;  %v149_v23 = vld [vmem:[#allocation7 + $0x300] sm:$0xff]  ;;  %v6092_v48 = vand.u32 4294901760, %v147_v2 }
 0x1d3   :  { %v9896_v13 = vpack.c.bf16 %v14149_v45, %v14148_v52  ;;  %9989 = vmatpush1.bf16.msra.mxu0 %v9988_v39  ;;  %v14156_v52 = vand.u32 4294901760, %v14106_v5  ;;  %v14157_v45 = vand.u32 4294901760, %v12202_v40  ;;  %v12544_v39 = vsub.f32 %v97_v59, %v6084_v11 }
 0x1d4   :  { %v9994_v54 = vpack.c.bf16 %v14155_v58, %v14154_v49  ;;  %9991 = vmatprep.subr.bf16.mxu0 %v9990_v35  ;;  %v12540_v49 = vpack.c.bf16 %v6084_v11, %v6080_v31  ;;  %v12542_v58 = vsub.f32 %v72_v57, %v6080_v31  ;;  %v12546_v40 = vpack.c.bf16 %v6731_v7, %v6727_v9  ;;  %v148_v57 = vld [vmem:[#allocation7 + $0x2f8] sm:$0xff] }
 0x1d5   :  { %v9900_v24 = vpack.c.bf16 %v14157_v45, %v14156_v52  ;;  %9893 = vmatpush1.bf16.msra.mxu1 %v9892_v42  ;;  %v12548_v5 = vsub.f32 %v74_v34, %v6727_v9  ;;  %v121_v52 = vld [vmem:[#allocation7 + $0x220] sm:$0xff]  ;;  %v146_v45 = vld [vmem:[#allocation7 + $0x2e8] sm:$0xff]  ;;  %v12550_v27 = vsub.f32 %v99_v53, %v6731_v7  ;;  %v12552_v47 = vpack.c.bf16 %v6086_v51, %v6082_v0  ;;  %v172_v11 = vld [vmem:[#allocation7 + $0x3b8] sm:$0xff] }
 0x1d6   :  { %14160 = vst [vmem:[#allocation12_spill] sm:$0xff] %v12540_v49  ;;  %9895 = vmatprep.subr.bf16.mxu1 %v9894_v17  ;;  %14161 = vst [vmem:[#allocation30_spill] sm:$0xff] %v12546_v40  ;;  %v6735_v42 = vand.u32 4294901760, %v124_v56  ;;  %v6739_v35 = vand.u32 4294901760, %v149_v23  ;;  %v12554_v59 = vsub.f32 %v71_v8, %v6082_v0  ;;  %v12556_v17 = vsub.f32 %v96_v61, %v6086_v51  ;;  %v197_v9 = vld [vmem:[#allocation7 + $0x480] sm:$0xff]  ;;  %v171_v51 = vld [vmem:[#allocation7 + $0x3b0] sm:$0xff] }
 0x1d7   :  { %14162 = vst [vmem:[#allocation38_spill] sm:$0xff] %v12552_v47  ;;  %9993 = vmatpush1.bf16.msra.mxu0 %v9992_v62  ;;  %v12558_v31 = vpack.c.bf16 %v6733_v37, %v6729_v25  ;;  %v12560_v34 = vsub.f32 %v73_v29, %v6729_v25  ;;  %v12562_v53 = vsub.f32 %v98_v32, %v6733_v37  ;;  %v6090_v41 = vand.u32 4294901760, %v121_v52  ;;  %v199_v62 = vld [vmem:[#allocation7 + $0x490] sm:$0xff]  ;;  %v196_v25 = vld [vmem:[#allocation7 + $0x478] sm:$0xff]  ;;  %v198_v37 = vld [vmem:[#allocation7 + $0x488] sm:$0xff] }
 0x1d8   :  { %9995 = vmatprep.subr.bf16.mxu0 %v9994_v54  ;;  %v12564_v7 = vsub.f32 %v122_v44, %v6088_v43  ;;  %v6094_v26 = vand.u32 4294901760, %v146_v45  ;;  %v12566_v8 = vpack.c.bf16 %v6092_v48, %v6088_v43  ;;  %v12568_v61 = vsub.f32 %v147_v2, %v6092_v48  ;;  %v173_v44 = vld [vmem:[#allocation7 + $0x3c0] sm:$0xff] }
 0x1d9   :  { %14163 = vst [vmem:[#allocation41_spill] sm:$0xff] %v12558_v31  ;;  %9897 = vmatpush1.bf16.msra.mxu1 %v9896_v13  ;;  %v6737_v0 = vand.u32 4294901760, %v123_v12  ;;  %v6741_v29 = vand.u32 4294901760, %v148_v57  ;;  %v12570_v22 = vpack.c.bf16 %v6739_v35, %v6735_v42  ;;  %v12572_v13 = vsub.f32 %v124_v56, %v6735_v42  ;;  %v247_v31 = vld [vmem:[#allocation7 + $0x610] sm:$0xff] }
 0x1da   :  { %14164 = vst [vmem:[#allocation20_spill] sm:$0xff] %v12564_v7  ;;  %9899 = vmatprep.subr.bf16.mxu1 %v9898_v36  ;;  %14165 = vst [vmem:[#allocation23_spill] sm:$0xff] %v12566_v8  ;;  %v6096_v32 = vand.u32 4294901760, %v172_v11  ;;  %v6100_v54 = vand.u32 4294901760, %v197_v9  ;;  %v12574_v47 = vsub.f32 %v149_v23, %v6739_v35  ;;  %v12576_v36 = vsub.f32 %v121_v52, %v6090_v41  ;;  %v222_v35 = vld [vmem:[#allocation7 + $0x548] sm:$0xff] }
 0x1db   :  { %14166 = vst [vmem:[#allocation35_spill] sm:$0xff] %v12568_v61  ;;  %14167 = vst [vmem:[#allocation33_spill] sm:$0xff] %v12570_v22  ;;  %9997 = vmatpush1.bf16.msra.mxu0 %v9996_v6  ;;  %v6743_v43 = vand.u32 4294901760, %v174_v18  ;;  %v6747_v2 = vand.u32 4294901760, %v199_v62  ;;  %v12579_v48 = vpack.c.bf16 %v6094_v26, %v6090_v41  ;;  %v12581_v8 = vsub.f32 %v146_v45, %v6094_v26  ;;  %v224_v45 = vld [vmem:[#allocation7 + $0x558] sm:$0xff] }
 0x1dc   :  { %14168 = vst [vmem:[#allocation25_spill] sm:$0xff] %v12576_v36  ;;  %9999 = vmatprep.subr.bf16.mxu0 %v14110_v1  ;;  %v6098_v56 = vand.u32 4294901760, %v171_v51  ;;  %v6102_v42 = vand.u32 4294901760, %v196_v25  ;;  %v12584_v22 = vpack.c.bf16 %v6741_v29, %v6737_v0  ;;  %v12586_v6 = vsub.f32 %v123_v12, %v6737_v0 }
 0x1dd   :  { %9901 = vmatpush1.bf16.msra.mxu1 %v9900_v24  ;;  %14169 = vst [vmem:[#allocation22_spill] sm:$0xff] %v12579_v48  ;;  %14170 = vst [vmem:[#allocation34_spill] sm:$0xff] %v12581_v8  ;;  %v6745_v23 = vand.u32 4294901760, %v173_v44  ;;  %v6749_v52 = vand.u32 4294901760, %v198_v37  ;;  %v12589_v24 = vsub.f32 %v148_v57, %v6741_v29  ;;  %v12591_v1 = vpack.c.bf16 %v6100_v54, %v6096_v32  ;;  %v221_v57 = vld [vmem:[#allocation7 + $0x540] sm:$0xff]  ;;  %v246_v29 = vld [vmem:[#allocation7 + $0x608] sm:$0xff] }
 0x1de   :  { %9903 = vmatprep.subr.bf16.mxu1 %v14111_v50  ;;  %14171 = vst [vmem:[#allocation19_spill] sm:$0xff] %v12584_v22  ;;  %5986 = vmatmul.mubr.f32.vlgmr.msra.gmra.mrb[8].mxu0 %v14100_v46  ;;  %v12593_v26 = vsub.f32 %v172_v11, %v6096_v32  ;;  %v12595_v41 = vsub.f32 %v197_v9, %v6100_v54  ;;  %v249_v50 = vld [vmem:[#allocation7 + $0x620] sm:$0xff]  ;;  %v6104_v32 = vand.u32 4294901760, %v222_v35  ;;  %v6108_v54 = vand.u32 4294901760, %v247_v31 }
 0x1df   :  { %14172 = vst [vmem:[#allocation16_spill] sm:$0xff] %v12591_v1  ;;  %10001 = vmatpush1.bf16.msra.mxu0 %v14113_v14  ;;  %v12599_v12 = vpack.c.bf16 %v6747_v2, %v6743_v43  ;;  %v12601_v0 = vsub.f32 %v174_v18, %v6743_v43  ;;  %v12603_v48 = vsub.f32 %v199_v62, %v6747_v2  ;;  %v248_v14 = vld [vmem:[#allocation7 + $0x618] sm:$0xff]  ;;  %v6751_v43 = vand.u32 4294901760, %v224_v45 }
 0x1e0   :  { %14173 = vst [vmem:[#allocation24_spill] sm:$0xff] %v12595_v41  ;;  %5339 = vmatmul.mubr.f32.vlgmr.msra.gmra.mrb[8].mxu1 %v14100_v46  ;;  %10003 = vmatprep.subr.bf16.mxu0 %v14115_v63  ;;  %v12607_v11 = vpack.c.bf16 %v6102_v42, %v6098_v56  ;;  %v12609_v9 = vsub.f32 %v171_v51, %v6098_v56  ;;  %v223_v41 = vld [vmem:[#allocation7 + $0x550] sm:$0xff]  ;;  %v6106_v51 = vand.u32 4294901760, %v221_v57  ;;  %v6110_v2 = vand.u32 4294901760, %v246_v29 }
 0x1e1   :  { %14174 = vst [vmem:[#allocation27_spill] sm:$0xff] %v12599_v12  ;;  %9905 = vmatpush1.bf16.msra.mxu1 %v14114_v38  ;;  %5425 = vmatprep.mubr.f32.mxu1 %v13753_v55  ;;  %v12613_v18 = vsub.f32 %v196_v25, %v6102_v42  ;;  %v12615_v62 = vpack.c.bf16 %v6749_v52, %v6745_v23  ;;  %v6755_v38 = vand.u32 4294901760, %v249_v50  ;;  %v13660_v56 = vand.u32 4294901760, %v12548_v5 }
 0x1e2   :  { %14175 = vst [vmem:[#allocation31_spill] sm:$0xff] %v12607_v11  ;;  %14176 = vst [vmem:[#allocation29_spill] sm:$0xff] %v12609_v9  ;;  %9907 = vmatprep.subr.bf16.mxu1 %v14116_v20  ;;  %6072 = vmatprep.mubr.f32.mxu0 %v13753_v55  ;;  %v12618_v63 = vsub.f32 %v173_v44, %v6745_v23  ;;  %v12622_v11 = vsub.f32 %v198_v37, %v6749_v52  ;;  %v6753_v20 = vand.u32 4294901760, %v223_v41 }
 0x1e3   :  { %14177 = vst [vmem:[#allocation32_spill] sm:$0xff] %v12613_v18  ;;  %14178 = vst [vmem:[#allocation36_spill] sm:$0xff] %v12615_v62  ;;  %10005 = vmatpush1.bf16.msra.mxu0 %v14117_v10  ;;  %v6757_v9 = vand.u32 4294901760, %v248_v14  ;;  %v12627_v42 = vpack.c.bf16 %v6108_v54, %v6104_v32  ;;  %v12629_v44 = vsub.f32 %v222_v35, %v6104_v32  ;;  %v13659_v52 = vand.u32 4294901760, %v12550_v27 }
 0x1e4   :  { %10007 = vmatprep.subr.bf16.mxu0 %v14119_v28  ;;  %v12631_v23 = vsub.f32 %v247_v31, %v6108_v54  ;;  %v12635_v10 = vpack.c.bf16 %v6755_v38, %v6751_v43  ;;  %v12637_v37 = vsub.f32 %v224_v45, %v6751_v43  ;;  %v12641_v25 = vsub.f32 %v249_v50, %v6755_v38 }
 0x1e5   :  { %9909 = vmatpush1.bf16.msra.mxu1 %v14118_v33  ;;  %14179 = vst [vmem:[#allocation37_spill] sm:$0xff] %v12627_v42  ;;  %v13658_v33 = vand.u32 4294901760, %v12554_v59  ;;  %v12643_v28 = vpack.c.bf16 %v6110_v2, %v6106_v51  ;;  %v14183_v35 = vand.u32 4294901760, %v12542_v58  ;;  %v13661_v32 = vand.u32 4294901760, %v12556_v17 }
 0x1e6   :  { %9911 = vmatprep.subr.bf16.mxu1 %v14120_v21  ;;  %14180 = vst [vmem:[#allocation42_spill] sm:$0xff] %v12635_v10  ;;  %14181 = vst [vmem:[#allocation40_spill] sm:$0xff] %v12637_v37  ;;  %v12650_v21 = vsub.f32 %v221_v57, %v6106_v51  ;;  %v12652_v45 = vsub.f32 %v246_v29, %v6110_v2  ;;  %v14185_v54 = vand.u32 4294901760, %v12544_v39  ;;  %v13662_v50 = vand.u32 4294901760, %v12560_v34 }
 0x1e7   :  { %14182 = vst [vmem:[#allocation46_spill] sm:$0xff] %v12643_v28  ;;  %v6175_v31 = vsub.f32 %v12542_v58, %v14183_v35  ;;  %10009 = vmatpush1.bf16.msra.mxu0 %v14121_v16  ;;  %v12660_v38 = vpack.c.bf16 %v6757_v9, %v6753_v20  ;;  %v12662_v35 = vsub.f32 %v223_v41, %v6753_v20  ;;  %v13663_v57 = vand.u32 4294901760, %v12562_v53 }
 0x1e8   :  { %14184 = vst [vmem:[#allocation47_spill] sm:$0xff] %v12650_v21  ;;  %v6187_v43 = vsub.f32 %v12544_v39, %v14185_v54  ;;  %10011 = vmatprep.subr.bf16.mxu0 %v14123_v60  ;;  %v6822_v16 = vsub.f32 %v12548_v5, %v13660_v56  ;;  %v6834_v29 = vsub.f32 %v12550_v27, %v13659_v52  ;;  %v13664_v60 = vand.u32 4294901760, %v12564_v7 }
 0x1e9   :  { %9913 = vmatpush1.bf16.msra.mxu1 %v14122_v4  ;;  %14186 = vst [vmem:[#allocation48_spill] sm:$0xff] %v12660_v38  ;;  %v6181_v4 = vsub.f32 %v12554_v59, %v13658_v33  ;;  %v13665_v41 = vand.u32 4294901760, %v12568_v61  ;;  %v6176_v51 = vand.u32 4294901760, %v6175_v31  ;;  %v6193_v2 = vsub.f32 %v12556_v17, %v13661_v32 }
 0x1ea   :  { %9915 = vmatprep.subr.bf16.mxu1 %v14126_v3  ;;  %v13670_v20 = vand.u32 4294901760, %v12572_v13  ;;  %v6188_v54 = vand.u32 4294901760, %v6187_v43  ;;  %v6828_v33 = vsub.f32 %v12560_v34, %v13662_v50  ;;  %v12690_v31 = vsub.f32 %v248_v14, %v6757_v9  ;;  %v12699_v3 = vld [vmem:[#allocation5 + $0x8] sm:$0xff] }
 0x1eb   :  { %10013 = vmatpush1.bf16.msra.mxu0 %v14129_v30  ;;  %v6823_v32 = vand.u32 4294901760, %v6822_v16  ;;  %v6840_v30 = vsub.f32 %v12562_v53, %v13663_v57  ;;  %v12696_v43 = vsub.s32 6, %v14103_v15  ;;  %v6835_v50 = vand.u32 4294901760, %v6834_v29 }
 0x1ec   :  { %10111 = vmatprep.subr.bf16.mxu0 %v12546_v40  ;;  %v6182_v52 = vand.u32 4294901760, %v6181_v4  ;;  %v6211_v9 = vsub.f32 %v12568_v61, %v13665_v41  ;;  %v6194_v14 = vand.u32 4294901760, %v6193_v2  ;;  %v6846_v16 = vsub.f32 %v12572_v13, %v13670_v20  ;;  %v14192_v61 = vld [vmem:[#allocation38_spill] sm:$0xff] }
 0x1ed   :  { %9917 = vmatpush1.bf16.msra.mxu1 %v14132_v19  ;;  %14187 = vst [vmem:[#allocation49_spill] sm:$0xff] %v12696_v43  ;;  %v6199_v19 = vsub.f32 %v12564_v7, %v13664_v60  ;;  %v14188_v29 = vand.u32 4294901760, %v12574_v47  ;;  %v14189_v60 = vld [vmem:[#allocation41_spill] sm:$0xff]  ;;  %v12717_v56 = vpack.c.bf16 %v6188_v54, %v6176_v51  ;;  %v6829_v41 = vand.u32 4294901760, %v6828_v33  ;;  %v12727_v7 = vld [vmem:[#allocation5] sm:$0xff]  ;;  %v14194_v54 = vld [vmem:[#allocation28_spill] sm:$0xff] }
 0x1ee   :  { %10015 = vmatprep.subr.bf16.mxu1 %v12540_v49  ;;  %6074 = vmatmul.mubr.f32.vlgmr.msra.gmra.mrb[8].mxu0 %v14100_v46  ;;  %v14190_v49 = vand.u32 4294901760, %v12576_v36  ;;  %v14191_v40 = vand.u32 4294901760, %v12581_v8  ;;  %v6841_v57 = vand.u32 4294901760, %v6840_v30  ;;  %v6212_v30 = vand.u32 4294901760, %v6211_v9  ;;  %v14199_v9 = vld [vmem:[#allocation18_spill] sm:$0xff] }
 0x1ef   :  { %v6858_v4 = vsub.f32 %v12574_v47, %v14188_v29  ;;  %10113 = vmatpush1.bf16.msra.mxu0 %v14189_v60  ;;  %v14193_v29 = vld [vmem:[#allocation33_spill] sm:$0xff]  ;;  %6807 = vmatprep.mubr.f32.mxu0 %v13753_v55  ;;  %v6847_v51 = vand.u32 4294901760, %v6846_v16  ;;  %v14197_v33 = vand.u32 4294901760, %v12586_v6  ;;  %v14200_v16 = vand.u32 4294901760, %v12589_v24 }
 0x1f0   :  { %5427 = vmatmul.mubr.f32.vlgmr.msra.gmra.mrb[8].mxu1 %v14100_v46  ;;  %v6205_v2 = vsub.f32 %v12576_v36, %v14190_v49  ;;  %v6217_v20 = vsub.f32 %v12581_v8, %v14191_v40  ;;  %10115 = vmatprep.subr.bf16.mxu0 %v14193_v29  ;;  %v14195_v49 = vld [vmem:[#allocation23_spill] sm:$0xff]  ;;  %v10126_v40 = vpack.c.bf16 %v6835_v50, %v6823_v32  ;;  %v6200_v29 = vand.u32 4294901760, %v6199_v19  ;;  %v14198_v19 = vld [vmem:[#allocation22_spill] sm:$0xff]  ;;  %v14201_v50 = vld [vmem:[#allocation24_spill] sm:$0xff] }
 0x1f1   :  { %10017 = vmatpush1.bf16.msra.mxu1 %v14192_v61  ;;  %6160 = vmatprep.mubr.f32.mxu1 %v13753_v55  ;;  %v12737_v61 = vsub.s32 7, %v14103_v15  ;;  %v12740_v8 = vpack.c.bf16 %v6194_v14, %v6182_v52  ;;  %v6859_v36 = vand.u32 4294901760, %v6858_v4  ;;  %v12745_v60 = vsub.f32 %v12586_v6, %v14197_v33 }
 0x1f2   :  { %10019 = vmatprep.subr.bf16.mxu1 %v14195_v49  ;;  %v6206_v49 = vand.u32 4294901760, %v6205_v2  ;;  %v6218_v32 = vand.u32 4294901760, %v6217_v20  ;;  %v10128_v52 = vpack.c.bf16 %v6841_v57, %v6829_v41  ;;  %v6864_v4 = vsub.f32 %v12589_v24, %v14200_v16 }
 0x1f3   :  { %14196 = vst [vmem:[#allocation50_spill] sm:$0xff] %v12737_v61  ;;  %10117 = vmatpush1.bf16.msra.mxu0 %v12584_v22  ;;  %v10034_v2 = vpack.c.bf16 %v6212_v30, %v6200_v29  ;;  %v13687_v15 = vand.u32 4294901760, %v14201_v50  ;;  %v6853_v57 = vand.u32 4294901760, %v12745_v60  ;;  %v10130_v33 = vpack.c.bf16 %v6859_v36, %v6847_v51  ;;  %v14205_v60 = vld [vmem:[#allocation31_spill] sm:$0xff] }
 0x1f4   :  { %10119 = vmatprep.subr.bf16.mxu0 %v12599_v12  ;;  %v14203_v20 = vand.u32 4294901760, %v12593_v26  ;;  %v14204_v30 = vand.u32 4294901760, %v12601_v0  ;;  %v6865_v14 = vand.u32 4294901760, %v6864_v4  ;;  %v14206_v16 = vand.u32 4294901760, %v12603_v48 }
 0x1f5   :  { %10021 = vmatpush1.bf16.msra.mxu1 %v14198_v19  ;;  %v14202_v19 = vld [vmem:[#allocation29_spill] sm:$0xff]  ;;  %v14209_v51 = vand.u32 4294901760, %v12618_v63 }
 0x1f6   :  { %10023 = vmatprep.subr.bf16.mxu1 %v12591_v1  ;;  %v12768_v1 = vpack.c.bf16 %v6218_v32, %v6206_v49  ;;  %v6223_v29 = vsub.f32 %v12593_v26, %v14203_v20  ;;  %v6870_v12 = vsub.f32 %v12601_v0, %v14204_v30  ;;  %v6882_v41 = vsub.f32 %v12603_v48, %v14206_v16 }
 0x1f7   :  { %10121 = vmatpush1.bf16.msra.mxu0 %v12615_v62  ;;  %v6235_v49 = vsub.f32 %v14201_v50, %v13687_v15  ;;  %v14207_v32 = vand.u32 4294901760, %v14202_v19  ;;  %v14208_v16 = vand.u32 4294901760, %v12613_v18  ;;  %v14213_v62 = vand.u32 4294901760, %v12629_v44 }
 0x1f8   :  { %10123 = vmatprep.subr.bf16.mxu0 %v12635_v10  ;;  %v14210_v10 = vand.u32 4294901760, %v12622_v11  ;;  %v6871_v4 = vand.u32 4294901760, %v6870_v12 }
 0x1f9   :  { %10025 = vmatpush1.bf16.msra.mxu1 %v14205_v60  ;;  %v6229_v20 = vsub.f32 %v14202_v19, %v14207_v32  ;;  %v6241_v36 = vsub.f32 %v12613_v18, %v14208_v16  ;;  %v6224_v32 = vand.u32 4294901760, %v6223_v29  ;;  %v6883_v16 = vand.u32 4294901760, %v6882_v41 }
 0x1fa   :  { %10027 = vmatprep.subr.bf16.mxu1 %v12627_v42  ;;  %v6876_v42 = vsub.f32 %v12618_v63, %v14209_v51  ;;  %v6888_v15 = vsub.f32 %v12622_v11, %v14210_v10  ;;  %v14211_v51 = vand.u32 4294901760, %v12637_v37  ;;  %v14212_v10 = vand.u32 4294901760, %v12641_v25 }
 0x1fb   :  { %10125 = vmatpush1.bf16.msra.mxu0 %v12660_v38  ;;  %v6236_v12 = vand.u32 4294901760, %v6235_v49  ;;  %v6230_v29 = vand.u32 4294901760, %v6229_v20  ;;  %v6247_v30 = vsub.f32 %v12629_v44, %v14213_v62  ;;  %v14217_v49 = vand.u32 4294901760, %v12662_v35 }
 0x1fc   :  { %10127 = vmatprep.subr.bf16.mxu0 %v10126_v40  ;;  %v6894_v22 = vsub.f32 %v12637_v37, %v14211_v51  ;;  %v6906_v60 = vsub.f32 %v12641_v25, %v14212_v10  ;;  %v14214_v40 = vand.u32 4294901760, %v12631_v23  ;;  %v6242_v51 = vand.u32 4294901760, %v6241_v36 }
 0x1fd   :  { %10029 = vmatpush1.bf16.msra.mxu1 %v12643_v28  ;;  %v14215_v28 = vld [vmem:[#allocation15_spill] sm:$0xff]  ;;  %v6877_v37 = vand.u32 4294901760, %v6876_v42  ;;  %v6889_v18 = vand.u32 4294901760, %v6888_v15  ;;  %v14216_v10 = vand.u32 4294901760, %v12650_v21  ;;  %v6900_v62 = vsub.f32 %v12662_v35, %v14217_v49 }
 0x1fe   :  { %10031 = vmatprep.subr.bf16.mxu1 %v12717_v56  ;;  %v6259_v41 = vsub.f32 %v12631_v23, %v14214_v40  ;;  %6813 = vmatmul.mubr.f32.vlgmr.msra.gmra.mrb[10].mxu0 %v14215_v28  ;;  %v10132_v56 = vpack.c.bf16 %v6865_v14, %v6853_v57  ;;  %v14218_v20 = vand.u32 4294901760, %v12690_v31  ;;  %v10134_v42 = vpack.c.bf16 %v6883_v16, %v6871_v4 }
 0x1ff   :  { %v6253_v38 = vsub.f32 %v12650_v21, %v14216_v10  ;;  %10129 = vmatpush1.bf16.msra.mxu0 %v10128_v52  ;;  %v6895_v15 = vand.u32 4294901760, %v6894_v22  ;;  %v6907_v36 = vand.u32 4294901760, %v6906_v60  ;;  %v14219_v10 = vand.u32 4294901760, %v12652_v45  ;;  %6963 = vmatprep.mubr.f32.mxu0 %v13753_v55 }
 0x200   :  { %6166 = vmatmul.mubr.f32.vlgmr.msra.gmra.mrb[10].mxu1 %v14215_v28  ;;  %v6912_v40 = vsub.f32 %v12690_v31, %v14218_v20  ;;  %10131 = vmatprep.subr.bf16.mxu0 %v10130_v33  ;;  %v10038_v14 = vpack.c.bf16 %v6236_v12, %v6224_v32  ;;  %v6248_v57 = vand.u32 4294901760, %v6247_v30  ;;  %v6260_v21 = vand.u32 4294901760, %v6259_v41 }
 0x201   :  { %10033 = vmatpush1.bf16.msra.mxu1 %v12740_v8  ;;  %v6265_v28 = vsub.f32 %v12652_v45, %v14219_v10  ;;  %v3487_v52 = vpop.f32.mrb[4].mxu0  ;;  %6316 = vmatprep.mubr.f32.mxu1 %v13753_v55  ;;  %v14220_v20 = vrot.slane %v12699_v3, %v14194_v54  ;;  %v10040_v4 = vpack.c.bf16 %v6242_v51, %v6230_v29  ;;  %v6254_v60 = vand.u32 4294901760, %v6253_v38 }
 0x202   :  { %10035 = vmatprep.subr.bf16.mxu1 %v10034_v2  ;;  %v3489_v33 = vpop.f32.mrb[5].mxu0  ;;  %v10136_v22 = vpack.c.bf16 %v6889_v18, %v6877_v37  ;;  %v14221_v16 = vrot.slane %v12727_v7, %v12696_v43  ;;  %v14222_v30 = vrot.slane %v12699_v3, %v14199_v9  ;;  %v6901_v41 = vand.u32 4294901760, %v6900_v62  ;;  %v14257_v43 = vld [vmem:[#allocation46_spill] sm:$0xff] }
 0x203   :  { %v2840_v49 = vpop.f32.mrb[4].mxu1  ;;  %v8699_v8 = vsub.f32 %v3487_v52, %v14220_v20  ;;  %10133 = vmatpush1.bf16.msra.mxu0 %v10132_v56  ;;  %v6913_v10 = vand.u32 4294901760, %v6912_v40  ;;  %v14223_v29 = vrot.slane %v12727_v7, %v12737_v61  ;;  %v10138_v37 = vpack.c.bf16 %v6907_v36, %v6895_v15 }
 0x204   :  { %v8697_v2 = vsub.f32 %v2840_v49, %v14221_v16  ;;  %v2842_v32 = vpop.f32.mrb[5].mxu1  ;;  %v8700_v12 = vsub.f32 %v3489_v33, %v14222_v30  ;;  %10135 = vmatprep.subr.bf16.mxu0 %v10134_v42  ;;  %v6266_v38 = vand.u32 4294901760, %v6265_v28  ;;  %v10042_v49 = vpack.c.bf16 %v6260_v21, %v6248_v57  ;;  %v14224_v57 = vld [vmem:[#allocation20_spill] sm:$0xff] }
 0x205   :  { %v8724_v54 = vmul.f32 -12.005, %v8699_v8  ;;  %v8698_v18 = vsub.f32 %v2842_v32, %v14223_v29  ;;  %10037 = vmatpush1.bf16.msra.mxu1 %v12768_v1  ;;  %v10140_v62 = vpack.c.bf16 %v6913_v10, %v6901_v41  ;;  %v10142_v1 = vpack.c.bf16 %v12550_v27, %v12548_v5 }
 0x206   :  { %v8722_v51 = vmul.f32 -12.005, %v8697_v2  ;;  %v8725_v52 = vmul.f32 -12.005, %v8700_v12  ;;  %10039 = vmatprep.subr.bf16.mxu1 %v10038_v14  ;;  %v10044_v7 = vpack.c.bf16 %v6266_v38, %v6254_v60  ;;  %v10046_v21 = vpack.c.bf16 %v12544_v39, %v12542_v58  ;;  %v14226_v60 = vld [vmem:[#allocation25_spill] sm:$0xff]  ;;  %v14229_v38 = vld [vmem:[#allocation40_spill] sm:$0xff] }
 0x207   :  { %v8749_v20 = vmul.f32 %v8724_v54, %v8699_v8  ;;  %v8723_v16 = vmul.f32 -12.005, %v8698_v18  ;;  %10137 = vmatpush1.bf16.msra.mxu0 %v10136_v22  ;;  %v10144_v15 = vpack.c.bf16 %v12562_v53, %v12560_v34  ;;  %v10048_v36 = vpack.c.bf16 %v12556_v17, %v12554_v59  ;;  %v14225_v8 = vld [vmem:[#allocation35_spill] sm:$0xff] }
 0x208   :  { %v8747_v33 = vmul.f32 %v8722_v51, %v8697_v2  ;;  %v8750_v56 = vmul.f32 %v8725_v52, %v8700_v12  ;;  %10139 = vmatprep.subr.bf16.mxu0 %v10138_v37  ;;  %v10146_v14 = vpack.c.bf16 %v12574_v47, %v12572_v13  ;;  %v10148_v22 = vpack.c.bf16 %v12589_v24, %v12586_v6  ;;  %v14227_v2 = vld [vmem:[#allocation34_spill] sm:$0xff] }
 0x209   :  { %v8782_v40 = vmul.f32 1.442695, %v8749_v20  ;;  %v8748_v30 = vmul.f32 %v8723_v16, %v8698_v18  ;;  %10041 = vmatpush1.bf16.msra.mxu1 %v10040_v4  ;;  %v10050_v4 = vpack.c.bf16 %v14225_v8, %v14224_v57  ;;  %v10052_v32 = vpack.c.bf16 %v14227_v2, %v14226_v60  ;;  %v14228_v18 = vld [vmem:[#allocation32_spill] sm:$0xff] }
 0x20a   :  { %v8778_v42 = vmul.f32 1.442695, %v8747_v33  ;;  %v8784_v28 = vmul.f32 1.442695, %v8750_v56  ;;  %10043 = vmatprep.subr.bf16.mxu1 %v10042_v49  ;;  %v10150_v12 = vpack.c.bf16 %v12603_v48, %v12601_v0  ;;  %v10054_v41 = vpack.c.bf16 %v14201_v50, %v12593_v26 }
 0x20b   :  { %10526 = vpow2.f32 %v8782_v40  ;;  %v8780_v54 = vmul.f32 1.442695, %v8748_v30  ;;  %10141 = vmatpush1.bf16.msra.mxu0 %v10140_v62  ;;  %v10152_v10 = vpack.c.bf16 %v12622_v11, %v12618_v63  ;;  %v10056_v37 = vpack.c.bf16 %v14228_v18, %v14202_v19  ;;  %v14230_v40 = vld [vmem:[#allocation47_spill] sm:$0xff] }
 0x20c   :  { %10528 = vpow2.f32 %v8778_v42  ;;  %10143 = vmatprep.subr.bf16.mxu0 %v10142_v1  ;;  %v10154_v51 = vpack.c.bf16 %v12641_v25, %v14229_v38  ;;  %v10058_v49 = vpack.c.bf16 %v12631_v23, %v12629_v44  ;;  %v10156_v56 = vpack.c.bf16 %v12690_v31, %v12662_v35  ;;  %v14232_v1 = vld [vmem:[#allocation17_spill] sm:$0xff] }
 0x20d   :  { %10530 = vpow2.f32 %v8780_v54  ;;  %10045 = vmatpush1.bf16.msra.mxu1 %v10044_v7  ;;  %v10060_v30 = vpack.c.bf16 %v12652_v45, %v14230_v40  ;;  %v14231_v7 = vld [vmem:[#allocation26_spill] sm:$0xff]  ;;  %v14233_v42 = vld [vmem:[#allocation21_spill] sm:$0xff]  ;;  %v14255_v62 = vand.u32 4294901760, %v12560_v34  ;;  %v14256_v61 = vand.u32 4294901760, %v12562_v53 }
 0x20e   :  { %10532 = vpow2.f32 %v8784_v28  ;;  %10047 = vmatprep.subr.bf16.mxu1 %v10046_v21  ;;  %6965 = vmatmul.mubr.f32.vlgmr.msra.gmra.mrb[10].mxu0 %v14100_v46  ;;  %v14234_v28 = vcombine.low %v14232_v1, %v14233_v42  ;;  %v14251_v42 = vld [vmem:[#allocation37_spill] sm:$0xff]  ;;  %v14263_v34 = vand.u32 4294901760, %v14225_v8  ;;  %v14269_v8 = vand.u32 4294901760, %v12601_v0 }
 0x20f   :  { %10145 = vmatpush1.bf16.msra.mxu0 %v10144_v15  ;;  %7067 = vmatprep.mubr.f32.mxu0 %v13753_v55  ;;  %v10176_v9 = vpack.c.bf16 %v14256_v61, %v14255_v62  ;;  %v14264_v61 = vld [vmem:[#allocation14_spill] sm:$0xff]  ;;  %v14276_v0 = vand.u32 4294901760, %v14228_v18  ;;  %v14283_v18 = vand.u32 4294901760, %v14230_v40 }
 0x210   :  { %6318 = vmatmul.mubr.f32.vlgmr.msra.gmra.mrb[10].mxu1 %v14100_v46  ;;  %10147 = vmatprep.subr.bf16.mxu0 %v10146_v14  ;;  %v8866_v21 = vrot.slane %v14234_v28, %v14231_v7  ;;  %v14236_v14 = vld [vmem:[#allocation12_spill] sm:$0xff]  ;;  %v14252_v28 = vand.u32 4294901760, %v12542_v58  ;;  %v14260_v58 = vand.u32 4294901760, %v12572_v13  ;;  %v14268_v13 = vand.u32 4294901760, %v14227_v2  ;;  %v126_v40 = vld [vmem:[#allocation7 + $0x248] sm:$0xff] }
 0x211   :  { %10049 = vmatpush1.bf16.msra.mxu1 %v10048_v36  ;;  %6420 = vmatprep.mubr.f32.mxu1 %v13753_v55  ;;  %v14235_v36 = vld [vmem:[#allocation30_spill] sm:$0xff] }
 0x212   :  { %10051 = vmatprep.subr.bf16.mxu1 %v10050_v4  ;;  %v14237_v4 = vld [vmem:[#allocation13_spill] sm:$0xff] }
 0x213   :  { %10149 = vmatpush1.bf16.msra.mxu0 %v10148_v22  ;;  %v14238_v22 = vld [vmem:[#allocation41_spill] sm:$0xff] }
 0x214   :  { %10151 = vmatprep.subr.bf16.mxu0 %v10150_v12  ;;  %v14240_v12 = vld [vmem:[#allocation33_spill] sm:$0xff] }
 0x215   :  { %v12876_v29 = vpop.eup %10526  ;;  %10053 = vmatpush1.bf16.msra.mxu1 %v10052_v32  ;;  %v14239_v32 = vld [vmem:[#allocation38_spill] sm:$0xff] }
 0x216   :  { %v10529_v52 = vpop.eup %10528  ;;  %10055 = vmatprep.subr.bf16.mxu1 %v10054_v41  ;;  %v14241_v41 = vld [vmem:[#allocation23_spill] sm:$0xff] }
 0x217   :  { %v10531_v20 = vpop.eup %10530  ;;  %10153 = vmatpush1.bf16.msra.mxu0 %v10152_v10  ;;  %v14242_v10 = vld [vmem:[#allocation19_spill] sm:$0xff] }
 0x218   :  { %v12884_v16 = vpop.eup %10532  ;;  %v8859_v33 = vcombine.low %v10529_v52, %v10531_v20  ;;  %10155 = vmatprep.subr.bf16.mxu0 %v10154_v51  ;;  %v14244_v51 = vld [vmem:[#allocation27_spill] sm:$0xff]  ;;  %v14245_v52 = vld [vmem:[#allocation16_spill] sm:$0xff] }
 0x219   :  { %10057 = vmatpush1.bf16.msra.mxu1 %v10056_v37  ;;  %v14243_v37 = vld [vmem:[#allocation22_spill] sm:$0xff]  ;;  %v14247_v20 = vld [vmem:[#allocation31_spill] sm:$0xff] }
 0x21a   :  { %v8873_v54 = vrot.slane %v8859_v33, %v14231_v7  ;;  %10059 = vmatprep.subr.bf16.mxu1 %v10058_v49  ;;  %v14246_v49 = vld [vmem:[#allocation36_spill] sm:$0xff]  ;;  %v14248_v33 = vld [vmem:[#allocation42_spill] sm:$0xff] }
 0x21b   :  { %10157 = vmatpush1.bf16.msra.mxu0 %v10156_v56  ;;  %v14249_v56 = vand.u32 4294901760, %v12548_v5  ;;  %v14258_v5 = vand.u32 4294901760, %v12554_v59  ;;  %v14265_v59 = vand.u32 4294901760, %v12586_v6  ;;  %v14272_v6 = vand.u32 4294901760, %v14201_v50 }
 0x21c   :  { %v8874_v15 = vcombine.low %v8866_v21, %v8873_v54  ;;  %10159 = vmatprep.subr.bf16.mxu0 %v14235_v36  ;;  %v14253_v21 = vand.u32 4294901760, %v12544_v39  ;;  %v14261_v39 = vand.u32 4294901760, %v12574_v47  ;;  %v14267_v47 = vand.u32 4294901760, %v14226_v60 }
 0x21d   :  { %10061 = vmatpush1.bf16.msra.mxu1 %v10060_v30  ;;  %v14250_v30 = vand.u32 4294901760, %v12550_v27  ;;  %v14259_v27 = vand.u32 4294901760, %v12556_v17  ;;  %v14266_v17 = vand.u32 4294901760, %v12589_v24  ;;  %v14273_v24 = vand.u32 4294901760, %v12618_v63 }
 0x21e   :  { %8958 = vst [vmem:[#allocation8 + $0x8] sm:$0xff] %v8874_v15  ;;  %10063 = vmatprep.subr.bf16.mxu1 %v14236_v14  ;;  %7070 = vmatmul.mubr.f32.vlgmr.msra.gmra.mrb[10].mxu0 %v14237_v4  ;;  %v10078_v54 = vpack.c.bf16 %v14253_v21, %v14252_v28  ;;  %v14254_v15 = vld [vmem:[#allocation48_spill] sm:$0xff]  ;;  %v14262_v28 = vand.u32 4294901760, %v14224_v57  ;;  %v10084_v57 = vpack.c.bf16 %v14268_v13, %v14267_v47  ;;  %v14274_v60 = vand.u32 4294901760, %v12622_v11 }
 0x21f   :  { %10161 = vmatpush1.bf16.msra.mxu0 %v14238_v22  ;;  %7156 = vmatprep.mubr.f32.mxu0 %v13753_v55  ;;  %v10174_v1 = vpack.c.bf16 %v14250_v30, %v14249_v56  ;;  %v10080_v56 = vpack.c.bf16 %v14259_v27, %v14258_v5  ;;  %v10178_v30 = vpack.c.bf16 %v14261_v39, %v14260_v58  ;;  %v14277_v50 = vand.u32 4294901760, %v14229_v38 }
 0x220   :  { %6423 = vmatmul.mubr.f32.vlgmr.msra.gmra.mrb[10].mxu1 %v14237_v4  ;;  %10163 = vmatprep.subr.bf16.mxu0 %v14240_v12  ;;  %v10082_v53 = vpack.c.bf16 %v14263_v34, %v14262_v28  ;;  %v10180_v62 = vpack.c.bf16 %v14266_v17, %v14265_v59  ;;  %v10184_v2 = vpack.c.bf16 %v14274_v60, %v14273_v24  ;;  %v14278_v5 = vand.u32 4294901760, %v12641_v25  ;;  %v101_v28 = vld [vmem:[#allocation7 + $0x180] sm:$0xff]  ;;  %v100_v34 = vld [vmem:[#allocation7 + $0x178] sm:$0xff] }
 0x221   :  { %10065 = vmatpush1.bf16.msra.mxu1 %v14239_v32  ;;  %6509 = vmatprep.mubr.f32.mxu1 %v13753_v55  ;;  %v14280_v63 = vand.u32 4294901760, %v12631_v23  ;;  %v14281_v11 = vand.u32 4294901760, %v12662_v35  ;;  %v14282_v39 = vand.u32 4294901760, %v12690_v31  ;;  %v14284_v38 = vand.u32 4294901760, %v12652_v45  ;;  %v77_v59 = vld [vmem:[#allocation7 + $0xc0] sm:$0xff]  ;;  %v102_v35 = vld [vmem:[#allocation7 + $0x188] sm:$0xff] }
 0x222   :  { %10067 = vmatprep.subr.bf16.mxu1 %v14241_v41  ;;  %v10186_v27 = vpack.c.bf16 %v14278_v5, %v14277_v50  ;;  %v7380_v17 = vand.u32 4294901760, %v100_v34  ;;  %v151_v45 = vld [vmem:[#allocation7 + $0x310] sm:$0xff]  ;;  %v8022_v47 = vand.u32 4294901760, %v77_v59  ;;  %v8025_v13 = vand.u32 4294901760, %v102_v35  ;;  %v176_v24 = vld [vmem:[#allocation7 + $0x3d8] sm:$0xff]  ;;  %v201_v60 = vld [vmem:[#allocation7 + $0x4a0] sm:$0xff] }
 0x223   :  { %10165 = vmatpush1.bf16.msra.mxu0 %v14242_v10  ;;  %v10092_v25 = vpack.c.bf16 %v14284_v38, %v14283_v18 }
 0x224   :  { %10167 = vmatprep.subr.bf16.mxu0 %v14244_v51  ;;  %v13005_v50 = vsub.f32 %v100_v34, %v7380_v17  ;;  %v13007_v5 = vpack.c.bf16 %v8025_v13, %v8022_v47 }
 0x225   :  { %10069 = vmatpush1.bf16.msra.mxu1 %v14243_v37 }
 0x226   :  { %10071 = vmatprep.subr.bf16.mxu1 %v14245_v52  ;;  %14286 = vst [vmem:[#allocation29_spill] sm:$0xff] %v13007_v5 }
 0x227   :  { %10169 = vmatpush1.bf16.msra.mxu0 %v14246_v49 }
 0x228   :  { %10171 = vmatprep.subr.bf16.mxu0 %v14248_v33 }
 0x229   :  { %10073 = vmatpush1.bf16.msra.mxu1 %v14247_v20 }
 0x22a   :  { %10075 = vmatprep.subr.bf16.mxu1 %v14251_v42 }
 0x22b   :  { %10173 = vmatpush1.bf16.msra.mxu0 %v14254_v15 }
 0x22c   :  { %10175 = vmatprep.subr.bf16.mxu0 %v10174_v1  ;;  %v14270_v1 = vand.u32 4294901760, %v12603_v48  ;;  %v14275_v48 = vand.u32 4294901760, %v14202_v19  ;;  %v10188_v19 = vpack.c.bf16 %v14282_v39, %v14281_v11  ;;  %v177_v11 = vld [vmem:[#allocation7 + $0x3e0] sm:$0xff]  ;;  %v202_v39 = vld [vmem:[#allocation7 + $0x4a8] sm:$0xff] }
 0x22d   :  { %10077 = vmatpush1.bf16.msra.mxu1 %v14257_v43  ;;  %v8034_v34 = vand.u32 4294901760, %v177_v11 }
 0x22e   :  { %10079 = vmatprep.subr.bf16.mxu1 %v10078_v54  ;;  %7160 = vmatmul.mubr.f32.vlgmr.msra.gmra.mrb[10].mxu0 %v14264_v61  ;;  %v10182_v21 = vpack.c.bf16 %v14270_v1, %v14269_v8  ;;  %v127_v8 = vld [vmem:[#allocation7 + $0x250] sm:$0xff]  ;;  %v152_v1 = vld [vmem:[#allocation7 + $0x318] sm:$0xff] }
 0x22f   :  { %10177 = vmatpush1.bf16.msra.mxu0 %v10176_v9  ;;  %v14271_v9 = vand.u32 4294901760, %v12593_v26  ;;  %7278 = vmatprep.mubr.f32.mxu0 %v13753_v55  ;;  %v10088_v26 = vpack.c.bf16 %v14276_v0, %v14275_v48  ;;  %v8028_v48 = vand.u32 4294901760, %v127_v8  ;;  %v8031_v0 = vand.u32 4294901760, %v152_v1 }
 0x230   :  { %6513 = vmatmul.mubr.f32.vlgmr.msra.gmra.mrb[10].mxu1 %v14264_v61  ;;  %10179 = vmatprep.subr.bf16.mxu0 %v10178_v30  ;;  %v76_v30 = vld [vmem:[#allocation7 + $0xb8] sm:$0xff] }
 0x231   :  { %10081 = vmatpush1.bf16.msra.mxu1 %v10080_v56  ;;  %v10086_v54 = vpack.c.bf16 %v14272_v6, %v14271_v9  ;;  %6631 = vmatprep.mubr.f32.mxu1 %v13753_v55  ;;  %v14279_v56 = vand.u32 4294901760, %v12629_v44  ;;  %v75_v44 = vld [vmem:[#allocation7 + $0xb0] sm:$0xff]  ;;  %v7374_v23 = vand.u32 4294901760, %v76_v30  ;;  %v7382_v6 = vand.u32 4294901760, %v126_v40 }
 0x232   :  { %10083 = vmatprep.subr.bf16.mxu1 %v10082_v53  ;;  %v7378_v53 = vand.u32 4294901760, %v101_v28  ;;  %v7376_v31 = vand.u32 4294901760, %v75_v44 }
 0x233   :  { %10181 = vmatpush1.bf16.msra.mxu0 %v10180_v62  ;;  %v10090_v58 = vpack.c.bf16 %v14280_v63, %v14279_v56  ;;  %v125_v62 = vld [vmem:[#allocation7 + $0x240] sm:$0xff]  ;;  %v13014_v56 = vsub.f32 %v126_v40, %v7382_v6  ;;  %v7390_v63 = vand.u32 4294901760, %v176_v24 }
 0x234   :  { %10183 = vmatprep.subr.bf16.mxu0 %v10182_v21  ;;  %v12990_v21 = vpack.c.bf16 %v7378_v53, %v7374_v23  ;;  %v12998_v9 = vpack.c.bf16 %v7380_v17, %v7376_v31 }
 0x235   :  { %10085 = vmatpush1.bf16.msra.mxu1 %v10084_v57  ;;  %v150_v57 = vld [vmem:[#allocation7 + $0x308] sm:$0xff]  ;;  %v13040_v17 = vsub.f32 %v176_v24, %v7390_v63 }
 0x236   :  { %10087 = vmatprep.subr.bf16.mxu1 %v10086_v54  ;;  %14285 = vst [vmem:[#allocation24_spill] sm:$0xff] %v12998_v9  ;;  %v7386_v54 = vand.u32 4294901760, %v151_v45 }
 0x237   :  { %10185 = vmatpush1.bf16.msra.mxu0 %v10184_v2  ;;  %v7388_v2 = vand.u32 4294901760, %v150_v57 }
 0x238   :  { %10187 = vmatprep.subr.bf16.mxu0 %v10186_v27  ;;  %v13009_v27 = vsub.f32 %v77_v59, %v8022_v47  ;;  %v13020_v18 = vsub.f32 %v151_v45, %v7386_v54  ;;  %v225_v47 = vld [vmem:[#allocation7 + $0x560] sm:$0xff] }
 0x239   :  { %10089 = vmatpush1.bf16.msra.mxu1 %v10088_v26  ;;  %v175_v26 = vld [vmem:[#allocation7 + $0x3d0] sm:$0xff] }
 0x23a   :  { %10091 = vmatprep.subr.bf16.mxu1 %v10090_v58  ;;  %v7394_v58 = vand.u32 4294901760, %v201_v60  ;;  %v7392_v38 = vand.u32 4294901760, %v175_v26 }
 0x23b   :  { %10189 = vmatpush1.bf16.msra.mxu0 %v10188_v19  ;;  %v13018_v19 = vpack.c.bf16 %v7386_v54, %v7382_v6  ;;  %v13709_v6 = vand.u32 4294901760, %v13005_v50  ;;  %v252_v54 = vld [vmem:[#allocation7 + $0x638] sm:$0xff] }
 0x23c   :  { %10191 = vmatprep.subr.bf16.mxu0 %v14235_v36  ;;  %v12992_v36 = vsub.f32 %v76_v30, %v7374_v23  ;;  %v226_v23 = vld [vmem:[#allocation7 + $0x568] sm:$0xff]  ;;  %v13044_v40 = vsub.f32 %v201_v60, %v7394_v58  ;;  %v7400_v60 = vand.u32 4294901760, %v225_v47 }
 0x23d   :  { %10093 = vmatpush1.bf16.msra.mxu1 %v10092_v25  ;;  %14287 = vst [vmem:[#allocation20_spill] sm:$0xff] %v13018_v19 }
 0x23e   :  { %10095 = vmatprep.subr.bf16.mxu1 %v14236_v14  ;;  %7280 = vmatmul.mubr.f32.vlgmr.msra.gmra.mrb[10].mxu0 %v14100_v46  ;;  %v12996_v14 = vsub.f32 %v101_v28, %v7378_v53  ;;  %v13027_v28 = vsub.f32 %v150_v57, %v7388_v2  ;;  %v13714_v53 = vand.u32 4294901760, %v12992_v36 }
 0x23f   :  { %10193 = vmatpush1.bf16.msra.mxu0 %v14238_v22  ;;  %v7384_v22 = vand.u32 4294901760, %v125_v62  ;;  %7366 = vmatprep.mubr.f32.mxu0 %v13753_v55 }
 0x240   :  { %6633 = vmatmul.mubr.f32.vlgmr.msra.gmra.mrb[10].mxu1 %v14100_v46  ;;  %10195 = vmatprep.subr.bf16.mxu0 %v14240_v12  ;;  %v13003_v12 = vsub.f32 %v75_v44, %v7376_v31  ;;  %v13029_v44 = vpack.c.bf16 %v8031_v0, %v8028_v48  ;;  %v13713_v59 = vand.u32 4294901760, %v12996_v14  ;;  %v13038_v31 = vpack.c.bf16 %v7394_v58, %v7390_v63 }
 0x241   :  { %10097 = vmatpush1.bf16.msra.mxu1 %v14239_v32  ;;  %6719 = vmatprep.mubr.f32.mxu1 %v13753_v55  ;;  %v200_v32 = vld [vmem:[#allocation7 + $0x498] sm:$0xff]  ;;  %v13025_v30 = vsub.f32 %v125_v62, %v7384_v22  ;;  %v13048_v62 = vsub.f32 %v175_v26, %v7392_v38  ;;  %v7469_v24 = vsub.f32 %v12992_v36, %v13714_v53 }
 0x242   :  { %10099 = vmatprep.subr.bf16.mxu1 %v14241_v41  ;;  %v13012_v41 = vsub.f32 %v102_v35, %v8025_v13  ;;  %v7396_v25 = vand.u32 4294901760, %v200_v32  ;;  %14289 = vst [vmem:[#allocation25_spill] sm:$0xff] %v13029_v44  ;;  %v13034_v35 = vsub.f32 %v127_v8, %v8028_v48  ;;  %14290 = vst [vmem:[#allocation34_spill] sm:$0xff] %v13038_v31  ;;  %v7398_v13 = vand.u32 4294901760, %v226_v23  ;;  %v227_v8 = vld [vmem:[#allocation7 + $0x570] sm:$0xff] }
 0x243   :  { %10197 = vmatpush1.bf16.msra.mxu0 %v14242_v10  ;;  %v13023_v10 = vpack.c.bf16 %v7388_v2, %v7384_v22  ;;  %v13711_v2 = vand.u32 4294901760, %v13009_v27  ;;  %v13068_v26 = vsub.f32 %v177_v11, %v8034_v34  ;;  %v8040_v58 = vand.u32 4294901760, %v227_v8 }
 0x244   :  { %10199 = vmatprep.subr.bf16.mxu0 %v14244_v51  ;;  %v251_v51 = vld [vmem:[#allocation7 + $0x630] sm:$0xff]  ;;  %v13046_v45 = vpack.c.bf16 %v7396_v25, %v7392_v38  ;;  %v13712_v48 = vand.u32 4294901760, %v13012_v41  ;;  %v13072_v63 = vsub.f32 %v226_v23, %v7398_v13  ;;  %v8043_v38 = vand.u32 4294901760, %v252_v54 }
 0x245   :  { %10101 = vmatpush1.bf16.msra.mxu1 %v14243_v37  ;;  %14288 = vst [vmem:[#allocation35_spill] sm:$0xff] %v13023_v10  ;;  %v8037_v37 = vand.u32 4294901760, %v202_v39  ;;  %v7402_v57 = vand.u32 4294901760, %v251_v51 }
 0x246   :  { %10103 = vmatprep.subr.bf16.mxu1 %v14245_v52  ;;  %v13036_v52 = vsub.f32 %v152_v1, %v8031_v0  ;;  %14291 = vst [vmem:[#allocation32_spill] sm:$0xff] %v13046_v45  ;;  %v13710_v1 = vand.u32 4294901760, %v13003_v12  ;;  %v13716_v0 = vmov 0.0|0.0   ;;  %v13111_v53 = vsub.f32 %v252_v54, %v8043_v38 }
 0x247   :  { %10201 = vmatpush1.bf16.msra.mxu0 %v14246_v49  ;;  %v250_v49 = vld [vmem:[#allocation7 + $0x628] sm:$0xff]  ;;  %v13084_v11 = vsub.f32 %v251_v51, %v7402_v57  ;;  %v13099_v51 = vsub.f32 %v225_v47, %v7400_v60 }
 0x248   :  { %10203 = vmatprep.subr.bf16.mxu0 %v14248_v33  ;;  %v13055_v33 = vpack.c.bf16 %v8037_v37, %v8034_v34  ;;  %v7404_v22 = vand.u32 4294901760, %v250_v49 }
 0x249   :  { %10105 = vmatpush1.bf16.msra.mxu1 %v14247_v20  ;;  %v13053_v20 = vsub.f32 %v200_v32, %v7396_v25  ;;  %v13070_v32 = vsub.f32 %v202_v39, %v8037_v37  ;;  %v7475_v25 = vsub.f32 %v13003_v12, %v13710_v1  ;;  %v7470_v39 = vand.u32 4294901760, %v7469_v24 }
 0x24a   :  { %10107 = vmatprep.subr.bf16.mxu1 %v14251_v42  ;;  %14292 = vst [vmem:[#allocation40_spill] sm:$0xff] %v13055_v33  ;;  %v7481_v42 = vsub.f32 %v12996_v14, %v13713_v59  ;;  %v13715_v37 = vand.u32 4294901760, %v13014_v56  ;;  %v13089_v23 = vpack.c.bf16 %v7404_v22, %v7400_v60  ;;  %v13718_v24 = vand.u32 4294901760, %v13020_v18 }
 0x24b   :  { %10205 = vmatpush1.bf16.msra.mxu0 %v14254_v15  ;;  %v13075_v15 = vpack.c.bf16 %v7402_v57, %v7398_v13  ;;  %v8108_v13 = vsub.f32 %v13009_v27, %v13711_v2  ;;  %v13101_v57 = vsub.f32 %v250_v49, %v7404_v22  ;;  %v13106_v1 = vpack.c.bf16 %v8043_v38, %v8040_v58  ;;  %v14296_v49 = vld [vmem:[#allocation43_spill] sm:$0xff]  ;;  %v14297_v38 = vld [vmem:[#allocation44_spill] sm:$0xff] }
 0x24c   :  { %10302 = vmatprep.subr.bf16.mxu0 %v13716_v0  ;;  %v7482_v34 = vand.u32 4294901760, %v7481_v42  ;;  %14294 = vst [vmem:[#allocation26_spill] sm:$0xff] %v13089_v23  ;;  %v13719_v42 = vand.u32 4294901760, %v13025_v30  ;;  %v13108_v2 = vsub.f32 %v227_v8, %v8040_v58  ;;  %v7493_v22 = vsub.f32 %v13014_v56, %v13715_v37  ;;  %v14298_v37 = vld [vmem:[#allocation45_spill] sm:$0xff] }
 0x24d   :  { %10109 = vmatpush1.bf16.msra.mxu1 %v14257_v43  ;;  %14293 = vst [vmem:[#allocation47_spill] sm:$0xff] %v13075_v15  ;;  %v7487_v43 = vsub.f32 %v13005_v50, %v13709_v6  ;;  %v8115_v6 = vsub.f32 %v13012_v41, %v13712_v48  ;;  %14295 = vst [vmem:[#allocation17_spill] sm:$0xff] %v13106_v1  ;;  %v7476_v48 = vand.u32 4294901760, %v7475_v25  ;;  %v8109_v8 = vand.u32 4294901760, %v8108_v13 }
 0x24e   :  { %10207 = vmatprep.subr.bf16.mxu1 %v12990_v21  ;;  %7368 = vmatmul.mubr.f32.vlgmr.msra.gmra.mrb[10].mxu0 %v14100_v46  ;;  %v10222_v47 = vpack.c.bf16 %v7482_v34, %v7470_v39  ;;  %v7505_v39 = vsub.f32 %v13020_v18, %v13718_v24  ;;  %v7499_v34 = vsub.f32 %v13025_v30, %v13719_v42  ;;  %v14300_v60 = vand.u32 4294901760, %v13034_v35 }
 0x24f   :  { %10304 = vmatpush3.bf16.msra.mxu0 %v13007_v5  ;;  %v7488_v59 = vand.u32 4294901760, %v7487_v43  ;;  %9052 = vmatprep.mubr.msk.f32.mxu0 %vm10668_vm1, %v13753_v55  ;;  %v8116_v58 = vand.u32 4294901760, %v8115_v6  ;;  %v14299_v6 = vld [vmem:[#allocation39_spill] sm:$0xff]  ;;  %v14301_v43 = vand.u32 4294901760, %v13036_v52  ;;  %v14302_v24 = vmov 0.0|0.0  }
 0x250   :  { %6721 = vmatmul.mubr.f32.vlgmr.msra.gmra.mrb[10].mxu1 %v14100_v46  ;;  %10305 = vmatprep.subr.bf16.mxu0 %v13716_v0  ;;  %v7506_v42 = vand.u32 4294901760, %v7505_v39  ;;  %v7500_v61 = vand.u32 4294901760, %v7499_v34 }
 0x251   :  { %10209 = vmatpush1.bf16.msra.mxu1 %v12998_v9  ;;  %7454 = vmatprep.mubr.f32.mxu1 %v13753_v55  ;;  %v10224_v13 = vpack.c.bf16 %v7488_v59, %v7476_v48  ;;  %v7494_v48 = vand.u32 4294901760, %v7493_v22  ;;  %v8129_v54 = vsub.f32 %v13036_v52, %v14301_v43  ;;  %v10315_v25 = vpack.c.bf16 %v8116_v58, %v8109_v8 }
 0x252   :  { %10211 = vmatprep.subr.bf16.mxu1 %v13018_v19  ;;  %v14304_v22 = vand.u32 4294901760, %v13040_v17  ;;  %v14306_v58 = vand.u32 4294901760, %v13048_v62 }
 0x253   :  { %10307 = vmatpush3.bf16.msra.mxu0 %v13029_v44  ;;  %v8130_v8 = vand.u32 4294901760, %v8129_v54  ;;  %v14311_v44 = vand.u32 4294901760, %v13084_v11 }
 0x254   :  { %10308 = vmatprep.subr.bf16.mxu0 %v13716_v0  ;;  %v8122_v0 = vsub.f32 %v13034_v35, %v14300_v60  ;;  %v7517_v60 = vsub.f32 %v13040_v17, %v14304_v22  ;;  %v7523_v39 = vsub.f32 %v13048_v62, %v14306_v58 }
 0x255   :  { %10213 = vmatpush1.bf16.msra.mxu1 %v13023_v10  ;;  %v14309_v10 = vand.u32 4294901760, %v13070_v32  ;;  %v7553_v58 = vsub.f32 %v13084_v11, %v14311_v44 }
 0x256   :  { %10215 = vmatprep.subr.bf16.mxu1 %v13038_v31  ;;  %v14305_v31 = vand.u32 4294901760, %v13044_v40 }
 0x257   :  { %10310 = vmatpush3.bf16.msra.mxu0 %v13055_v33  ;;  %v14303_v33 = vand.u32 4294901760, %v13027_v28 }
 0x258   :  { %10311 = vmatprep.subr.bf16.mxu0 %v14302_v24  ;;  %v7529_v43 = vsub.f32 %v13044_v40, %v14305_v31  ;;  %v8143_v31 = vsub.f32 %v13070_v32, %v14309_v10  ;;  %v7518_v10 = vand.u32 4294901760, %v7517_v60  ;;  %v14313_v60 = vand.u32 4294901760, %v13108_v2 }
 0x259   :  { %10217 = vmatpush1.bf16.msra.mxu1 %v13046_v45  ;;  %v7511_v59 = vsub.f32 %v13027_v28, %v14303_v33  ;;  %v14307_v33 = vand.u32 4294901760, %v13053_v20  ;;  %v8123_v45 = vand.u32 4294901760, %v8122_v0  ;;  %v14310_v0 = vand.u32 4294901760, %v13072_v63 }
 0x25a   :  { %10219 = vmatprep.subr.bf16.mxu1 %v13075_v15  ;;  %v14308_v15 = vand.u32 4294901760, %v13068_v26  ;;  %v7530_v5 = vand.u32 4294901760, %v7529_v43  ;;  %v8150_v43 = vsub.f32 %v13108_v2, %v14313_v60 }
 0x25b   :  { %v7535_v34 = vsub.f32 %v13053_v20, %v14307_v33  ;;  %10313 = vmatpush3.bf16.msra.mxu0 %v13106_v1  ;;  %v10226_v33 = vpack.c.bf16 %v7506_v42, %v7494_v48  ;;  %v7512_v19 = vand.u32 4294901760, %v7511_v59  ;;  %v7541_v54 = vsub.f32 %v13072_v63, %v14310_v0 }
 0x25c   :  { %v8136_v22 = vsub.f32 %v13068_v26, %v14308_v15  ;;  %10314 = vmatprep.subr.bf16.mxu0 %v14302_v24  ;;  %v13743_v15 = vand.u32 4294901760, %v13099_v51  ;;  %v7524_v1 = vand.u32 4294901760, %v7523_v39  ;;  %v8144_v48 = vand.u32 4294901760, %v8143_v31 }
 0x25d   :  { %10221 = vmatpush1.bf16.msra.mxu1 %v13089_v23  ;;  %v14312_v23 = vld [vmem:[#allocation15_spill] sm:$0xff]  ;;  %v7536_v42 = vand.u32 4294901760, %v7535_v34  ;;  %v14314_v0 = vand.u32 4294901760, %v13111_v53  ;;  %v10228_v44 = vpack.c.bf16 %v7512_v19, %v7500_v61  ;;  %v7542_v34 = vand.u32 4294901760, %v7541_v54 }
 0x25e   :  { %10223 = vmatprep.subr.bf16.mxu1 %v10222_v47  ;;  %9053 = vmatmul.mubr.f32.vlgmr.msra.gmra.mrb[12].mxu0 %v14312_v23  ;;  %v8137_v59 = vand.u32 4294901760, %v8136_v22  ;;  %v10318_v47 = vpack.c.bf16 %v8130_v8, %v8123_v45  ;;  %v7547_v39 = vsub.f32 %v13099_v51, %v13743_v15  ;;  %v10230_v8 = vpack.c.bf16 %v7530_v5, %v7518_v10 }
 0x25f   :  { %10316 = vmatpush3.bf16.msra.mxu0 %v10315_v25  ;;  %v8157_v9 = vsub.f32 %v13111_v53, %v14314_v0  ;;  %v7554_v22 = vand.u32 4294901760, %v7553_v58  ;;  %v10232_v60 = vpack.c.bf16 %v7536_v42, %v7524_v1  ;;  %9071 = vmatprep.mubr.msk.f32.mxu0 %vm10668_vm1, %v13753_v55  ;;  %v14318_v58 = vrot.slane %v12699_v3, %v14299_v6 }
 0x260   :  { %7460 = vmatmul.mubr.f32.vlgmr.msra.gmra.mrb[12].mxu1 %v14312_v23  ;;  %10317 = vmatprep.subr.bf16.mxu0 %v14302_v24  ;;  %v14315_v23 = vand.u32 4294901760, %v13101_v57  ;;  %v10321_v0 = vpack.c.bf16 %v8144_v48, %v8137_v59  ;;  %v8151_v54 = vand.u32 4294901760, %v8150_v43  ;;  %v14319_v1 = vrot.slane %v12699_v3, %v14298_v37 }
 0x261   :  { %10225 = vmatpush1.bf16.msra.mxu1 %v10224_v13  ;;  %v4781_v25 = vpop.f32.mrb[6].mxu0  ;;  %7610 = vmatprep.mubr.f32.mxu1 %v13753_v55  ;;  %v14316_v13 = vrot.slane %v12699_v3, %v14297_v38  ;;  %v8158_v15 = vand.u32 4294901760, %v8157_v9  ;;  %v7548_v59 = vand.u32 4294901760, %v7547_v39  ;;  %v10238_v39 = vpack.c.bf16 %v12996_v14, %v12992_v36 }
 0x262   :  { %v7559_v45 = vsub.f32 %v13101_v57, %v14315_v23  ;;  %10227 = vmatprep.subr.bf16.mxu1 %v10226_v33  ;;  %v4783_v19 = vpop.f32.mrb[7].mxu0  ;;  %v14317_v23 = vrot.slane %v12699_v3, %v14296_v49 }
 0x263   :  { %v4134_v31 = vpop.f32.mrb[6].mxu1  ;;  %v8703_v61 = vsub.f32 %v4781_v25, %v14316_v13  ;;  %v8704_v10 = vsub.f32 %v4783_v19, %v14318_v58  ;;  %10319 = vmatpush3.bf16.msra.mxu0 %v10318_v47  ;;  %v10234_v13 = vpack.c.bf16 %v7554_v22, %v7542_v34  ;;  %v10324_v9 = vpack.c.bf16 %v8158_v15, %v8151_v54 }
 0x264   :  { %v8701_v33 = vsub.f32 %v4134_v31, %v14317_v23  ;;  %v4136_v5 = vpop.f32.mrb[7].mxu1  ;;  %10320 = vmatprep.subr.bf16.mxu0 %v14302_v24  ;;  %v7560_v48 = vand.u32 4294901760, %v7559_v45  ;;  %v10242_v15 = vpack.c.bf16 %v13020_v18, %v13014_v56  ;;  %v10244_v34 = vpack.c.bf16 %v13027_v28, %v13025_v30 }
 0x265   :  { %v8728_v38 = vmul.f32 -12.005, %v8703_v61  ;;  %v8702_v42 = vsub.f32 %v4136_v5, %v14319_v1  ;;  %10229 = vmatpush1.bf16.msra.mxu1 %v10228_v44  ;;  %v8729_v31 = vmul.f32 -12.005, %v8704_v10  ;;  %v10246_v22 = vpack.c.bf16 %v13044_v40, %v13040_v17 }
 0x266   :  { %v8726_v25 = vmul.f32 -12.005, %v8701_v33  ;;  %10231 = vmatprep.subr.bf16.mxu1 %v10230_v8  ;;  %v10236_v3 = vpack.c.bf16 %v7560_v48, %v7548_v59  ;;  %v10330_v8 = vpack.c.bf16 %v13036_v52, %v13034_v35  ;;  %v10336_v59 = vpack.c.bf16 %v13111_v53, %v13108_v2 }
 0x267   :  { %v8753_v23 = vmul.f32 %v8728_v38, %v8703_v61  ;;  %v8727_v6 = vmul.f32 -12.005, %v8702_v42  ;;  %v8754_v47 = vmul.f32 %v8729_v31, %v8704_v10  ;;  %10322 = vmatpush3.bf16.msra.mxu0 %v10321_v0  ;;  %v10327_v38 = vpack.c.bf16 %v13012_v41, %v13009_v27 }
 0x268   :  { %v8751_v19 = vmul.f32 %v8726_v25, %v8701_v33  ;;  %10323 = vmatprep.subr.bf16.mxu0 %v14302_v24  ;;  %v10333_v61 = vpack.c.bf16 %v13070_v32, %v13068_v26  ;;  %v10248_v0 = vpack.c.bf16 %v13053_v20, %v13048_v62  ;;  %v10250_v10 = vpack.c.bf16 %v13084_v11, %v13072_v63 }
 0x269   :  { %v8790_v43 = vmul.f32 1.442695, %v8753_v23  ;;  %v8752_v58 = vmul.f32 %v8727_v6, %v8702_v42  ;;  %10233 = vmatpush1.bf16.msra.mxu1 %v10232_v60  ;;  %v8792_v5 = vmul.f32 1.442695, %v8754_v47  ;;  %v10240_v6 = vpack.c.bf16 %v13005_v50, %v13003_v12  ;;  %v14321_v47 = vld [vmem:[#allocation29_spill] sm:$0xff] }
 0x26a   :  { %v8786_v44 = vmul.f32 1.442695, %v8751_v19  ;;  %10235 = vmatprep.subr.bf16.mxu1 %v10234_v13  ;;  %v10252_v25 = vpack.c.bf16 %v13101_v57, %v13099_v51  ;;  %v14320_v31 = vcombine.low %v12876_v29, %v12884_v16  ;;  %v14323_v29 = vld [vmem:[#allocation20_spill] sm:$0xff]  ;;  %v14324_v16 = vld [vmem:[#allocation25_spill] sm:$0xff] }
 0x26b   :  { %10534 = vpow2.f32 %v8790_v43  ;;  %v8788_v45 = vmul.f32 1.442695, %v8752_v58  ;;  %10325 = vmatpush3.bf16.msra.mxu0 %v10324_v9  ;;  %v14322_v9 = vld [vmem:[#allocation24_spill] sm:$0xff]  ;;  %v14325_v43 = vld [vmem:[#allocation35_spill] sm:$0xff] }
 0x26c   :  { %10536 = vpow2.f32 %v8786_v44  ;;  %10326 = vmatprep.subr.bf16.mxu0 %v14302_v24  ;;  %v8883_v13 = vrot.slane %v14320_v31, %v14231_v7  ;;  %v14327_v58 = vld [vmem:[#allocation40_spill] sm:$0xff]  ;;  %v14329_v44 = vld [vmem:[#allocation47_spill] sm:$0xff]  ;;  %v14352_v31 = vand.u32 4294901760, %v13084_v11 }
 0x26d   :  { %10538 = vpow2.f32 %v8788_v45  ;;  %10237 = vmatpush1.bf16.msra.mxu1 %v10236_v3  ;;  %v14328_v3 = vld [vmem:[#allocation32_spill] sm:$0xff] }
 0x26e   :  { %10540 = vpow2.f32 %v8792_v5  ;;  %10239 = vmatprep.subr.bf16.mxu1 %v10238_v39  ;;  %9072 = vmatmul.mubr.f32.vlgmr.msra.gmra.mrb[12].mxu0 %v14100_v46  ;;  %v14330_v5 = vand.u32 4294901760, %v12992_v36  ;;  %v14331_v39 = vand.u32 4294901760, %v12996_v14  ;;  %v14338_v36 = vand.u32 4294901760, %v13014_v56 }
 0x26f   :  { %10328 = vmatpush3.bf16.msra.mxu0 %v10327_v38  ;;  %9090 = vmatprep.mubr.msk.f32.mxu0 %vm10668_vm1, %v13753_v55  ;;  %v14332_v38 = vld [vmem:[#allocation17_spill] sm:$0xff]  ;;  %v14339_v14 = vand.u32 4294901760, %v13020_v18  ;;  %v14345_v18 = vand.u32 4294901760, %v13040_v17  ;;  %v14350_v17 = vand.u32 4294901760, %v13053_v20  ;;  %v14356_v20 = vand.u32 4294901760, %v13101_v57 }
 0x270   :  { %7612 = vmatmul.mubr.f32.vlgmr.msra.gmra.mrb[12].mxu1 %v14100_v46  ;;  %10329 = vmatprep.subr.bf16.mxu0 %v14302_v24  ;;  %v10270_v45 = vpack.c.bf16 %v14331_v39, %v14330_v5 }
 0x271   :  { %10241 = vmatpush1.bf16.msra.mxu1 %v10240_v6  ;;  %7714 = vmatprep.mubr.f32.mxu1 %v13753_v55  ;;  %v14333_v6 = vand.u32 4294901760, %v13009_v27  ;;  %v14341_v27 = vand.u32 4294901760, %v13034_v35  ;;  %v14347_v35 = vand.u32 4294901760, %v13068_v26  ;;  %v14353_v26 = vand.u32 4294901760, %v13108_v2  ;;  %v10565_v2 = vld [vmem:[#allocation5 + $0x8] sm:$0xff] }
 0x272   :  { %10243 = vmatprep.subr.bf16.mxu1 %v10242_v15  ;;  %v14334_v15 = vand.u32 4294901760, %v13012_v41  ;;  %v14342_v41 = vand.u32 4294901760, %v13036_v52  ;;  %v14348_v52 = vand.u32 4294901760, %v13070_v32  ;;  %v14354_v32 = vand.u32 4294901760, %v13111_v53 }
 0x273   :  { %10331 = vmatpush3.bf16.msra.mxu0 %v10330_v8 }
 0x274   :  { %10332 = vmatprep.subr.bf16.mxu0 %v14302_v24  ;;  %v10351_v8 = vpack.c.bf16 %v14334_v15, %v14333_v6 }
 0x275   :  { %v13246_v60 = vpop.eup %10534  ;;  %10245 = vmatpush1.bf16.msra.mxu1 %v10244_v34  ;;  %v14335_v34 = vld [vmem:[#allocation26_spill] sm:$0xff] }
 0x276   :  { %v10537_v33 = vpop.eup %10536  ;;  %10247 = vmatprep.subr.bf16.mxu1 %v10246_v22  ;;  %v14336_v22 = vand.u32 4294901760, %v13003_v12  ;;  %v14343_v12 = vand.u32 4294901760, %v13025_v30  ;;  %v10357_v30 = vpack.c.bf16 %v14348_v52, %v14347_v35 }
 0x277   :  { %v10539_v54 = vpop.eup %10538  ;;  %10334 = vmatpush3.bf16.msra.mxu0 %v10333_v61  ;;  %v14337_v61 = vand.u32 4294901760, %v13005_v50  ;;  %v14344_v50 = vand.u32 4294901760, %v13027_v28  ;;  %v14349_v28 = vand.u32 4294901760, %v13048_v62  ;;  %v14355_v62 = vand.u32 4294901760, %v13099_v51  ;;  %v14359_v51 = vld [vmem:[#allocation18_spill] sm:$0xff] }
 0x278   :  { %v13253_v1 = vpop.eup %10540  ;;  %v8876_v42 = vcombine.low %v10537_v33, %v10539_v54  ;;  %10335 = vmatprep.subr.bf16.mxu0 %v14302_v24  ;;  %v10274_v33 = vpack.c.bf16 %v14339_v14, %v14338_v36  ;;  %v10354_v54 = vpack.c.bf16 %v14342_v41, %v14341_v27 }
 0x279   :  { %v8892_v48 = vcombine.low %v13246_v60, %v13253_v1  ;;  %10249 = vmatpush1.bf16.msra.mxu1 %v10248_v0  ;;  %v10272_v0 = vpack.c.bf16 %v14337_v61, %v14336_v22  ;;  %v10276_v56 = vpack.c.bf16 %v14344_v50, %v14343_v12 }
 0x27a   :  { %v8890_v23 = vrot.slane %v8876_v42, %v14231_v7  ;;  %10251 = vmatprep.subr.bf16.mxu1 %v10250_v10  ;;  %v14340_v10 = vld [vmem:[#allocation14_spill] sm:$0xff]  ;;  %v14346_v42 = vand.u32 4294901760, %v13044_v40  ;;  %v10280_v40 = vpack.c.bf16 %v14350_v17, %v14349_v28 }
 0x27b   :  { %10337 = vmatpush3.bf16.msra.mxu0 %v10336_v59 }
 0x27c   :  { %v8891_v19 = vcombine.low %v8883_v13, %v8890_v23  ;;  %10338 = vmatprep.subr.bf16.mxu0 %v14302_v24  ;;  %v10278_v59 = vpack.c.bf16 %v14346_v42, %v14345_v18  ;;  %v10360_v23 = vpack.c.bf16 %v14354_v32, %v14353_v26 }
 0x27d   :  { %10253 = vmatpush1.bf16.msra.mxu1 %v10252_v25  ;;  %v14351_v25 = vand.u32 4294901760, %v13072_v63  ;;  %v14358_v63 = vld [vmem:[#allocation49_spill] sm:$0xff] }
 0x27e   :  { %8959 = vst [vmem:[#allocation8 + $0x10] sm:$0xff] %v8891_v19  ;;  %10255 = vmatprep.subr.bf16.mxu1 %v12990_v21  ;;  %9091 = vmatmul.mubr.f32.vlgmr.msra.gmra.mrb[12].mxu0 %v14237_v4  ;;  %v10284_v19 = vpack.c.bf16 %v14356_v20, %v14355_v62  ;;  %v8625_v11 = vrot.slane %v10565_v2, %v14358_v63 }
 0x27f   :  { %10340 = vmatpush3.bf16.msra.mxu0 %v14321_v47  ;;  %9109 = vmatprep.mubr.msk.f32.mxu0 %vm10668_vm1, %v13753_v55  ;;  %v10282_v13 = vpack.c.bf16 %v14352_v31, %v14351_v25 }
 0x280   :  { %7717 = vmatmul.mubr.f32.vlgmr.msra.gmra.mrb[12].mxu1 %v14237_v4  ;;  %10341 = vmatprep.subr.bf16.mxu0 %v14302_v24  ;;  %v14326_v4 = vld [vmem:[#allocation34_spill] sm:$0xff] }
 0x281   :  { %10257 = vmatpush1.bf16.msra.mxu1 %v14322_v9  ;;  %7803 = vmatprep.mubr.f32.mxu1 %v13753_v55 }
 0x282   :  { %10259 = vmatprep.subr.bf16.mxu1 %v14323_v29 }
 0x283   :  { %10343 = vmatpush3.bf16.msra.mxu0 %v14324_v16 }
 0x284   :  { %10344 = vmatprep.subr.bf16.mxu0 %v14302_v24 }
 0x285   :  { %10261 = vmatpush1.bf16.msra.mxu1 %v14325_v43 }
 0x286   :  { %10263 = vmatprep.subr.bf16.mxu1 %v14326_v4 }
 0x287   :  { %10346 = vmatpush3.bf16.msra.mxu0 %v14327_v58 }
 0x288   :  { %10347 = vmatprep.subr.bf16.mxu0 %v14302_v24 }
 0x289   :  { %10265 = vmatpush1.bf16.msra.mxu1 %v14328_v3 }
 0x28a   :  { %10267 = vmatprep.subr.bf16.mxu1 %v14329_v44 }
 0x28b   :  { %10349 = vmatpush3.bf16.msra.mxu0 %v14332_v38 }
 0x28c   :  { %10350 = vmatprep.subr.bf16.mxu0 %v14302_v24 }
 0x28d   :  { %10269 = vmatpush1.bf16.msra.mxu1 %v14335_v34 }
 0x28e   :  { %10271 = vmatprep.subr.bf16.mxu1 %v10270_v45  ;;  %9110 = vmatmul.mubr.f32.vlgmr.msra.gmra.mrb[12].mxu0 %v14340_v10 }
 0x28f   :  { %10352 = vmatpush3.bf16.msra.mxu0 %v10351_v8  ;;  %9128 = vmatprep.mubr.msk.f32.mxu0 %vm10668_vm1, %v13753_v55 }
 0x290   :  { %7807 = vmatmul.mubr.f32.vlgmr.msra.gmra.mrb[12].mxu1 %v14340_v10  ;;  %10353 = vmatprep.subr.bf16.mxu0 %v14302_v24 }
 0x291   :  { %10273 = vmatpush1.bf16.msra.mxu1 %v10272_v0  ;;  %7925 = vmatprep.mubr.f32.mxu1 %v13753_v55 }
 0x292   :  { %10275 = vmatprep.subr.bf16.mxu1 %v10274_v33 }
 0x293   :  { %10355 = vmatpush3.bf16.msra.mxu0 %v10354_v54  ;;  %v8900_v54 = vrot.slane %v8892_v48, %v14231_v7 }
 0x294   :  { %10356 = vmatprep.subr.bf16.mxu0 %v14302_v24 }
 0x295   :  { %10277 = vmatpush1.bf16.msra.mxu1 %v10276_v56  ;;  %v14361_v56 = vld [vmem:[#allocation44_spill] sm:$0xff] }
 0x296   :  { %10279 = vmatprep.subr.bf16.mxu1 %v10278_v59  ;;  %v14362_v59 = vld [vmem:[#allocation39_spill] sm:$0xff] }
 0x297   :  { %10358 = vmatpush3.bf16.msra.mxu0 %v10357_v30 }
 0x298   :  { %10359 = vmatprep.subr.bf16.mxu0 %v14302_v24 }
 0x299   :  { %10281 = vmatpush1.bf16.msra.mxu1 %v10280_v40 }
 0x29a   :  { %10283 = vmatprep.subr.bf16.mxu1 %v10282_v13 }
 0x29b   :  { %10361 = vmatpush3.bf16.msra.mxu0 %v10360_v23 }
 0x29c   :  { %10362 = vmatprep.subr.bf16.mxu0 %v14302_v24 }
 0x29d   :  { %10285 = vmatpush1.bf16.msra.mxu1 %v10284_v19 }
 0x29e   :  { %10287 = vmatprep.subr.bf16.mxu1 %v12990_v21  ;;  %9129 = vmatmul.mubr.f32.vlgmr.msra.gmra.mrb[12].mxu0 %v14100_v46  ;;  %v14357_v21 = vld [vmem:[#allocation28_spill] sm:$0xff] }
 0x29f   :  { %10364 = vmatpush3.bf16.msra.mxu0 %v14321_v47  ;;  %9147 = vmatprep.mubr.msk.f32.mxu0 %vm10668_vm1, %v13753_v55 }
 0x2a0   :  { %7927 = vmatmul.mubr.f32.vlgmr.msra.gmra.mrb[12].mxu1 %v14100_v46  ;;  %10365 = vmatprep.subr.bf16.mxu0 %v14302_v24 }
 0x2a1   :  { %10289 = vmatpush1.bf16.msra.mxu1 %v14322_v9  ;;  %8013 = vmatprep.mubr.f32.mxu1 %v13753_v55  ;;  %v13368_v55 = vld [vmem:[#allocation5 + $0x10] sm:$0xff] }
 0x2a2   :  { %10291 = vmatprep.subr.bf16.mxu1 %v14323_v29  ;;  %v8633_v53 = vrot.slane %v13368_v55, %v14357_v21  ;;  %v8637_v57 = vrot.slane %v13368_v55, %v14359_v51  ;;  %v8649_v18 = vrot.slane %v13368_v55, %v14361_v56  ;;  %v8641_v42 = vrot.slane %v13368_v55, %v14296_v49 }
 0x2a3   :  { %10367 = vmatpush3.bf16.msra.mxu0 %v14324_v16  ;;  %v8653_v35 = vrot.slane %v13368_v55, %v14362_v59  ;;  %v8645_v52 = vrot.slane %v13368_v55, %v14298_v37 }
 0x2a4   :  { %10368 = vmatprep.subr.bf16.mxu0 %v14302_v24 }
 0x2a5   :  { %10293 = vmatpush1.bf16.msra.mxu1 %v14325_v43 }
 0x2a6   :  { %10295 = vmatprep.subr.bf16.mxu1 %v14326_v4 }
 0x2a7   :  { %10370 = vmatpush3.bf16.msra.mxu0 %v14327_v58 }
 0x2a8   :  { %10371 = vmatprep.subr.bf16.mxu0 %v14302_v24  ;;  %v14360_v24 = vld [vmem:[#allocation50_spill] sm:$0xff] }
 0x2a9   :  { %10297 = vmatpush1.bf16.msra.mxu1 %v14328_v3  ;;  %v8629_v47 = vrot.slane %v10565_v2, %v14360_v24 }
 0x2aa   :  { %10299 = vmatprep.subr.bf16.mxu1 %v14329_v44 }
 0x2ab   :  { %10373 = vmatpush3.bf16.msra.mxu0 %v14332_v38 }
 0x2ad   :  { %10301 = vmatpush1.bf16.msra.mxu1 %v14335_v34 }
 0x2ae   :  { %9148 = vmatmul.mubr.f32.vlgmr.msra.gmra.mrb[12].mxu0 %v14100_v46 }
 0x2b0   :  { %8015 = vmatmul.mubr.f32.vlgmr.msra.gmra.mrb[12].mxu1 %v14100_v46 }
 0x2c1   :  { %v6075_v9 = vpop.f32.mrb[8].mxu0 }
 0x2c2   :  { %v8707_v16 = vsub.f32 %v6075_v9, %v8633_v53  ;;  %v6077_v43 = vpop.f32.mrb[9].mxu0 }
 0x2c3   :  { %v5428_v29 = vpop.f32.mrb[8].mxu1  ;;  %v8708_v46 = vsub.f32 %v6077_v43, %v8637_v57 }
 0x2c4   :  { %v8705_v4 = vsub.f32 %v5428_v29, %v8625_v11  ;;  %v5430_v58 = vpop.f32.mrb[9].mxu1  ;;  %v8732_v3 = vmul.f32 -12.005, %v8707_v16 }
 0x2c5   :  { %v8706_v44 = vsub.f32 %v5430_v58, %v8629_v47  ;;  %v8733_v39 = vmul.f32 -12.005, %v8708_v46  ;;  %v8980_v58 = vld [vmem:[#allocation5 + $0x18] ss:$0 sm:$0xff] }
 0x2c6   :  { %v8730_v5 = vmul.f32 -12.005, %v8705_v4  ;;  %v8757_v45 = vmul.f32 %v8732_v3, %v8707_v16 }
 0x2c7   :  { %v8731_v38 = vmul.f32 -12.005, %v8706_v44  ;;  %v8758_v15 = vmul.f32 %v8733_v39, %v8708_v46  ;;  %v8661_v46 = vrot.slane %v13368_v55, %v14360_v24 }
 0x2c8   :  { %v8755_v6 = vmul.f32 %v8730_v5, %v8705_v4  ;;  %v8798_v8 = vmul.f32 1.442695, %v8757_v45  ;;  %v8657_v4 = vrot.slane %v13368_v55, %v14358_v63 }
 0x2c9   :  { %v8756_v34 = vmul.f32 %v8731_v38, %v8706_v44  ;;  %v8800_v61 = vmul.f32 1.442695, %v8758_v15 }
 0x2ca   :  { %v8794_v22 = vmul.f32 1.442695, %v8755_v6  ;;  %10542 = vpow2.f32 %v8798_v8 }
 0x2cb   :  { %v8796_v0 = vmul.f32 1.442695, %v8756_v34 }
 0x2cc   :  { %10544 = vpow2.f32 %v8794_v22 }
 0x2cd   :  { %10546 = vpow2.f32 %v8796_v0 }
 0x2ce   :  { %10548 = vpow2.f32 %v8800_v61 }
 0x2d4   :  { %v10543_v36 = vpop.eup %10542 }
 0x2d6   :  { %v10545_v14 = vpop.eup %10544 }
 0x2d7   :  { %v10547_v33 = vpop.eup %10546 }
 0x2d8   :  { %v10549_v10 = vpop.eup %10548  ;;  %v8893_v27 = vcombine.low %v10545_v14, %v10547_v33 }
 0x2d9   :  { %v8909_v41 = vcombine.low %v10543_v36, %v10549_v10 }
 0x2da   :  { %v8907_v12 = vrot.slane %v8893_v27, %v14231_v7 }
 0x2db   :  { %v8917_v29 = vrot.slane %v8909_v41, %v14231_v7 }
 0x2dc   :  { %v8908_v50 = vcombine.low %v8900_v54, %v8907_v12 }
 0x2de   :  { %8960 = vst [vmem:[#allocation8 + $0x18] sm:$0xff] %v8908_v50 }
 0x321   :  { %v7369_v30 = vpop.f32.mrb[10].mxu0 }
 0x322   :  { %v8711_v60 = vsub.f32 %v7369_v30, %v8649_v18  ;;  %v7371_v1 = vpop.f32.mrb[11].mxu0 }
 0x323   :  { %v6722_v28 = vpop.f32.mrb[10].mxu1  ;;  %v8712_v40 = vsub.f32 %v7371_v1, %v8653_v35 }
 0x324   :  { %v8709_v48 = vsub.f32 %v6722_v28, %v8641_v42  ;;  %v6724_v17 = vpop.f32.mrb[11].mxu1  ;;  %v8736_v25 = vmul.f32 -12.005, %v8711_v60 }
 0x325   :  { %v8710_v31 = vsub.f32 %v6724_v17, %v8645_v52  ;;  %v8737_v26 = vmul.f32 -12.005, %v8712_v40 }
 0x326   :  { %v8734_v13 = vmul.f32 -12.005, %v8709_v48  ;;  %v8761_v32 = vmul.f32 %v8736_v25, %v8711_v60 }
 0x327   :  { %v8735_v23 = vmul.f32 -12.005, %v8710_v31  ;;  %v8762_v62 = vmul.f32 %v8737_v26, %v8712_v40 }
 0x328   :  { %v8759_v49 = vmul.f32 %v8734_v13, %v8709_v48  ;;  %v8806_v20 = vmul.f32 1.442695, %v8761_v32 }
 0x329   :  { %v8760_v19 = vmul.f32 %v8735_v23, %v8710_v31  ;;  %v8808_v53 = vmul.f32 1.442695, %v8762_v62 }
 0x32a   :  { %v8802_v21 = vmul.f32 1.442695, %v8759_v49  ;;  %10550 = vpow2.f32 %v8806_v20 }
 0x32b   :  { %v8804_v37 = vmul.f32 1.442695, %v8760_v19 }
 0x32c   :  { %10552 = vpow2.f32 %v8802_v21 }
 0x32d   :  { %10554 = vpow2.f32 %v8804_v37 }
 0x32e   :  { %10556 = vpow2.f32 %v8808_v53 }
 0x334   :  { %v10551_v2 = vpop.eup %10550 }
 0x336   :  { %v10553_v11 = vpop.eup %10552 }
 0x337   :  { %v10555_v51 = vpop.eup %10554 }
 0x338   :  { %v10557_v57 = vpop.eup %10556  ;;  %v8910_v47 = vcombine.low %v10553_v11, %v10555_v51 }
 0x339   :  { %v8926_v9 = vcombine.low %v10551_v2, %v10557_v57 }
 0x33a   :  { %v8924_v16 = vrot.slane %v8910_v47, %v14231_v7 }
 0x33b   :  { %v8934_v27 = vrot.slane %v8926_v9, %v14231_v7 }
 0x33c   :  { %v8925_v43 = vcombine.low %v8917_v29, %v8924_v16 }
 0x33e   :  { %8961 = vst [vmem:[#allocation8 + $0x20] sm:$0xff] %v8925_v43 }
 0x381   :  { %v8554_v3 = vpop.f32.mrb[12].mxu0 }
 0x382   :  { %v8715_v5 = vsub.f32 %v8554_v3, %v8980_v58  ;;  %v9149_v39 = vpop.f32.mrb[13].mxu0 }
 0x383   :  { %v8016_v44 = vpop.f32.mrb[12].mxu1 }
 0x384   :  { %v8713_v45 = vsub.f32 %v8016_v44, %v8657_v4  ;;  %v8018_v38 = vpop.f32.mrb[13].mxu1  ;;  %v8740_v6 = vmul.f32 -12.005, %v8715_v5 }
 0x385   :  { %v8714_v15 = vsub.f32 %v8018_v38, %v8661_v46 }
 0x386   :  { %v8738_v8 = vmul.f32 -12.005, %v8713_v45  ;;  %v8765_v34 = vmul.f32 %v8740_v6, %v8715_v5 }
 0x387   :  { %v8739_v22 = vmul.f32 -12.005, %v8714_v15 }
 0x388   :  { %v8763_v61 = vmul.f32 %v8738_v8, %v8713_v45  ;;  %v8814_v0 = vmul.f32 1.442695, %v8765_v34 }
 0x389   :  { %v8764_v36 = vmul.f32 %v8739_v22, %v8714_v15 }
 0x38a   :  { %v8810_v14 = vmul.f32 1.442695, %v8763_v61  ;;  %10558 = vpow2.f32 %v8814_v0 }
 0x38b   :  { %v8812_v63 = vmul.f32 1.442695, %v8764_v36 }
 0x38c   :  { %10560 = vpow2.f32 %v8810_v14 }
 0x38d   :  { %10562 = vpow2.f32 %v8812_v63 }
 0x394   :  { %v10559_v55 = vpop.eup %10558 }
 0x395   :  { %8981 = vst.sshfl [vmem:[#allocation8 + $0x30] sm:$0x3 pattern:$0x76325410] %v10559_v55 }
 0x396   :  { %v10561_v24 = vpop.eup %10560 }
 0x397   :  { %v10563_v33 = vpop.eup %10562 }
 0x398   :  { %v8927_v10 = vcombine.low %v10561_v24, %v10563_v33 }
 0x39a   :  { %v8941_v41 = vrot.slane %v8927_v10, %v14231_v7 }
 0x39c   :  { %v8942_v54 = vcombine.low %v8934_v27, %v8941_v41 }
 0x39e   :  { %8962 = vst [vmem:[#allocation8 + $0x28] sm:$0xff] %v8942_v54 }
 0x39f   :  { %10643 = shalt.err (!%p10640_p0)
}
 0x3a0   :  { %s10644_s26 = scalar_lea.hbm %s13412_s3, 800 }
 0x3a1   :  { %p10645_p1 = scmp.ne.s32.totalorder %s13412_s3, %s10644_s26  ;;  %p10648_p2 = scmp.lt.u32.totalorder %s10644_s26, %s13412_s3 }
 0x3a3   :  { %p10650_p3 = pnand %p10648_p2, %p10645_p1 }
 0x3a5   :  { %10653 = shalt.err (!%p10650_p3)
}
 0x3a6   :  { %8973 = dma.vmem_to_hbm [thread:$0]  %s8971_s22, 800, %s13412_s3, [#allocation4]  }
 0x3a7   :  { %10658 = dma.done.wait [#allocation4], 800  }
 0x3a8   :  { %10659 = vsyncadd [#allocation4], 4294966496 }
 0x3a9   :  { %8977 = vsyncpa [#allocation3], 1 }
 0x3aa   :  { %8978 = vsyncpa [#allocation6], 1 }
 0x3ab   :  { %8979 = vsyncpa [#allocation4], 1 }

</bundles_post_ra>
